<compile_context>
chip_gen: v6e
topology: v6e:2x2x1
jax: 0.10.0
libtpu: 0.0.40
codegen_flags: <defaults>
</compile_context>

<pallas_src>
import functools

import jax
import jax.numpy as jnp
from jax.experimental import pallas as pl
from jax.experimental.pallas import tpu as pltpu


def transformer_block_kernel(
    x_ref,
    ln1_g_ref, ln1_b_ref,
    wq_ref, bq_ref, wk_ref, bk_ref, wv_ref, bv_ref, wo_ref, bo_ref,
    ln2_g_ref, ln2_b_ref,
    wg_ref, wu_ref, wd_ref,
    out_ref, k_out_ref, v_out_ref,
    h1_scratch, hn_scratch, ctx_scratch,
    *, num_heads, head_dim, eps,
):
    i_tile = pl.program_id(1)

    # ---------------- attention: runs once per batch slab (i_tile == 0) -------
    @pl.when(i_tile == 0)
    def _attention():
        x = x_ref[...]                                   # (S, H) f32
        S, H = x.shape

        # input layernorm (f32 statistics, biased variance)
        mu = jnp.mean(x, axis=-1, keepdims=True)
        var = jnp.mean((x - mu) ** 2, axis=-1, keepdims=True)
        xn = (x - mu) * jax.lax.rsqrt(var + eps)
        xn = xn * ln1_g_ref[...] + ln1_b_ref[...]
        xn_bf = xn.astype(jnp.bfloat16)

        # Q/K/V projections: bf16 operands, f32 accumulation
        q = jnp.dot(xn_bf, wq_ref[...], preferred_element_type=jnp.float32) + bq_ref[...]
        k = jnp.dot(xn_bf, wk_ref[...], preferred_element_type=jnp.float32) + bk_ref[...]
        v = jnp.dot(xn_bf, wv_ref[...], preferred_element_type=jnp.float32) + bv_ref[...]

        # fold 1/sqrt(head_dim) into Q (O(S*H) instead of O(S^2))
        q = q * (1.0 / (head_dim ** 0.5))
        q_bf = q.astype(jnp.bfloat16)
        k_bf = k.astype(jnp.bfloat16)
        v_bf = v.astype(jnp.bfloat16)

        # causal additive mask built in-kernel (no HBM traffic); stays f32.
        row = jax.lax.broadcasted_iota(jnp.int32, (S, S), 0)
        col = jax.lax.broadcasted_iota(jnp.int32, (S, S), 1)
        neg_mask = jnp.where(col <= row, 0.0, -1e9).astype(jnp.float32)

        # Per-head scores / softmax / PV; each head's context is stored into a
        # bf16 VMEM scratch slice immediately (no lane-axis concat, bounded
        # live ranges).  present-K/V stored per head in (nh, S, hd) layout.
        # TODO(synk): flash-style query tiling before scaling S beyond ~1k.
        for h in range(num_heads):                       # static unroll
            sl = slice(h * head_dim, (h + 1) * head_dim)
            k_out_ref[h] = k_bf[:, sl]
            v_out_ref[h] = v_bf[:, sl]
            s = jax.lax.dot_general(                     # contract last dims (no k.T)
                q_bf[:, sl], k_bf[:, sl],
                (((1,), (1,)), ((), ())),
                preferred_element_type=jnp.float32)
            s = s + neg_mask
            s = s - jnp.max(s, axis=-1, keepdims=True)
            p = jnp.exp(s)
            inv_l = pl.reciprocal(jnp.sum(p, axis=-1, keepdims=True), approx=True)
            p_bf = (p * inv_l).astype(jnp.bfloat16)
            ctx_scratch[:, sl] = jnp.dot(
                p_bf, v_bf[:, sl],
                preferred_element_type=jnp.float32).astype(jnp.bfloat16)

        # single output projection on the concatenated-context slab
        attn = jnp.dot(ctx_scratch[...], wo_ref[...],
                       preferred_element_type=jnp.float32) + bo_ref[...]

        h1 = x + attn                                    # residual #1 (f32)
        h1_scratch[...] = h1

        # post-attention layernorm, stashed in bf16 for the FFN matmuls
        mu2 = jnp.mean(h1, axis=-1, keepdims=True)
        var2 = jnp.mean((h1 - mu2) ** 2, axis=-1, keepdims=True)
        hn = (h1 - mu2) * jax.lax.rsqrt(var2 + eps)
        hn = hn * ln2_g_ref[...] + ln2_b_ref[...]
        hn_scratch[...] = hn.astype(jnp.bfloat16)

    # ---------------- SwiGLU FFN, tiled over the intermediate dim -------------
    hn_bf = hn_scratch[...]                              # (S, H) bf16
    gate = jnp.dot(hn_bf, wg_ref[...], preferred_element_type=jnp.float32)
    up = jnp.dot(hn_bf, wu_ref[...], preferred_element_type=jnp.float32)
    act = gate * jax.nn.sigmoid(gate)                    # silu in f32
    partial = jnp.dot((act * up).astype(jnp.bfloat16), wd_ref[...],
                      preferred_element_type=jnp.float32)  # (S, H) f32

    @pl.when(i_tile == 0)
    def _init_out():
        out_ref[...] = h1_scratch[...] + partial         # residual #2 + first tile

    @pl.when(i_tile > 0)
    def _accum_out():
        out_ref[...] = out_ref[...] + partial


def _make_spec(shape, index_map, buffers=None):
    """BlockSpec, optionally requesting an explicit buffer depth."""
    if buffers is not None and hasattr(pl, "Buffered"):
        try:
            return pl.BlockSpec(shape, index_map, pipeline_mode=pl.Buffered(buffers))
        except TypeError:
            pass
    return pl.BlockSpec(shape, index_map)


def transformer_block(x, params, *, num_heads, tile_i=None, ffn_weight_buffers=None):
    """Fused TransformerBlock forward.

    Returns (hidden_states, aux_loss_dict, (present_k, present_v)) matching the
    PyTorch module (DenseLLM path => aux_loss_dict is {}).  present K/V are
    bf16 in (B, num_heads, S, head_dim) layout.
    """
    B, S, H = x.shape
    head_dim = H // num_heads
    I = params["wg"].shape[1]
    eps = 1e-5
    bf16 = jnp.bfloat16

    # ---- generation-aware VMEM limit (≈96 MiB on v5e/v6e, ≈48 MiB on v7x) ----
    try:
        vmem_cap = pltpu.get_tpu_info().vmem_capacity_bytes
    except Exception:
        vmem_cap = 64 * 1024 * 1024
    vmem_limit = min(int(vmem_cap * 0.75), 112 * 1024 * 1024)
    vmem_limit = max(vmem_limit, 32 * 1024 * 1024)

    # ---- FFN intermediate tile: largest 256-multiple that fits the budget ----
    n_buf = 2 if ffn_weight_buffers is None else max(int(ffn_weight_buffers), 1)
    if tile_i is None:
        resident = (4 * H * H * 2                 # QKVO bf16 (single-buffered)
                    + 16 * H * 4                  # biases / LN params
                    + S * H * (4 + 2 + 2)         # h1 / hn / ctx scratch
                    + S * H * 4 * 3               # x + out residency (approx)
                    + 2 * S * H * 2 * 2)          # present K/V blocks
        budget = vmem_limit - resident - (4 << 20)
        cands = [c for c in (2048, 1024, 512, 256) if c < I and I % c == 0]
        tile_i = I
        for c in cands:
            if 3 * H * c * 2 * n_buf <= budget:
                tile_i = c
                break
        else:
            if cands:
                tile_i = cands[-1]
    if I % tile_i != 0:
        tile_i = I
    n_i = I // tile_i

    kernel = functools.partial(
        transformer_block_kernel,
        num_heads=num_heads, head_dim=head_dim, eps=eps,
    )

    def build(weight_buffers, stream_buffers):
        const = lambda b, i: (0, 0)
        in_specs = [
            pl.BlockSpec((None, S, H), lambda b, i: (b, 0, 0)),         # x slab
            _make_spec((1, H), const, weight_buffers),                  # ln1 gamma
            _make_spec((1, H), const, weight_buffers),                  # ln1 beta
            _make_spec((H, H), const, weight_buffers),                  # Wq
            _make_spec((1, H), const, weight_buffers),                  # bq
            _make_spec((H, H), const, weight_buffers),                  # Wk
            _make_spec((1, H), const, weight_buffers),                  # bk
            _make_spec((H, H), const, weight_buffers),                  # Wv
            _make_spec((1, H), const, weight_buffers),                  # bv
            _make_spec((H, H), const, weight_buffers),                  # Wo
            _make_spec((1, H), const, weight_buffers),                  # bo
            _make_spec((1, H), const, weight_buffers),                  # ln2 gamma
            _make_spec((1, H), const, weight_buffers),                  # ln2 beta
            _make_spec((H, tile_i), lambda b, i: (0, i), stream_buffers),  # gate
            _make_spec((H, tile_i), lambda b, i: (0, i), stream_buffers),  # up
            _make_spec((tile_i, H), lambda b, i: (i, 0), stream_buffers),  # down
        ]
        out_specs = [
            pl.BlockSpec((None, S, H), lambda b, i: (b, 0, 0)),         # hidden
            pl.BlockSpec((None, num_heads, S, head_dim),
                         lambda b, i: (b, 0, 0, 0)),                    # present K
            pl.BlockSpec((None, num_heads, S, head_dim),
                         lambda b, i: (b, 0, 0, 0)),                    # present V
        ]
        out_shapes = (
            jax.ShapeDtypeStruct((B, S, H), jnp.float32),
            jax.ShapeDtypeStruct((B, num_heads, S, head_dim), bf16),
            jax.ShapeDtypeStruct((B, num_heads, S, head_dim), bf16),
        )
        return pl.pallas_call(
            kernel,
            out_shape=out_shapes,
            grid_spec=pltpu.PrefetchScalarGridSpec(
                num_scalar_prefetch=0,
                grid=(B, n_i),
                in_specs=in_specs,
                out_specs=out_specs,
                scratch_shapes=[
                    pltpu.VMEM((S, H), jnp.float32),     # h1 residual (f32)
                    pltpu.VMEM((S, H), bf16),            # post-LN activations
                    pltpu.VMEM((S, H), bf16),            # per-head ctx slab
                ],
            ),
            compiler_params=pltpu.CompilerParams(
                dimension_semantics=("parallel", "arbitrary"),
                vmem_limit_bytes=vmem_limit,
            ),
        )

    args = (
        x,
        params["ln1_g"], params["ln1_b"],
        params["wq"].astype(bf16), params["bq"],
        params["wk"].astype(bf16), params["bk"],
        params["wv"].astype(bf16), params["bv"],
        params["wo"].astype(bf16), params["bo"],
        params["ln2_g"], params["ln2_b"],
        params["wg"].astype(bf16), params["wu"].astype(bf16),
        params["wd"].astype(bf16),
    )

    try:
        out, present_k, present_v = build(1, ffn_weight_buffers)(*args)
    except Exception:
        # TODO(synk): drop this fallback once pl.Buffered(1) single-buffering of
        # constant-index weights is confirmed on the deployed jax/libtpu.
        out, present_k, present_v = build(None, None)(*args)

    return out, {}, (present_k, present_v)


def reference_block(x, mask, params, *, num_heads):
    """Pure-JAX f32 reference mirroring the PyTorch forward."""
    B, S, H = x.shape
    hd = H // num_heads
    eps = 1e-5

    def ln(y, g, b):
        mu = jnp.mean(y, -1, keepdims=True)
        var = jnp.mean((y - mu) ** 2, -1, keepdims=True)
        return (y - mu) / jnp.sqrt(var + eps) * g + b

    xn = ln(x, params["ln1_g"], params["ln1_b"])
    q = xn @ params["wq"] + params["bq"]
    k = xn @ params["wk"] + params["bk"]
    v = xn @ params["wv"] + params["bv"]
    q = q.reshape(B, S, num_heads, hd).transpose(0, 2, 1, 3)
    k = k.reshape(B, S, num_heads, hd).transpose(0, 2, 1, 3)
    v = v.reshape(B, S, num_heads, hd).transpose(0, 2, 1, 3)
    s = jnp.einsum("bhqd,bhkd->bhqk", q, k) / (hd ** 0.5) + mask[None, None]
    p = jax.nn.softmax(s, axis=-1)
    ctx = p @ v
    ctx = ctx.transpose(0, 2, 1, 3).reshape(B, S, H)
    attn = ctx @ params["wo"] + params["bo"]
    h1 = x + attn
    hn = ln(h1, params["ln2_g"], params["ln2_b"])
    gate = hn @ params["wg"]
    up = hn @ params["wu"]
    mlp = (jax.nn.silu(gate) * up) @ params["wd"]
    return h1 + mlp, k, v


def init_params(key, H, I):
    keys = jax.random.split(key, 8)
    std = 0.02
    return {
        "ln1_g": jnp.ones((1, H), jnp.float32),
        "ln1_b": jnp.zeros((1, H), jnp.float32),
        "wq": std * jax.random.normal(keys[0], (H, H), jnp.float32),
        "bq": jnp.zeros((1, H), jnp.float32),
        "wk": std * jax.random.normal(keys[1], (H, H), jnp.float32),
        "bk": jnp.zeros((1, H), jnp.float32),
        "wv": std * jax.random.normal(keys[2], (H, H), jnp.float32),
        "bv": jnp.zeros((1, H), jnp.float32),
        "wo": std * jax.random.normal(keys[3], (H, H), jnp.float32),
        "bo": jnp.zeros((1, H), jnp.float32),
        "ln2_g": jnp.ones((1, H), jnp.float32),
        "ln2_b": jnp.zeros((1, H), jnp.float32),
        "wg": std * jax.random.normal(keys[4], (H, I), jnp.float32),
        "wu": std * jax.random.normal(keys[5], (H, I), jnp.float32),
        "wd": std * jax.random.normal(keys[6], (I, H), jnp.float32),
    }


if __name__ == "__main__":
    # Small config consistent with the module: hidden=32, heads=4, intermediate=64.
    # (Correctness-only shape: lane-dim 32 / head_dim 8 are below the (8,128)
    # vreg tile, so do NOT benchmark at this size.)
    B, S, H, NH, I = 2, 8, 32, 4, 64
    key = jax.random.PRNGKey(0)
    k_x, k_p = jax.random.split(key)
    x = jax.random.normal(k_x, (B, S, H), jnp.float32)
    params = init_params(k_p, H, I)

    out, aux_loss_dict, (present_k, present_v) = transformer_block(
        x, params, num_heads=NH)
    out = jax.block_until_ready(out)
    present_k = jax.block_until_ready(present_k)
    present_v = jax.block_until_ready(present_v)

    # Reference uses an explicit causal additive mask (the kernel builds it in-core).
    causal = jnp.tril(jnp.ones((S, S), jnp.bool_))
    mask = jnp.where(causal, 0.0, -1e9).astype(jnp.float32)
    ref_out, ref_k, ref_v = reference_block(x, mask, params, num_heads=NH)

    # bf16 matmuls + bf16 K/V + approx-reciprocal softmax => looser tolerance.
    assert jnp.allclose(out, ref_out, atol=2e-2, rtol=2e-2), "hidden_states mismatch"
    assert jnp.allclose(present_k.astype(jnp.float32), ref_k, atol=2e-2, rtol=2e-2), \
        "present K mismatch"
    assert jnp.allclose(present_v.astype(jnp.float32), ref_v, atol=2e-2, rtol=2e-2), \
        "present V mismatch"
    assert aux_loss_dict == {}, "DenseLLM path must return empty aux_loss_dict"

    print("KERNEL_OK")
</pallas_src>

<mosaic_0001>
module attributes {stable_mosaic.version = 11 : i64} {
  func.func @transformer_block_kernel(%arg0: i32, %arg1: i32, %arg2: memref<1x8x32xf32, #tpu.memory_space<vmem>>, %arg3: memref<1x32xf32, #tpu.memory_space<vmem>>, %arg4: memref<1x32xf32, #tpu.memory_space<vmem>>, %arg5: memref<32x32xbf16, #tpu.memory_space<vmem>>, %arg6: memref<1x32xf32, #tpu.memory_space<vmem>>, %arg7: memref<32x32xbf16, #tpu.memory_space<vmem>>, %arg8: memref<1x32xf32, #tpu.memory_space<vmem>>, %arg9: memref<32x32xbf16, #tpu.memory_space<vmem>>, %arg10: memref<1x32xf32, #tpu.memory_space<vmem>>, %arg11: memref<32x32xbf16, #tpu.memory_space<vmem>>, %arg12: memref<1x32xf32, #tpu.memory_space<vmem>>, %arg13: memref<1x32xf32, #tpu.memory_space<vmem>>, %arg14: memref<1x32xf32, #tpu.memory_space<vmem>>, %arg15: memref<32x64xbf16, #tpu.memory_space<vmem>>, %arg16: memref<32x64xbf16, #tpu.memory_space<vmem>>, %arg17: memref<64x32xbf16, #tpu.memory_space<vmem>>, %arg18: memref<1x8x32xf32, #tpu.memory_space<vmem>>, %arg19: memref<1x4x8x8xbf16, #tpu.memory_space<vmem>>, %arg20: memref<1x4x8x8xbf16, #tpu.memory_space<vmem>>, %arg21: memref<8x32xf32, #tpu.memory_space<vmem>>, %arg22: memref<8x32xbf16, #tpu.memory_space<vmem>>, %arg23: memref<8x32xbf16, #tpu.memory_space<vmem>>) attributes {dimension_semantics = [#tpu.dimension_semantics<parallel>, #tpu.dimension_semantics<arbitrary>], iteration_bounds = array<i64: 2, 1>, scalar_prefetch = 0 : i64, scratch_operands = 3 : i64, tpu.core_type = #tpu.core_type<tc>, window_params = [{transform_indices = @transform_0, window_bounds = array<i64: 1, 8, 32>}, {pipeline_mode = #tpu.pipeline_mode<synchronous>, transform_indices = @transform_1, window_bounds = array<i64: 1, 32>}, {pipeline_mode = #tpu.pipeline_mode<synchronous>, transform_indices = @transform_2, window_bounds = array<i64: 1, 32>}, {pipeline_mode = #tpu.pipeline_mode<synchronous>, transform_indices = @transform_3, window_bounds = array<i64: 32, 32>}, {pipeline_mode = #tpu.pipeline_mode<synchronous>, transform_indices = @transform_4, window_bounds = array<i64: 1, 32>}, {pipeline_mode = #tpu.pipeline_mode<synchronous>, transform_indices = @transform_5, window_bounds = array<i64: 32, 32>}, {pipeline_mode = #tpu.pipeline_mode<synchronous>, transform_indices = @transform_6, window_bounds = array<i64: 1, 32>}, {pipeline_mode = #tpu.pipeline_mode<synchronous>, transform_indices = @transform_7, window_bounds = array<i64: 32, 32>}, {pipeline_mode = #tpu.pipeline_mode<synchronous>, transform_indices = @transform_8, window_bounds = array<i64: 1, 32>}, {pipeline_mode = #tpu.pipeline_mode<synchronous>, transform_indices = @transform_9, window_bounds = array<i64: 32, 32>}, {pipeline_mode = #tpu.pipeline_mode<synchronous>, transform_indices = @transform_10, window_bounds = array<i64: 1, 32>}, {pipeline_mode = #tpu.pipeline_mode<synchronous>, transform_indices = @transform_11, window_bounds = array<i64: 1, 32>}, {pipeline_mode = #tpu.pipeline_mode<synchronous>, transform_indices = @transform_12, window_bounds = array<i64: 1, 32>}, {transform_indices = @transform_13, window_bounds = array<i64: 32, 64>}, {transform_indices = @transform_14, window_bounds = array<i64: 32, 64>}, {transform_indices = @transform_15, window_bounds = array<i64: 64, 32>}, {transform_indices = @transform_16, window_bounds = array<i64: 1, 8, 32>}, {transform_indices = @transform_17, window_bounds = array<i64: 1, 4, 8, 8>}, {transform_indices = @transform_18, window_bounds = array<i64: 1, 4, 8, 8>}]} {
    %c0_i32 = arith.constant 0 : i32
    %0 = arith.cmpi eq, %arg1, %c0_i32 : i32
    %1 = arith.extui %0 : i1 to i32
    %c0_i32_0 = arith.constant 0 : i32
    %2 = arith.cmpi ne, %1, %c0_i32_0 : i32
    scf.if %2 {
      %c0_15 = arith.constant 0 : index
      %c0_16 = arith.constant 0 : index
      %c0_17 = arith.constant 0 : index
      %24 = vector.load %arg2[%c0_15, %c0_16, %c0_17] : memref<1x8x32xf32, #tpu.memory_space<vmem>>, vector<1x8x32xf32>
      %25 = vector.shape_cast %24 : vector<1x8x32xf32> to vector<8x32xf32>
      %cst_18 = arith.constant dense<0.000000e+00> : vector<8xf32>
      %26 = vector.multi_reduction <add>, %25, %cst_18 [1] : vector<8x32xf32> to vector<8xf32>
      %27 = vector.shape_cast %26 : vector<8xf32> to vector<8x1xf32>
      %cst_19 = arith.constant 3.200000e+01 : f32
      %28 = vector.broadcast %cst_19 : f32 to vector<8x1xf32>
      %29 = arith.divf %27, %28 : vector<8x1xf32>
      %30 = vector.broadcast %29 : vector<8x1xf32> to vector<8x32xf32>
      %31 = arith.subf %25, %30 : vector<8x32xf32>
      %32 = arith.mulf %31, %31 : vector<8x32xf32>
      %cst_20 = arith.constant dense<0.000000e+00> : vector<8xf32>
      %33 = vector.multi_reduction <add>, %32, %cst_20 [1] : vector<8x32xf32> to vector<8xf32>
      %34 = vector.shape_cast %33 : vector<8xf32> to vector<8x1xf32>
      %cst_21 = arith.constant 3.200000e+01 : f32
      %35 = vector.broadcast %cst_21 : f32 to vector<8x1xf32>
      %36 = arith.divf %34, %35 : vector<8x1xf32>
      %37 = vector.broadcast %29 : vector<8x1xf32> to vector<8x32xf32>
      %38 = arith.subf %25, %37 : vector<8x32xf32>
      %cst_22 = arith.constant 9.99999974E-6 : f32
      %39 = vector.broadcast %cst_22 : f32 to vector<8x1xf32>
      %40 = arith.addf %36, %39 : vector<8x1xf32>
      %41 = math.rsqrt %40 : vector<8x1xf32>
      %42 = vector.broadcast %41 : vector<8x1xf32> to vector<8x32xf32>
      %43 = arith.mulf %38, %42 : vector<8x32xf32>
      %c0_23 = arith.constant 0 : index
      %c0_24 = arith.constant 0 : index
      %44 = vector.load %arg3[%c0_23, %c0_24] : memref<1x32xf32, #tpu.memory_space<vmem>>, vector<1x32xf32>
      %45 = vector.broadcast %44 : vector<1x32xf32> to vector<8x32xf32>
      %46 = arith.mulf %43, %45 : vector<8x32xf32>
      %c0_25 = arith.constant 0 : index
      %c0_26 = arith.constant 0 : index
      %47 = vector.load %arg4[%c0_25, %c0_26] : memref<1x32xf32, #tpu.memory_space<vmem>>, vector<1x32xf32>
      %48 = vector.broadcast %47 : vector<1x32xf32> to vector<8x32xf32>
      %49 = arith.addf %46, %48 : vector<8x32xf32>
      %50 = arith.truncf %49 : vector<8x32xf32> to vector<8x32xbf16>
      %c0_27 = arith.constant 0 : index
      %c0_28 = arith.constant 0 : index
      %51 = vector.load %arg5[%c0_27, %c0_28] : memref<32x32xbf16, #tpu.memory_space<vmem>>, vector<32x32xbf16>
      %cst_29 = arith.constant dense<0.000000e+00> : vector<8x32xf32>
      %52 = tpu.matmul %50, %51, %cst_29 {dimension_numbers = #tpu.dot_dimension_numbers<[1], [0], [0], [1], [0, 0, 1, 1], [], []>} : vector<8x32xbf16>, vector<32x32xbf16>, vector<8x32xf32> -> vector<8x32xf32>
      %c0_30 = arith.constant 0 : index
      %c0_31 = arith.constant 0 : index
      %53 = vector.load %arg6[%c0_30, %c0_31] : memref<1x32xf32, #tpu.memory_space<vmem>>, vector<1x32xf32>
      %54 = vector.broadcast %53 : vector<1x32xf32> to vector<8x32xf32>
      %55 = arith.addf %52, %54 : vector<8x32xf32>
      %c0_32 = arith.constant 0 : index
      %c0_33 = arith.constant 0 : index
      %56 = vector.load %arg7[%c0_32, %c0_33] : memref<32x32xbf16, #tpu.memory_space<vmem>>, vector<32x32xbf16>
      %cst_34 = arith.constant dense<0.000000e+00> : vector<8x32xf32>
      %57 = tpu.matmul %50, %56, %cst_34 {dimension_numbers = #tpu.dot_dimension_numbers<[1], [0], [0], [1], [0, 0, 1, 1], [], []>} : vector<8x32xbf16>, vector<32x32xbf16>, vector<8x32xf32> -> vector<8x32xf32>
      %c0_35 = arith.constant 0 : index
      %c0_36 = arith.constant 0 : index
      %58 = vector.load %arg8[%c0_35, %c0_36] : memref<1x32xf32, #tpu.memory_space<vmem>>, vector<1x32xf32>
      %59 = vector.broadcast %58 : vector<1x32xf32> to vector<8x32xf32>
      %60 = arith.addf %57, %59 : vector<8x32xf32>
      %c0_37 = arith.constant 0 : index
      %c0_38 = arith.constant 0 : index
      %61 = vector.load %arg9[%c0_37, %c0_38] : memref<32x32xbf16, #tpu.memory_space<vmem>>, vector<32x32xbf16>
      %cst_39 = arith.constant dense<0.000000e+00> : vector<8x32xf32>
      %62 = tpu.matmul %50, %61, %cst_39 {dimension_numbers = #tpu.dot_dimension_numbers<[1], [0], [0], [1], [0, 0, 1, 1], [], []>} : vector<8x32xbf16>, vector<32x32xbf16>, vector<8x32xf32> -> vector<8x32xf32>
      %c0_40 = arith.constant 0 : index
      %c0_41 = arith.constant 0 : index
      %63 = vector.load %arg10[%c0_40, %c0_41] : memref<1x32xf32, #tpu.memory_space<vmem>>, vector<1x32xf32>
      %64 = vector.broadcast %63 : vector<1x32xf32> to vector<8x32xf32>
      %65 = arith.addf %62, %64 : vector<8x32xf32>
      %cst_42 = arith.constant 0.353553385 : f32
      %66 = vector.broadcast %cst_42 : f32 to vector<8x32xf32>
      %67 = arith.mulf %55, %66 : vector<8x32xf32>
      %68 = arith.truncf %67 : vector<8x32xf32> to vector<8x32xbf16>
      %69 = arith.truncf %60 : vector<8x32xf32> to vector<8x32xbf16>
      %70 = arith.truncf %65 : vector<8x32xf32> to vector<8x32xbf16>
      %71 = tpu.iota {dimensions = array<i32: 0>} : vector<8x8xi32>
      %72 = tpu.iota {dimensions = array<i32: 1>} : vector<8x8xi32>
      %73 = arith.cmpi sle, %72, %71 : vector<8x8xi32>
      %cst_43 = arith.constant 0.000000e+00 : f32
      %cst_44 = arith.constant -1.000000e+09 : f32
      %74 = vector.broadcast %cst_43 : f32 to vector<8x8xf32>
      %75 = vector.broadcast %cst_44 : f32 to vector<8x8xf32>
      %76 = arith.select %73, %74, %75 : vector<8x8xi1>, vector<8x8xf32>
      %77 = vector.extract_strided_slice %69 {offsets = [0, 0], sizes = [8, 8], strides = [1, 1]} : vector<8x32xbf16> to vector<8x8xbf16>
      %c0_45 = arith.constant 0 : index
      %c0_46 = arith.constant 0 : index
      %c0_47 = arith.constant 0 : index
      %c0_48 = arith.constant 0 : index
      %78 = vector.load %arg19[%c0_45, %c0_46, %c0_47, %c0_48] : memref<1x4x8x8xbf16, #tpu.memory_space<vmem>>, vector<1x1x8x8xbf16>
      %79 = vector.shape_cast %78 : vector<1x1x8x8xbf16> to vector<8x8xbf16>
      %80 = vector.shape_cast %77 : vector<8x8xbf16> to vector<1x1x8x8xbf16>
      tpu.vector_store %arg19[%c0_45, %c0_46, %c0_47, %c0_48], %80 {strides = array<i32>} : memref<1x4x8x8xbf16, #tpu.memory_space<vmem>>, vector<1x1x8x8xbf16>,
      %81 = vector.extract_strided_slice %70 {offsets = [0, 0], sizes = [8, 8], strides = [1, 1]} : vector<8x32xbf16> to vector<8x8xbf16>
      %c0_49 = arith.constant 0 : index
      %c0_50 = arith.constant 0 : index
      %c0_51 = arith.constant 0 : index
      %c0_52 = arith.constant 0 : index
      %82 = vector.load %arg20[%c0_49, %c0_50, %c0_51, %c0_52] : memref<1x4x8x8xbf16, #tpu.memory_space<vmem>>, vector<1x1x8x8xbf16>
      %83 = vector.shape_cast %82 : vector<1x1x8x8xbf16> to vector<8x8xbf16>
      %84 = vector.shape_cast %81 : vector<8x8xbf16> to vector<1x1x8x8xbf16>
      tpu.vector_store %arg20[%c0_49, %c0_50, %c0_51, %c0_52], %84 {strides = array<i32>} : memref<1x4x8x8xbf16, #tpu.memory_space<vmem>>, vector<1x1x8x8xbf16>,
      %85 = vector.extract_strided_slice %68 {offsets = [0, 0], sizes = [8, 8], strides = [1, 1]} : vector<8x32xbf16> to vector<8x8xbf16>
      %86 = vector.extract_strided_slice %69 {offsets = [0, 0], sizes = [8, 8], strides = [1, 1]} : vector<8x32xbf16> to vector<8x8xbf16>
      %cst_53 = arith.constant dense<0.000000e+00> : vector<8x8xf32>
      %87 = tpu.matmul %85, %86, %cst_53 {dimension_numbers = #tpu.dot_dimension_numbers<[1], [1], [0], [0], [0, 0, 1, 0], [], []>} : vector<8x8xbf16>, vector<8x8xbf16>, vector<8x8xf32> -> vector<8x8xf32>
      %88 = arith.addf %87, %76 : vector<8x8xf32>
      %cst_54 = arith.constant dense<0xFF800000> : vector<8xf32>
      %89 = vector.multi_reduction <maximumf>, %88, %cst_54 [1] : vector<8x8xf32> to vector<8xf32>
      %90 = vector.shape_cast %89 : vector<8xf32> to vector<8x1xf32>
      %91 = vector.broadcast %90 : vector<8x1xf32> to vector<8x8xf32>
      %92 = arith.subf %88, %91 : vector<8x8xf32>
      %93 = math.exp %92 : vector<8x8xf32>
      %cst_55 = arith.constant dense<0.000000e+00> : vector<8xf32>
      %94 = vector.multi_reduction <add>, %93, %cst_55 [1] : vector<8x8xf32> to vector<8xf32>
      %95 = vector.shape_cast %94 : vector<8xf32> to vector<8x1xf32>
      %96 = tpu.reciprocal %95 {approx = true} : vector<8x1xf32> -> vector<8x1xf32>
      %97 = vector.broadcast %96 : vector<8x1xf32> to vector<8x8xf32>
      %98 = arith.mulf %93, %97 : vector<8x8xf32>
      %99 = arith.truncf %98 : vector<8x8xf32> to vector<8x8xbf16>
      %100 = vector.extract_strided_slice %70 {offsets = [0, 0], sizes = [8, 8], strides = [1, 1]} : vector<8x32xbf16> to vector<8x8xbf16>
      %cst_56 = arith.constant dense<0.000000e+00> : vector<8x8xf32>
      %101 = tpu.matmul %99, %100, %cst_56 {dimension_numbers = #tpu.dot_dimension_numbers<[1], [0], [0], [1], [0, 0, 1, 1], [], []>} : vector<8x8xbf16>, vector<8x8xbf16>, vector<8x8xf32> -> vector<8x8xf32>
      %102 = arith.truncf %101 : vector<8x8xf32> to vector<8x8xbf16>
      %c0_57 = arith.constant 0 : index
      %c0_58 = arith.constant 0 : index
      %103 = vector.load %arg23[%c0_57, %c0_58] : memref<8x32xbf16, #tpu.memory_space<vmem>>, vector<8x8xbf16>
      tpu.vector_store %arg23[%c0_57, %c0_58], %102 {strides = array<i32>} : memref<8x32xbf16, #tpu.memory_space<vmem>>, vector<8x8xbf16>,
      %104 = vector.extract_strided_slice %69 {offsets = [0, 8], sizes = [8, 8], strides = [1, 1]} : vector<8x32xbf16> to vector<8x8xbf16>
      %c0_59 = arith.constant 0 : index
      %c1 = arith.constant 1 : index
      %c0_60 = arith.constant 0 : index
      %c0_61 = arith.constant 0 : index
      %105 = vector.load %arg19[%c0_59, %c1, %c0_60, %c0_61] : memref<1x4x8x8xbf16, #tpu.memory_space<vmem>>, vector<1x1x8x8xbf16>
      %106 = vector.shape_cast %105 : vector<1x1x8x8xbf16> to vector<8x8xbf16>
      %107 = vector.shape_cast %104 : vector<8x8xbf16> to vector<1x1x8x8xbf16>
      tpu.vector_store %arg19[%c0_59, %c1, %c0_60, %c0_61], %107 {strides = array<i32>} : memref<1x4x8x8xbf16, #tpu.memory_space<vmem>>, vector<1x1x8x8xbf16>,
      %108 = vector.extract_strided_slice %70 {offsets = [0, 8], sizes = [8, 8], strides = [1, 1]} : vector<8x32xbf16> to vector<8x8xbf16>
      %c0_62 = arith.constant 0 : index
      %c1_63 = arith.constant 1 : index
      %c0_64 = arith.constant 0 : index
      %c0_65 = arith.constant 0 : index
      %109 = vector.load %arg20[%c0_62, %c1_63, %c0_64, %c0_65] : memref<1x4x8x8xbf16, #tpu.memory_space<vmem>>, vector<1x1x8x8xbf16>
      %110 = vector.shape_cast %109 : vector<1x1x8x8xbf16> to vector<8x8xbf16>
      %111 = vector.shape_cast %108 : vector<8x8xbf16> to vector<1x1x8x8xbf16>
      tpu.vector_store %arg20[%c0_62, %c1_63, %c0_64, %c0_65], %111 {strides = array<i32>} : memref<1x4x8x8xbf16, #tpu.memory_space<vmem>>, vector<1x1x8x8xbf16>,
      %112 = vector.extract_strided_slice %68 {offsets = [0, 8], sizes = [8, 8], strides = [1, 1]} : vector<8x32xbf16> to vector<8x8xbf16>
      %113 = vector.extract_strided_slice %69 {offsets = [0, 8], sizes = [8, 8], strides = [1, 1]} : vector<8x32xbf16> to vector<8x8xbf16>
      %cst_66 = arith.constant dense<0.000000e+00> : vector<8x8xf32>
      %114 = tpu.matmul %112, %113, %cst_66 {dimension_numbers = #tpu.dot_dimension_numbers<[1], [1], [0], [0], [0, 0, 1, 0], [], []>} : vector<8x8xbf16>, vector<8x8xbf16>, vector<8x8xf32> -> vector<8x8xf32>
      %115 = arith.addf %114, %76 : vector<8x8xf32>
      %cst_67 = arith.constant dense<0xFF800000> : vector<8xf32>
      %116 = vector.multi_reduction <maximumf>, %115, %cst_67 [1] : vector<8x8xf32> to vector<8xf32>
      %117 = vector.shape_cast %116 : vector<8xf32> to vector<8x1xf32>
      %118 = vector.broadcast %117 : vector<8x1xf32> to vector<8x8xf32>
      %119 = arith.subf %115, %118 : vector<8x8xf32>
      %120 = math.exp %119 : vector<8x8xf32>
      %cst_68 = arith.constant dense<0.000000e+00> : vector<8xf32>
      %121 = vector.multi_reduction <add>, %120, %cst_68 [1] : vector<8x8xf32> to vector<8xf32>
      %122 = vector.shape_cast %121 : vector<8xf32> to vector<8x1xf32>
      %123 = tpu.reciprocal %122 {approx = true} : vector<8x1xf32> -> vector<8x1xf32>
      %124 = vector.broadcast %123 : vector<8x1xf32> to vector<8x8xf32>
      %125 = arith.mulf %120, %124 : vector<8x8xf32>
      %126 = arith.truncf %125 : vector<8x8xf32> to vector<8x8xbf16>
      %127 = vector.extract_strided_slice %70 {offsets = [0, 8], sizes = [8, 8], strides = [1, 1]} : vector<8x32xbf16> to vector<8x8xbf16>
      %cst_69 = arith.constant dense<0.000000e+00> : vector<8x8xf32>
      %128 = tpu.matmul %126, %127, %cst_69 {dimension_numbers = #tpu.dot_dimension_numbers<[1], [0], [0], [1], [0, 0, 1, 1], [], []>} : vector<8x8xbf16>, vector<8x8xbf16>, vector<8x8xf32> -> vector<8x8xf32>
      %129 = arith.truncf %128 : vector<8x8xf32> to vector<8x8xbf16>
      %c0_70 = arith.constant 0 : index
      %c8 = arith.constant 8 : index
      %130 = vector.load %arg23[%c0_70, %c8] : memref<8x32xbf16, #tpu.memory_space<vmem>>, vector<8x8xbf16>
      tpu.vector_store %arg23[%c0_70, %c8], %129 {strides = array<i32>} : memref<8x32xbf16, #tpu.memory_space<vmem>>, vector<8x8xbf16>,
      %131 = vector.extract_strided_slice %69 {offsets = [0, 16], sizes = [8, 8], strides = [1, 1]} : vector<8x32xbf16> to vector<8x8xbf16>
      %c0_71 = arith.constant 0 : index
      %c2 = arith.constant 2 : index
      %c0_72 = arith.constant 0 : index
      %c0_73 = arith.constant 0 : index
      %132 = vector.load %arg19[%c0_71, %c2, %c0_72, %c0_73] : memref<1x4x8x8xbf16, #tpu.memory_space<vmem>>, vector<1x1x8x8xbf16>
      %133 = vector.shape_cast %132 : vector<1x1x8x8xbf16> to vector<8x8xbf16>
      %134 = vector.shape_cast %131 : vector<8x8xbf16> to vector<1x1x8x8xbf16>
      tpu.vector_store %arg19[%c0_71, %c2, %c0_72, %c0_73], %134 {strides = array<i32>} : memref<1x4x8x8xbf16, #tpu.memory_space<vmem>>, vector<1x1x8x8xbf16>,
      %135 = vector.extract_strided_slice %70 {offsets = [0, 16], sizes = [8, 8], strides = [1, 1]} : vector<8x32xbf16> to vector<8x8xbf16>
      %c0_74 = arith.constant 0 : index
      %c2_75 = arith.constant 2 : index
      %c0_76 = arith.constant 0 : index
      %c0_77 = arith.constant 0 : index
      %136 = vector.load %arg20[%c0_74, %c2_75, %c0_76, %c0_77] : memref<1x4x8x8xbf16, #tpu.memory_space<vmem>>, vector<1x1x8x8xbf16>
      %137 = vector.shape_cast %136 : vector<1x1x8x8xbf16> to vector<8x8xbf16>
      %138 = vector.shape_cast %135 : vector<8x8xbf16> to vector<1x1x8x8xbf16>
      tpu.vector_store %arg20[%c0_74, %c2_75, %c0_76, %c0_77], %138 {strides = array<i32>} : memref<1x4x8x8xbf16, #tpu.memory_space<vmem>>, vector<1x1x8x8xbf16>,
      %139 = vector.extract_strided_slice %68 {offsets = [0, 16], sizes = [8, 8], strides = [1, 1]} : vector<8x32xbf16> to vector<8x8xbf16>
      %140 = vector.extract_strided_slice %69 {offsets = [0, 16], sizes = [8, 8], strides = [1, 1]} : vector<8x32xbf16> to vector<8x8xbf16>
      %cst_78 = arith.constant dense<0.000000e+00> : vector<8x8xf32>
      %141 = tpu.matmul %139, %140, %cst_78 {dimension_numbers = #tpu.dot_dimension_numbers<[1], [1], [0], [0], [0, 0, 1, 0], [], []>} : vector<8x8xbf16>, vector<8x8xbf16>, vector<8x8xf32> -> vector<8x8xf32>
      %142 = arith.addf %141, %76 : vector<8x8xf32>
      %cst_79 = arith.constant dense<0xFF800000> : vector<8xf32>
      %143 = vector.multi_reduction <maximumf>, %142, %cst_79 [1] : vector<8x8xf32> to vector<8xf32>
      %144 = vector.shape_cast %143 : vector<8xf32> to vector<8x1xf32>
      %145 = vector.broadcast %144 : vector<8x1xf32> to vector<8x8xf32>
      %146 = arith.subf %142, %145 : vector<8x8xf32>
      %147 = math.exp %146 : vector<8x8xf32>
      %cst_80 = arith.constant dense<0.000000e+00> : vector<8xf32>
      %148 = vector.multi_reduction <add>, %147, %cst_80 [1] : vector<8x8xf32> to vector<8xf32>
      %149 = vector.shape_cast %148 : vector<8xf32> to vector<8x1xf32>
      %150 = tpu.reciprocal %149 {approx = true} : vector<8x1xf32> -> vector<8x1xf32>
      %151 = vector.broadcast %150 : vector<8x1xf32> to vector<8x8xf32>
      %152 = arith.mulf %147, %151 : vector<8x8xf32>
      %153 = arith.truncf %152 : vector<8x8xf32> to vector<8x8xbf16>
      %154 = vector.extract_strided_slice %70 {offsets = [0, 16], sizes = [8, 8], strides = [1, 1]} : vector<8x32xbf16> to vector<8x8xbf16>
      %cst_81 = arith.constant dense<0.000000e+00> : vector<8x8xf32>
      %155 = tpu.matmul %153, %154, %cst_81 {dimension_numbers = #tpu.dot_dimension_numbers<[1], [0], [0], [1], [0, 0, 1, 1], [], []>} : vector<8x8xbf16>, vector<8x8xbf16>, vector<8x8xf32> -> vector<8x8xf32>
      %156 = arith.truncf %155 : vector<8x8xf32> to vector<8x8xbf16>
      %c0_82 = arith.constant 0 : index
      %c16 = arith.constant 16 : index
      %157 = vector.load %arg23[%c0_82, %c16] : memref<8x32xbf16, #tpu.memory_space<vmem>>, vector<8x8xbf16>
      tpu.vector_store %arg23[%c0_82, %c16], %156 {strides = array<i32>} : memref<8x32xbf16, #tpu.memory_space<vmem>>, vector<8x8xbf16>,
      %158 = vector.extract_strided_slice %69 {offsets = [0, 24], sizes = [8, 8], strides = [1, 1]} : vector<8x32xbf16> to vector<8x8xbf16>
      %c0_83 = arith.constant 0 : index
      %c3 = arith.constant 3 : index
      %c0_84 = arith.constant 0 : index
      %c0_85 = arith.constant 0 : index
      %159 = vector.load %arg19[%c0_83, %c3, %c0_84, %c0_85] : memref<1x4x8x8xbf16, #tpu.memory_space<vmem>>, vector<1x1x8x8xbf16>
      %160 = vector.shape_cast %159 : vector<1x1x8x8xbf16> to vector<8x8xbf16>
      %161 = vector.shape_cast %158 : vector<8x8xbf16> to vector<1x1x8x8xbf16>
      tpu.vector_store %arg19[%c0_83, %c3, %c0_84, %c0_85], %161 {strides = array<i32>} : memref<1x4x8x8xbf16, #tpu.memory_space<vmem>>, vector<1x1x8x8xbf16>,
      %162 = vector.extract_strided_slice %70 {offsets = [0, 24], sizes = [8, 8], strides = [1, 1]} : vector<8x32xbf16> to vector<8x8xbf16>
      %c0_86 = arith.constant 0 : index
      %c3_87 = arith.constant 3 : index
      %c0_88 = arith.constant 0 : index
      %c0_89 = arith.constant 0 : index
      %163 = vector.load %arg20[%c0_86, %c3_87, %c0_88, %c0_89] : memref<1x4x8x8xbf16, #tpu.memory_space<vmem>>, vector<1x1x8x8xbf16>
      %164 = vector.shape_cast %163 : vector<1x1x8x8xbf16> to vector<8x8xbf16>
      %165 = vector.shape_cast %162 : vector<8x8xbf16> to vector<1x1x8x8xbf16>
      tpu.vector_store %arg20[%c0_86, %c3_87, %c0_88, %c0_89], %165 {strides = array<i32>} : memref<1x4x8x8xbf16, #tpu.memory_space<vmem>>, vector<1x1x8x8xbf16>,
      %166 = vector.extract_strided_slice %68 {offsets = [0, 24], sizes = [8, 8], strides = [1, 1]} : vector<8x32xbf16> to vector<8x8xbf16>
      %167 = vector.extract_strided_slice %69 {offsets = [0, 24], sizes = [8, 8], strides = [1, 1]} : vector<8x32xbf16> to vector<8x8xbf16>
      %cst_90 = arith.constant dense<0.000000e+00> : vector<8x8xf32>
      %168 = tpu.matmul %166, %167, %cst_90 {dimension_numbers = #tpu.dot_dimension_numbers<[1], [1], [0], [0], [0, 0, 1, 0], [], []>} : vector<8x8xbf16>, vector<8x8xbf16>, vector<8x8xf32> -> vector<8x8xf32>
      %169 = arith.addf %168, %76 : vector<8x8xf32>
      %cst_91 = arith.constant dense<0xFF800000> : vector<8xf32>
      %170 = vector.multi_reduction <maximumf>, %169, %cst_91 [1] : vector<8x8xf32> to vector<8xf32>
      %171 = vector.shape_cast %170 : vector<8xf32> to vector<8x1xf32>
      %172 = vector.broadcast %171 : vector<8x1xf32> to vector<8x8xf32>
      %173 = arith.subf %169, %172 : vector<8x8xf32>
      %174 = math.exp %173 : vector<8x8xf32>
      %cst_92 = arith.constant dense<0.000000e+00> : vector<8xf32>
      %175 = vector.multi_reduction <add>, %174, %cst_92 [1] : vector<8x8xf32> to vector<8xf32>
      %176 = vector.shape_cast %175 : vector<8xf32> to vector<8x1xf32>
      %177 = tpu.reciprocal %176 {approx = true} : vector<8x1xf32> -> vector<8x1xf32>
      %178 = vector.broadcast %177 : vector<8x1xf32> to vector<8x8xf32>
      %179 = arith.mulf %174, %178 : vector<8x8xf32>
      %180 = arith.truncf %179 : vector<8x8xf32> to vector<8x8xbf16>
      %181 = vector.extract_strided_slice %70 {offsets = [0, 24], sizes = [8, 8], strides = [1, 1]} : vector<8x32xbf16> to vector<8x8xbf16>
      %cst_93 = arith.constant dense<0.000000e+00> : vector<8x8xf32>
      %182 = tpu.matmul %180, %181, %cst_93 {dimension_numbers = #tpu.dot_dimension_numbers<[1], [0], [0], [1], [0, 0, 1, 1], [], []>} : vector<8x8xbf16>, vector<8x8xbf16>, vector<8x8xf32> -> vector<8x8xf32>
      %183 = arith.truncf %182 : vector<8x8xf32> to vector<8x8xbf16>
      %c0_94 = arith.constant 0 : index
      %c24 = arith.constant 24 : index
      %184 = vector.load %arg23[%c0_94, %c24] : memref<8x32xbf16, #tpu.memory_space<vmem>>, vector<8x8xbf16>
      tpu.vector_store %arg23[%c0_94, %c24], %183 {strides = array<i32>} : memref<8x32xbf16, #tpu.memory_space<vmem>>, vector<8x8xbf16>,
      %c0_95 = arith.constant 0 : index
      %c0_96 = arith.constant 0 : index
      %185 = vector.load %arg23[%c0_95, %c0_96] : memref<8x32xbf16, #tpu.memory_space<vmem>>, vector<8x32xbf16>
      %c0_97 = arith.constant 0 : index
      %c0_98 = arith.constant 0 : index
      %186 = vector.load %arg11[%c0_97, %c0_98] : memref<32x32xbf16, #tpu.memory_space<vmem>>, vector<32x32xbf16>
      %cst_99 = arith.constant dense<0.000000e+00> : vector<8x32xf32>
      %187 = tpu.matmul %185, %186, %cst_99 {dimension_numbers = #tpu.dot_dimension_numbers<[1], [0], [0], [1], [0, 0, 1, 1], [], []>} : vector<8x32xbf16>, vector<32x32xbf16>, vector<8x32xf32> -> vector<8x32xf32>
      %c0_100 = arith.constant 0 : index
      %c0_101 = arith.constant 0 : index
      %188 = vector.load %arg12[%c0_100, %c0_101] : memref<1x32xf32, #tpu.memory_space<vmem>>, vector<1x32xf32>
      %189 = vector.broadcast %188 : vector<1x32xf32> to vector<8x32xf32>
      %190 = arith.addf %187, %189 : vector<8x32xf32>
      %191 = arith.addf %25, %190 : vector<8x32xf32>
      %c0_102 = arith.constant 0 : index
      %c0_103 = arith.constant 0 : index
      %192 = vector.load %arg21[%c0_102, %c0_103] : memref<8x32xf32, #tpu.memory_space<vmem>>, vector<8x32xf32>
      tpu.vector_store %arg21[%c0_102, %c0_103], %191 {strides = array<i32>} : memref<8x32xf32, #tpu.memory_space<vmem>>, vector<8x32xf32>,
      %cst_104 = arith.constant dense<0.000000e+00> : vector<8xf32>
      %193 = vector.multi_reduction <add>, %191, %cst_104 [1] : vector<8x32xf32> to vector<8xf32>
      %194 = vector.shape_cast %193 : vector<8xf32> to vector<8x1xf32>
      %cst_105 = arith.constant 3.200000e+01 : f32
      %195 = vector.broadcast %cst_105 : f32 to vector<8x1xf32>
      %196 = arith.divf %194, %195 : vector<8x1xf32>
      %197 = vector.broadcast %196 : vector<8x1xf32> to vector<8x32xf32>
      %198 = arith.subf %191, %197 : vector<8x32xf32>
      %199 = arith.mulf %198, %198 : vector<8x32xf32>
      %cst_106 = arith.constant dense<0.000000e+00> : vector<8xf32>
      %200 = vector.multi_reduction <add>, %199, %cst_106 [1] : vector<8x32xf32> to vector<8xf32>
      %201 = vector.shape_cast %200 : vector<8xf32> to vector<8x1xf32>
      %cst_107 = arith.constant 3.200000e+01 : f32
      %202 = vector.broadcast %cst_107 : f32 to vector<8x1xf32>
      %203 = arith.divf %201, %202 : vector<8x1xf32>
      %204 = vector.broadcast %196 : vector<8x1xf32> to vector<8x32xf32>
      %205 = arith.subf %191, %204 : vector<8x32xf32>
      %cst_108 = arith.constant 9.99999974E-6 : f32
      %206 = vector.broadcast %cst_108 : f32 to vector<8x1xf32>
      %207 = arith.addf %203, %206 : vector<8x1xf32>
      %208 = math.rsqrt %207 : vector<8x1xf32>
      %209 = vector.broadcast %208 : vector<8x1xf32> to vector<8x32xf32>
      %210 = arith.mulf %205, %209 : vector<8x32xf32>
      %c0_109 = arith.constant 0 : index
      %c0_110 = arith.constant 0 : index
      %211 = vector.load %arg13[%c0_109, %c0_110] : memref<1x32xf32, #tpu.memory_space<vmem>>, vector<1x32xf32>
      %212 = vector.broadcast %211 : vector<1x32xf32> to vector<8x32xf32>
      %213 = arith.mulf %210, %212 : vector<8x32xf32>
      %c0_111 = arith.constant 0 : index
      %c0_112 = arith.constant 0 : index
      %214 = vector.load %arg14[%c0_111, %c0_112] : memref<1x32xf32, #tpu.memory_space<vmem>>, vector<1x32xf32>
      %215 = vector.broadcast %214 : vector<1x32xf32> to vector<8x32xf32>
      %216 = arith.addf %213, %215 : vector<8x32xf32>
      %217 = arith.truncf %216 : vector<8x32xf32> to vector<8x32xbf16>
      %c0_113 = arith.constant 0 : index
      %c0_114 = arith.constant 0 : index
      %218 = vector.load %arg22[%c0_113, %c0_114] : memref<8x32xbf16, #tpu.memory_space<vmem>>, vector<8x32xbf16>
      tpu.vector_store %arg22[%c0_113, %c0_114], %217 {strides = array<i32>} : memref<8x32xbf16, #tpu.memory_space<vmem>>, vector<8x32xbf16>,
    } else {
    }
    %c0 = arith.constant 0 : index
    %c0_1 = arith.constant 0 : index
    %3 = vector.load %arg22[%c0, %c0_1] : memref<8x32xbf16, #tpu.memory_space<vmem>>, vector<8x32xbf16>
    %c0_2 = arith.constant 0 : index
    %c0_3 = arith.constant 0 : index
    %4 = vector.load %arg15[%c0_2, %c0_3] : memref<32x64xbf16, #tpu.memory_space<vmem>>, vector<32x64xbf16>
    %cst = arith.constant dense<0.000000e+00> : vector<8x64xf32>
    %5 = tpu.matmul %3, %4, %cst {dimension_numbers = #tpu.dot_dimension_numbers<[1], [0], [0], [1], [0, 0, 1, 1], [], []>} : vector<8x32xbf16>, vector<32x64xbf16>, vector<8x64xf32> -> vector<8x64xf32>
    %c0_4 = arith.constant 0 : index
    %c0_5 = arith.constant 0 : index
    %6 = vector.load %arg16[%c0_4, %c0_5] : memref<32x64xbf16, #tpu.memory_space<vmem>>, vector<32x64xbf16>
    %cst_6 = arith.constant dense<0.000000e+00> : vector<8x64xf32>
    %7 = tpu.matmul %3, %6, %cst_6 {dimension_numbers = #tpu.dot_dimension_numbers<[1], [0], [0], [1], [0, 0, 1, 1], [], []>} : vector<8x32xbf16>, vector<32x64xbf16>, vector<8x64xf32> -> vector<8x64xf32>
    %8 = arith.negf %5 : vector<8x64xf32>
    %9 = math.exp %8 : vector<8x64xf32>
    %cst_7 = arith.constant 1.000000e+00 : f32
    %10 = vector.broadcast %cst_7 : f32 to vector<8x64xf32>
    %11 = arith.addf %10, %9 : vector<8x64xf32>
    %12 = arith.divf %10, %11 : vector<8x64xf32>
    %13 = arith.mulf %5, %12 : vector<8x64xf32>
    %14 = arith.mulf %13, %7 : vector<8x64xf32>
    %15 = arith.truncf %14 : vector<8x64xf32> to vector<8x64xbf16>
    %c0_8 = arith.constant 0 : index
    %c0_9 = arith.constant 0 : index
    %16 = vector.load %arg17[%c0_8, %c0_9] : memref<64x32xbf16, #tpu.memory_space<vmem>>, vector<64x32xbf16>
    %cst_10 = arith.constant dense<0.000000e+00> : vector<8x32xf32>
    %17 = tpu.matmul %15, %16, %cst_10 {dimension_numbers = #tpu.dot_dimension_numbers<[1], [0], [0], [1], [0, 0, 1, 1], [], []>} : vector<8x64xbf16>, vector<64x32xbf16>, vector<8x32xf32> -> vector<8x32xf32>
    %c0_i32_11 = arith.constant 0 : i32
    %18 = arith.cmpi eq, %arg1, %c0_i32_11 : i32
    %19 = arith.extui %18 : i1 to i32
    %c0_i32_12 = arith.constant 0 : i32
    %20 = arith.cmpi ne, %19, %c0_i32_12 : i32
    scf.if %20 {
      %c0_15 = arith.constant 0 : index
      %c0_16 = arith.constant 0 : index
      %24 = vector.load %arg21[%c0_15, %c0_16] : memref<8x32xf32, #tpu.memory_space<vmem>>, vector<8x32xf32>
      %25 = arith.addf %24, %17 : vector<8x32xf32>
      %c0_17 = arith.constant 0 : index
      %c0_18 = arith.constant 0 : index
      %c0_19 = arith.constant 0 : index
      %26 = vector.load %arg18[%c0_17, %c0_18, %c0_19] : memref<1x8x32xf32, #tpu.memory_space<vmem>>, vector<1x8x32xf32>
      %27 = vector.shape_cast %26 : vector<1x8x32xf32> to vector<8x32xf32>
      %28 = vector.shape_cast %25 : vector<8x32xf32> to vector<1x8x32xf32>
      tpu.vector_store %arg18[%c0_17, %c0_18, %c0_19], %28 {strides = array<i32>} : memref<1x8x32xf32, #tpu.memory_space<vmem>>, vector<1x8x32xf32>,
    } else {
    }
    %c0_i32_13 = arith.constant 0 : i32
    %21 = arith.cmpi sgt, %arg1, %c0_i32_13 : i32
    %22 = arith.extui %21 : i1 to i32
    %c0_i32_14 = arith.constant 0 : i32
    %23 = arith.cmpi ne, %22, %c0_i32_14 : i32
    scf.if %23 {
      %c0_15 = arith.constant 0 : index
      %c0_16 = arith.constant 0 : index
      %c0_17 = arith.constant 0 : index
      %24 = vector.load %arg18[%c0_15, %c0_16, %c0_17] : memref<1x8x32xf32, #tpu.memory_space<vmem>>, vector<1x8x32xf32>
      %25 = vector.shape_cast %24 : vector<1x8x32xf32> to vector<8x32xf32>
      %26 = arith.addf %25, %17 : vector<8x32xf32>
      %c0_18 = arith.constant 0 : index
      %c0_19 = arith.constant 0 : index
      %c0_20 = arith.constant 0 : index
      %27 = vector.load %arg18[%c0_18, %c0_19, %c0_20] : memref<1x8x32xf32, #tpu.memory_space<vmem>>, vector<1x8x32xf32>
      %28 = vector.shape_cast %27 : vector<1x8x32xf32> to vector<8x32xf32>
      %29 = vector.shape_cast %26 : vector<8x32xf32> to vector<1x8x32xf32>
      tpu.vector_store %arg18[%c0_18, %c0_19, %c0_20], %29 {strides = array<i32>} : memref<1x8x32xf32, #tpu.memory_space<vmem>>, vector<1x8x32xf32>,
    } else {
    }
    return
  }
  func.func @transform_0(%arg0: i32, %arg1: i32) -> (i32, i32, i32) {
    %c0_i32 = arith.constant 0 : i32
    %c0_i32_0 = arith.constant 0 : i32
    %c0_i32_1 = arith.constant 0 : i32
    return %arg0, %c0_i32, %c0_i32_0 : i32, i32, i32
  }
  func.func @transform_1(%arg0: i32, %arg1: i32) -> (i32, i32) {
    %c0_i32 = arith.constant 0 : i32
    %c0_i32_0 = arith.constant 0 : i32
    %c0_i32_1 = arith.constant 0 : i32
    return %c0_i32, %c0_i32_0 : i32, i32
  }
  func.func @transform_2(%arg0: i32, %arg1: i32) -> (i32, i32) {
    %c0_i32 = arith.constant 0 : i32
    %c0_i32_0 = arith.constant 0 : i32
    %c0_i32_1 = arith.constant 0 : i32
    return %c0_i32, %c0_i32_0 : i32, i32
  }
  func.func @transform_3(%arg0: i32, %arg1: i32) -> (i32, i32) {
    %c0_i32 = arith.constant 0 : i32
    %c0_i32_0 = arith.constant 0 : i32
    %c0_i32_1 = arith.constant 0 : i32
    return %c0_i32, %c0_i32_0 : i32, i32
  }
  func.func @transform_4(%arg0: i32, %arg1: i32) -> (i32, i32) {
    %c0_i32 = arith.constant 0 : i32
    %c0_i32_0 = arith.constant 0 : i32
    %c0_i32_1 = arith.constant 0 : i32
    return %c0_i32, %c0_i32_0 : i32, i32
  }
  func.func @transform_5(%arg0: i32, %arg1: i32) -> (i32, i32) {
    %c0_i32 = arith.constant 0 : i32
    %c0_i32_0 = arith.constant 0 : i32
    %c0_i32_1 = arith.constant 0 : i32
    return %c0_i32, %c0_i32_0 : i32, i32
  }
  func.func @transform_6(%arg0: i32, %arg1: i32) -> (i32, i32) {
    %c0_i32 = arith.constant 0 : i32
    %c0_i32_0 = arith.constant 0 : i32
    %c0_i32_1 = arith.constant 0 : i32
    return %c0_i32, %c0_i32_0 : i32, i32
  }
  func.func @transform_7(%arg0: i32, %arg1: i32) -> (i32, i32) {
    %c0_i32 = arith.constant 0 : i32
    %c0_i32_0 = arith.constant 0 : i32
    %c0_i32_1 = arith.constant 0 : i32
    return %c0_i32, %c0_i32_0 : i32, i32
  }
  func.func @transform_8(%arg0: i32, %arg1: i32) -> (i32, i32) {
    %c0_i32 = arith.constant 0 : i32
    %c0_i32_0 = arith.constant 0 : i32
    %c0_i32_1 = arith.constant 0 : i32
    return %c0_i32, %c0_i32_0 : i32, i32
  }
  func.func @transform_9(%arg0: i32, %arg1: i32) -> (i32, i32) {
    %c0_i32 = arith.constant 0 : i32
    %c0_i32_0 = arith.constant 0 : i32
    %c0_i32_1 = arith.constant 0 : i32
    return %c0_i32, %c0_i32_0 : i32, i32
  }
  func.func @transform_10(%arg0: i32, %arg1: i32) -> (i32, i32) {
    %c0_i32 = arith.constant 0 : i32
    %c0_i32_0 = arith.constant 0 : i32
    %c0_i32_1 = arith.constant 0 : i32
    return %c0_i32, %c0_i32_0 : i32, i32
  }
  func.func @transform_11(%arg0: i32, %arg1: i32) -> (i32, i32) {
    %c0_i32 = arith.constant 0 : i32
    %c0_i32_0 = arith.constant 0 : i32
    %c0_i32_1 = arith.constant 0 : i32
    return %c0_i32, %c0_i32_0 : i32, i32
  }
  func.func @transform_12(%arg0: i32, %arg1: i32) -> (i32, i32) {
    %c0_i32 = arith.constant 0 : i32
    %c0_i32_0 = arith.constant 0 : i32
    %c0_i32_1 = arith.constant 0 : i32
    return %c0_i32, %c0_i32_0 : i32, i32
  }
  func.func @transform_13(%arg0: i32, %arg1: i32) -> (i32, i32) {
    %c0_i32 = arith.constant 0 : i32
    %c0_i32_0 = arith.constant 0 : i32
    return %c0_i32, %arg1 : i32, i32
  }
  func.func @transform_14(%arg0: i32, %arg1: i32) -> (i32, i32) {
    %c0_i32 = arith.constant 0 : i32
    %c0_i32_0 = arith.constant 0 : i32
    return %c0_i32, %arg1 : i32, i32
  }
  func.func @transform_15(%arg0: i32, %arg1: i32) -> (i32, i32) {
    %c0_i32 = arith.constant 0 : i32
    %c0_i32_0 = arith.constant 0 : i32
    return %arg1, %c0_i32 : i32, i32
  }
  func.func @transform_16(%arg0: i32, %arg1: i32) -> (i32, i32, i32) {
    %c0_i32 = arith.constant 0 : i32
    %c0_i32_0 = arith.constant 0 : i32
    %c0_i32_1 = arith.constant 0 : i32
    return %arg0, %c0_i32, %c0_i32_0 : i32, i32, i32
  }
  func.func @transform_17(%arg0: i32, %arg1: i32) -> (i32, i32, i32, i32) {
    %c0_i32 = arith.constant 0 : i32
    %c0_i32_0 = arith.constant 0 : i32
    %c0_i32_1 = arith.constant 0 : i32
    %c0_i32_2 = arith.constant 0 : i32
    return %arg0, %c0_i32, %c0_i32_0, %c0_i32_1 : i32, i32, i32, i32
  }
  func.func @transform_18(%arg0: i32, %arg1: i32) -> (i32, i32, i32, i32) {
    %c0_i32 = arith.constant 0 : i32
    %c0_i32_0 = arith.constant 0 : i32
    %c0_i32_1 = arith.constant 0 : i32
    %c0_i32_2 = arith.constant 0 : i32
    return %arg0, %c0_i32, %c0_i32_0, %c0_i32_1 : i32, i32, i32, i32
  }
}

module attributes {stable_mosaic.version = 11 : i64} {
  func.func @transformer_block_kernel(%arg0: i32, %arg1: i32, %arg2: memref<1x8x32xf32, #tpu.memory_space<vmem>>, %arg3: memref<1x32xf32, #tpu.memory_space<vmem>>, %arg4: memref<1x32xf32, #tpu.memory_space<vmem>>, %arg5: memref<32x32xbf16, #tpu.memory_space<vmem>>, %arg6: memref<1x32xf32, #tpu.memory_space<vmem>>, %arg7: memref<32x32xbf16, #tpu.memory_space<vmem>>, %arg8: memref<1x32xf32, #tpu.memory_space<vmem>>, %arg9: memref<32x32xbf16, #tpu.memory_space<vmem>>, %arg10: memref<1x32xf32, #tpu.memory_space<vmem>>, %arg11: memref<32x32xbf16, #tpu.memory_space<vmem>>, %arg12: memref<1x32xf32, #tpu.memory_space<vmem>>, %arg13: memref<1x32xf32, #tpu.memory_space<vmem>>, %arg14: memref<1x32xf32, #tpu.memory_space<vmem>>, %arg15: memref<32x64xbf16, #tpu.memory_space<vmem>>, %arg16: memref<32x64xbf16, #tpu.memory_space<vmem>>, %arg17: memref<64x32xbf16, #tpu.memory_space<vmem>>, %arg18: memref<1x8x32xf32, #tpu.memory_space<vmem>>, %arg19: memref<1x4x8x8xbf16, #tpu.memory_space<vmem>>, %arg20: memref<1x4x8x8xbf16, #tpu.memory_space<vmem>>, %arg21: memref<8x32xf32, #tpu.memory_space<vmem>>, %arg22: memref<8x32xbf16, #tpu.memory_space<vmem>>, %arg23: memref<8x32xbf16, #tpu.memory_space<vmem>>) attributes {dimension_semantics = [#tpu.dimension_semantics<parallel>, #tpu.dimension_semantics<arbitrary>], iteration_bounds = array<i64: 2, 1>, scalar_prefetch = 0 : i64, scratch_operands = 3 : i64, tpu.core_type = #tpu.core_type<tc>, window_params = [{transform_indices = @transform_0, window_bounds = array<i64: 1, 8, 32>}, {pipeline_mode = #tpu.pipeline_mode<synchronous>, transform_indices = @transform_1, window_bounds = array<i64: 1, 32>}, {pipeline_mode = #tpu.pipeline_mode<synchronous>, transform_indices = @transform_2, window_bounds = array<i64: 1, 32>}, {pipeline_mode = #tpu.pipeline_mode<synchronous>, transform_indices = @transform_3, window_bounds = array<i64: 32, 32>}, {pipeline_mode = #tpu.pipeline_mode<synchronous>, transform_indices = @transform_4, window_bounds = array<i64: 1, 32>}, {pipeline_mode = #tpu.pipeline_mode<synchronous>, transform_indices = @transform_5, window_bounds = array<i64: 32, 32>}, {pipeline_mode = #tpu.pipeline_mode<synchronous>, transform_indices = @transform_6, window_bounds = array<i64: 1, 32>}, {pipeline_mode = #tpu.pipeline_mode<synchronous>, transform_indices = @transform_7, window_bounds = array<i64: 32, 32>}, {pipeline_mode = #tpu.pipeline_mode<synchronous>, transform_indices = @transform_8, window_bounds = array<i64: 1, 32>}, {pipeline_mode = #tpu.pipeline_mode<synchronous>, transform_indices = @transform_9, window_bounds = array<i64: 32, 32>}, {pipeline_mode = #tpu.pipeline_mode<synchronous>, transform_indices = @transform_10, window_bounds = array<i64: 1, 32>}, {pipeline_mode = #tpu.pipeline_mode<synchronous>, transform_indices = @transform_11, window_bounds = array<i64: 1, 32>}, {pipeline_mode = #tpu.pipeline_mode<synchronous>, transform_indices = @transform_12, window_bounds = array<i64: 1, 32>}, {transform_indices = @transform_13, window_bounds = array<i64: 32, 64>}, {transform_indices = @transform_14, window_bounds = array<i64: 32, 64>}, {transform_indices = @transform_15, window_bounds = array<i64: 64, 32>}, {transform_indices = @transform_16, window_bounds = array<i64: 1, 8, 32>}, {transform_indices = @transform_17, window_bounds = array<i64: 1, 4, 8, 8>}, {transform_indices = @transform_18, window_bounds = array<i64: 1, 4, 8, 8>}]} {
    %c0_i32 = arith.constant 0 : i32
    %0 = arith.cmpi eq, %arg1, %c0_i32 : i32
    %1 = arith.extui %0 : i1 to i32
    %c0_i32_0 = arith.constant 0 : i32
    %2 = arith.cmpi ne, %1, %c0_i32_0 : i32
    scf.if %2 {
      %c0_15 = arith.constant 0 : index
      %c0_16 = arith.constant 0 : index
      %c0_17 = arith.constant 0 : index
      %24 = vector.load %arg2[%c0_15, %c0_16, %c0_17] : memref<1x8x32xf32, #tpu.memory_space<vmem>>, vector<1x8x32xf32>
      %25 = vector.shape_cast %24 : vector<1x8x32xf32> to vector<8x32xf32>
      %cst_18 = arith.constant dense<0.000000e+00> : vector<8xf32>
      %26 = vector.multi_reduction <add>, %25, %cst_18 [1] : vector<8x32xf32> to vector<8xf32>
      %27 = vector.shape_cast %26 : vector<8xf32> to vector<8x1xf32>
      %cst_19 = arith.constant 3.200000e+01 : f32
      %28 = vector.broadcast %cst_19 : f32 to vector<8x1xf32>
      %29 = arith.divf %27, %28 : vector<8x1xf32>
      %30 = vector.broadcast %29 : vector<8x1xf32> to vector<8x32xf32>
      %31 = arith.subf %25, %30 : vector<8x32xf32>
      %32 = arith.mulf %31, %31 : vector<8x32xf32>
      %cst_20 = arith.constant dense<0.000000e+00> : vector<8xf32>
      %33 = vector.multi_reduction <add>, %32, %cst_20 [1] : vector<8x32xf32> to vector<8xf32>
      %34 = vector.shape_cast %33 : vector<8xf32> to vector<8x1xf32>
      %cst_21 = arith.constant 3.200000e+01 : f32
      %35 = vector.broadcast %cst_21 : f32 to vector<8x1xf32>
      %36 = arith.divf %34, %35 : vector<8x1xf32>
      %37 = vector.broadcast %29 : vector<8x1xf32> to vector<8x32xf32>
      %38 = arith.subf %25, %37 : vector<8x32xf32>
      %cst_22 = arith.constant 9.99999974E-6 : f32
      %39 = vector.broadcast %cst_22 : f32 to vector<8x1xf32>
      %40 = arith.addf %36, %39 : vector<8x1xf32>
      %41 = math.rsqrt %40 : vector<8x1xf32>
      %42 = vector.broadcast %41 : vector<8x1xf32> to vector<8x32xf32>
      %43 = arith.mulf %38, %42 : vector<8x32xf32>
      %c0_23 = arith.constant 0 : index
      %c0_24 = arith.constant 0 : index
      %44 = vector.load %arg3[%c0_23, %c0_24] : memref<1x32xf32, #tpu.memory_space<vmem>>, vector<1x32xf32>
      %45 = vector.broadcast %44 : vector<1x32xf32> to vector<8x32xf32>
      %46 = arith.mulf %43, %45 : vector<8x32xf32>
      %c0_25 = arith.constant 0 : index
      %c0_26 = arith.constant 0 : index
      %47 = vector.load %arg4[%c0_25, %c0_26] : memref<1x32xf32, #tpu.memory_space<vmem>>, vector<1x32xf32>
      %48 = vector.broadcast %47 : vector<1x32xf32> to vector<8x32xf32>
      %49 = arith.addf %46, %48 : vector<8x32xf32>
      %50 = arith.truncf %49 : vector<8x32xf32> to vector<8x32xbf16>
      %c0_27 = arith.constant 0 : index
      %c0_28 = arith.constant 0 : index
      %51 = vector.load %arg5[%c0_27, %c0_28] : memref<32x32xbf16, #tpu.memory_space<vmem>>, vector<32x32xbf16>
      %cst_29 = arith.constant dense<0.000000e+00> : vector<8x32xf32>
      %52 = tpu.matmul %50, %51, %cst_29 {dimension_numbers = #tpu.dot_dimension_numbers<[1], [0], [0], [1], [0, 0, 1, 1], [], []>} : vector<8x32xbf16>, vector<32x32xbf16>, vector<8x32xf32> -> vector<8x32xf32>
      %c0_30 = arith.constant 0 : index
      %c0_31 = arith.constant 0 : index
      %53 = vector.load %arg6[%c0_30, %c0_31] : memref<1x32xf32, #tpu.memory_space<vmem>>, vector<1x32xf32>
      %54 = vector.broadcast %53 : vector<1x32xf32> to vector<8x32xf32>
      %55 = arith.addf %52, %54 : vector<8x32xf32>
      %c0_32 = arith.constant 0 : index
      %c0_33 = arith.constant 0 : index
      %56 = vector.load %arg7[%c0_32, %c0_33] : memref<32x32xbf16, #tpu.memory_space<vmem>>, vector<32x32xbf16>
      %cst_34 = arith.constant dense<0.000000e+00> : vector<8x32xf32>
      %57 = tpu.matmul %50, %56, %cst_34 {dimension_numbers = #tpu.dot_dimension_numbers<[1], [0], [0], [1], [0, 0, 1, 1], [], []>} : vector<8x32xbf16>, vector<32x32xbf16>, vector<8x32xf32> -> vector<8x32xf32>
      %c0_35 = arith.constant 0 : index
      %c0_36 = arith.constant 0 : index
      %58 = vector.load %arg8[%c0_35, %c0_36] : memref<1x32xf32, #tpu.memory_space<vmem>>, vector<1x32xf32>
      %59 = vector.broadcast %58 : vector<1x32xf32> to vector<8x32xf32>
      %60 = arith.addf %57, %59 : vector<8x32xf32>
      %c0_37 = arith.constant 0 : index
      %c0_38 = arith.constant 0 : index
      %61 = vector.load %arg9[%c0_37, %c0_38] : memref<32x32xbf16, #tpu.memory_space<vmem>>, vector<32x32xbf16>
      %cst_39 = arith.constant dense<0.000000e+00> : vector<8x32xf32>
      %62 = tpu.matmul %50, %61, %cst_39 {dimension_numbers = #tpu.dot_dimension_numbers<[1], [0], [0], [1], [0, 0, 1, 1], [], []>} : vector<8x32xbf16>, vector<32x32xbf16>, vector<8x32xf32> -> vector<8x32xf32>
      %c0_40 = arith.constant 0 : index
      %c0_41 = arith.constant 0 : index
      %63 = vector.load %arg10[%c0_40, %c0_41] : memref<1x32xf32, #tpu.memory_space<vmem>>, vector<1x32xf32>
      %64 = vector.broadcast %63 : vector<1x32xf32> to vector<8x32xf32>
      %65 = arith.addf %62, %64 : vector<8x32xf32>
      %cst_42 = arith.constant 0.353553385 : f32
      %66 = vector.broadcast %cst_42 : f32 to vector<8x32xf32>
      %67 = arith.mulf %55, %66 : vector<8x32xf32>
      %68 = arith.truncf %67 : vector<8x32xf32> to vector<8x32xbf16>
      %69 = arith.truncf %60 : vector<8x32xf32> to vector<8x32xbf16>
      %70 = arith.truncf %65 : vector<8x32xf32> to vector<8x32xbf16>
      %71 = tpu.iota {dimensions = array<i32: 0>} : vector<8x8xi32>
      %72 = tpu.iota {dimensions = array<i32: 1>} : vector<8x8xi32>
      %73 = arith.cmpi sle, %72, %71 : vector<8x8xi32>
      %cst_43 = arith.constant 0.000000e+00 : f32
      %cst_44 = arith.constant -1.000000e+09 : f32
      %74 = vector.broadcast %cst_43 : f32 to vector<8x8xf32>
      %75 = vector.broadcast %cst_44 : f32 to vector<8x8xf32>
      %76 = arith.select %73, %74, %75 : vector<8x8xi1>, vector<8x8xf32>
      %77 = vector.extract_strided_slice %69 {offsets = [0, 0], sizes = [8, 8], strides = [1, 1]} : vector<8x32xbf16> to vector<8x8xbf16>
      %c0_45 = arith.constant 0 : index
      %c0_46 = arith.constant 0 : index
      %c0_47 = arith.constant 0 : index
      %c0_48 = arith.constant 0 : index
      %78 = vector.load %arg19[%c0_45, %c0_46, %c0_47, %c0_48] : memref<1x4x8x8xbf16, #tpu.memory_space<vmem>>, vector<1x1x8x8xbf16>
      %79 = vector.shape_cast %78 : vector<1x1x8x8xbf16> to vector<8x8xbf16>
      %80 = vector.shape_cast %77 : vector<8x8xbf16> to vector<1x1x8x8xbf16>
      tpu.vector_store %arg19[%c0_45, %c0_46, %c0_47, %c0_48], %80 {strides = array<i32>} : memref<1x4x8x8xbf16, #tpu.memory_space<vmem>>, vector<1x1x8x8xbf16>,
      %81 = vector.extract_strided_slice %70 {offsets = [0, 0], sizes = [8, 8], strides = [1, 1]} : vector<8x32xbf16> to vector<8x8xbf16>
      %c0_49 = arith.constant 0 : index
      %c0_50 = arith.constant 0 : index
      %c0_51 = arith.constant 0 : index
      %c0_52 = arith.constant 0 : index
      %82 = vector.load %arg20[%c0_49, %c0_50, %c0_51, %c0_52] : memref<1x4x8x8xbf16, #tpu.memory_space<vmem>>, vector<1x1x8x8xbf16>
      %83 = vector.shape_cast %82 : vector<1x1x8x8xbf16> to vector<8x8xbf16>
      %84 = vector.shape_cast %81 : vector<8x8xbf16> to vector<1x1x8x8xbf16>
      tpu.vector_store %arg20[%c0_49, %c0_50, %c0_51, %c0_52], %84 {strides = array<i32>} : memref<1x4x8x8xbf16, #tpu.memory_space<vmem>>, vector<1x1x8x8xbf16>,
      %85 = vector.extract_strided_slice %68 {offsets = [0, 0], sizes = [8, 8], strides = [1, 1]} : vector<8x32xbf16> to vector<8x8xbf16>
      %86 = vector.extract_strided_slice %69 {offsets = [0, 0], sizes = [8, 8], strides = [1, 1]} : vector<8x32xbf16> to vector<8x8xbf16>
      %cst_53 = arith.constant dense<0.000000e+00> : vector<8x8xf32>
      %87 = tpu.matmul %85, %86, %cst_53 {dimension_numbers = #tpu.dot_dimension_numbers<[1], [1], [0], [0], [0, 0, 1, 0], [], []>} : vector<8x8xbf16>, vector<8x8xbf16>, vector<8x8xf32> -> vector<8x8xf32>
      %88 = arith.addf %87, %76 : vector<8x8xf32>
      %cst_54 = arith.constant dense<0xFF800000> : vector<8xf32>
      %89 = vector.multi_reduction <maximumf>, %88, %cst_54 [1] : vector<8x8xf32> to vector<8xf32>
      %90 = vector.shape_cast %89 : vector<8xf32> to vector<8x1xf32>
      %91 = vector.broadcast %90 : vector<8x1xf32> to vector<8x8xf32>
      %92 = arith.subf %88, %91 : vector<8x8xf32>
      %93 = math.exp %92 : vector<8x8xf32>
      %cst_55 = arith.constant dense<0.000000e+00> : vector<8xf32>
      %94 = vector.multi_reduction <add>, %93, %cst_55 [1] : vector<8x8xf32> to vector<8xf32>
      %95 = vector.shape_cast %94 : vector<8xf32> to vector<8x1xf32>
      %96 = tpu.reciprocal %95 {approx = true} : vector<8x1xf32> -> vector<8x1xf32>
      %97 = vector.broadcast %96 : vector<8x1xf32> to vector<8x8xf32>
      %98 = arith.mulf %93, %97 : vector<8x8xf32>
      %99 = arith.truncf %98 : vector<8x8xf32> to vector<8x8xbf16>
      %100 = vector.extract_strided_slice %70 {offsets = [0, 0], sizes = [8, 8], strides = [1, 1]} : vector<8x32xbf16> to vector<8x8xbf16>
      %cst_56 = arith.constant dense<0.000000e+00> : vector<8x8xf32>
      %101 = tpu.matmul %99, %100, %cst_56 {dimension_numbers = #tpu.dot_dimension_numbers<[1], [0], [0], [1], [0, 0, 1, 1], [], []>} : vector<8x8xbf16>, vector<8x8xbf16>, vector<8x8xf32> -> vector<8x8xf32>
      %102 = arith.truncf %101 : vector<8x8xf32> to vector<8x8xbf16>
      %c0_57 = arith.constant 0 : index
      %c0_58 = arith.constant 0 : index
      %103 = vector.load %arg23[%c0_57, %c0_58] : memref<8x32xbf16, #tpu.memory_space<vmem>>, vector<8x8xbf16>
      tpu.vector_store %arg23[%c0_57, %c0_58], %102 {strides = array<i32>} : memref<8x32xbf16, #tpu.memory_space<vmem>>, vector<8x8xbf16>,
      %104 = vector.extract_strided_slice %69 {offsets = [0, 8], sizes = [8, 8], strides = [1, 1]} : vector<8x32xbf16> to vector<8x8xbf16>
      %c0_59 = arith.constant 0 : index
      %c1 = arith.constant 1 : index
      %c0_60 = arith.constant 0 : index
      %c0_61 = arith.constant 0 : index
      %105 = vector.load %arg19[%c0_59, %c1, %c0_60, %c0_61] : memref<1x4x8x8xbf16, #tpu.memory_space<vmem>>, vector<1x1x8x8xbf16>
      %106 = vector.shape_cast %105 : vector<1x1x8x8xbf16> to vector<8x8xbf16>
      %107 = vector.shape_cast %104 : vector<8x8xbf16> to vector<1x1x8x8xbf16>
      tpu.vector_store %arg19[%c0_59, %c1, %c0_60, %c0_61], %107 {strides = array<i32>} : memref<1x4x8x8xbf16, #tpu.memory_space<vmem>>, vector<1x1x8x8xbf16>,
      %108 = vector.extract_strided_slice %70 {offsets = [0, 8], sizes = [8, 8], strides = [1, 1]} : vector<8x32xbf16> to vector<8x8xbf16>
      %c0_62 = arith.constant 0 : index
      %c1_63 = arith.constant 1 : index
      %c0_64 = arith.constant 0 : index
      %c0_65 = arith.constant 0 : index
      %109 = vector.load %arg20[%c0_62, %c1_63, %c0_64, %c0_65] : memref<1x4x8x8xbf16, #tpu.memory_space<vmem>>, vector<1x1x8x8xbf16>
      %110 = vector.shape_cast %109 : vector<1x1x8x8xbf16> to vector<8x8xbf16>
      %111 = vector.shape_cast %108 : vector<8x8xbf16> to vector<1x1x8x8xbf16>
      tpu.vector_store %arg20[%c0_62, %c1_63, %c0_64, %c0_65], %111 {strides = array<i32>} : memref<1x4x8x8xbf16, #tpu.memory_space<vmem>>, vector<1x1x8x8xbf16>,
      %112 = vector.extract_strided_slice %68 {offsets = [0, 8], sizes = [8, 8], strides = [1, 1]} : vector<8x32xbf16> to vector<8x8xbf16>
      %113 = vector.extract_strided_slice %69 {offsets = [0, 8], sizes = [8, 8], strides = [1, 1]} : vector<8x32xbf16> to vector<8x8xbf16>
      %cst_66 = arith.constant dense<0.000000e+00> : vector<8x8xf32>
      %114 = tpu.matmul %112, %113, %cst_66 {dimension_numbers = #tpu.dot_dimension_numbers<[1], [1], [0], [0], [0, 0, 1, 0], [], []>} : vector<8x8xbf16>, vector<8x8xbf16>, vector<8x8xf32> -> vector<8x8xf32>
      %115 = arith.addf %114, %76 : vector<8x8xf32>
      %cst_67 = arith.constant dense<0xFF800000> : vector<8xf32>
      %116 = vector.multi_reduction <maximumf>, %115, %cst_67 [1] : vector<8x8xf32> to vector<8xf32>
      %117 = vector.shape_cast %116 : vector<8xf32> to vector<8x1xf32>
      %118 = vector.broadcast %117 : vector<8x1xf32> to vector<8x8xf32>
      %119 = arith.subf %115, %118 : vector<8x8xf32>
      %120 = math.exp %119 : vector<8x8xf32>
      %cst_68 = arith.constant dense<0.000000e+00> : vector<8xf32>
      %121 = vector.multi_reduction <add>, %120, %cst_68 [1] : vector<8x8xf32> to vector<8xf32>
      %122 = vector.shape_cast %121 : vector<8xf32> to vector<8x1xf32>
      %123 = tpu.reciprocal %122 {approx = true} : vector<8x1xf32> -> vector<8x1xf32>
      %124 = vector.broadcast %123 : vector<8x1xf32> to vector<8x8xf32>
      %125 = arith.mulf %120, %124 : vector<8x8xf32>
      %126 = arith.truncf %125 : vector<8x8xf32> to vector<8x8xbf16>
      %127 = vector.extract_strided_slice %70 {offsets = [0, 8], sizes = [8, 8], strides = [1, 1]} : vector<8x32xbf16> to vector<8x8xbf16>
      %cst_69 = arith.constant dense<0.000000e+00> : vector<8x8xf32>
      %128 = tpu.matmul %126, %127, %cst_69 {dimension_numbers = #tpu.dot_dimension_numbers<[1], [0], [0], [1], [0, 0, 1, 1], [], []>} : vector<8x8xbf16>, vector<8x8xbf16>, vector<8x8xf32> -> vector<8x8xf32>
      %129 = arith.truncf %128 : vector<8x8xf32> to vector<8x8xbf16>
      %c0_70 = arith.constant 0 : index
      %c8 = arith.constant 8 : index
      %130 = vector.load %arg23[%c0_70, %c8] : memref<8x32xbf16, #tpu.memory_space<vmem>>, vector<8x8xbf16>
      tpu.vector_store %arg23[%c0_70, %c8], %129 {strides = array<i32>} : memref<8x32xbf16, #tpu.memory_space<vmem>>, vector<8x8xbf16>,
      %131 = vector.extract_strided_slice %69 {offsets = [0, 16], sizes = [8, 8], strides = [1, 1]} : vector<8x32xbf16> to vector<8x8xbf16>
      %c0_71 = arith.constant 0 : index
      %c2 = arith.constant 2 : index
      %c0_72 = arith.constant 0 : index
      %c0_73 = arith.constant 0 : index
      %132 = vector.load %arg19[%c0_71, %c2, %c0_72, %c0_73] : memref<1x4x8x8xbf16, #tpu.memory_space<vmem>>, vector<1x1x8x8xbf16>
      %133 = vector.shape_cast %132 : vector<1x1x8x8xbf16> to vector<8x8xbf16>
      %134 = vector.shape_cast %131 : vector<8x8xbf16> to vector<1x1x8x8xbf16>
      tpu.vector_store %arg19[%c0_71, %c2, %c0_72, %c0_73], %134 {strides = array<i32>} : memref<1x4x8x8xbf16, #tpu.memory_space<vmem>>, vector<1x1x8x8xbf16>,
      %135 = vector.extract_strided_slice %70 {offsets = [0, 16], sizes = [8, 8], strides = [1, 1]} : vector<8x32xbf16> to vector<8x8xbf16>
      %c0_74 = arith.constant 0 : index
      %c2_75 = arith.constant 2 : index
      %c0_76 = arith.constant 0 : index
      %c0_77 = arith.constant 0 : index
      %136 = vector.load %arg20[%c0_74, %c2_75, %c0_76, %c0_77] : memref<1x4x8x8xbf16, #tpu.memory_space<vmem>>, vector<1x1x8x8xbf16>
      %137 = vector.shape_cast %136 : vector<1x1x8x8xbf16> to vector<8x8xbf16>
      %138 = vector.shape_cast %135 : vector<8x8xbf16> to vector<1x1x8x8xbf16>
      tpu.vector_store %arg20[%c0_74, %c2_75, %c0_76, %c0_77], %138 {strides = array<i32>} : memref<1x4x8x8xbf16, #tpu.memory_space<vmem>>, vector<1x1x8x8xbf16>,
      %139 = vector.extract_strided_slice %68 {offsets = [0, 16], sizes = [8, 8], strides = [1, 1]} : vector<8x32xbf16> to vector<8x8xbf16>
      %140 = vector.extract_strided_slice %69 {offsets = [0, 16], sizes = [8, 8], strides = [1, 1]} : vector<8x32xbf16> to vector<8x8xbf16>
      %cst_78 = arith.constant dense<0.000000e+00> : vector<8x8xf32>
      %141 = tpu.matmul %139, %140, %cst_78 {dimension_numbers = #tpu.dot_dimension_numbers<[1], [1], [0], [0], [0, 0, 1, 0], [], []>} : vector<8x8xbf16>, vector<8x8xbf16>, vector<8x8xf32> -> vector<8x8xf32>
      %142 = arith.addf %141, %76 : vector<8x8xf32>
      %cst_79 = arith.constant dense<0xFF800000> : vector<8xf32>
      %143 = vector.multi_reduction <maximumf>, %142, %cst_79 [1] : vector<8x8xf32> to vector<8xf32>
      %144 = vector.shape_cast %143 : vector<8xf32> to vector<8x1xf32>
      %145 = vector.broadcast %144 : vector<8x1xf32> to vector<8x8xf32>
      %146 = arith.subf %142, %145 : vector<8x8xf32>
      %147 = math.exp %146 : vector<8x8xf32>
      %cst_80 = arith.constant dense<0.000000e+00> : vector<8xf32>
      %148 = vector.multi_reduction <add>, %147, %cst_80 [1] : vector<8x8xf32> to vector<8xf32>
      %149 = vector.shape_cast %148 : vector<8xf32> to vector<8x1xf32>
      %150 = tpu.reciprocal %149 {approx = true} : vector<8x1xf32> -> vector<8x1xf32>
      %151 = vector.broadcast %150 : vector<8x1xf32> to vector<8x8xf32>
      %152 = arith.mulf %147, %151 : vector<8x8xf32>
      %153 = arith.truncf %152 : vector<8x8xf32> to vector<8x8xbf16>
      %154 = vector.extract_strided_slice %70 {offsets = [0, 16], sizes = [8, 8], strides = [1, 1]} : vector<8x32xbf16> to vector<8x8xbf16>
      %cst_81 = arith.constant dense<0.000000e+00> : vector<8x8xf32>
      %155 = tpu.matmul %153, %154, %cst_81 {dimension_numbers = #tpu.dot_dimension_numbers<[1], [0], [0], [1], [0, 0, 1, 1], [], []>} : vector<8x8xbf16>, vector<8x8xbf16>, vector<8x8xf32> -> vector<8x8xf32>
      %156 = arith.truncf %155 : vector<8x8xf32> to vector<8x8xbf16>
      %c0_82 = arith.constant 0 : index
      %c16 = arith.constant 16 : index
      %157 = vector.load %arg23[%c0_82, %c16] : memref<8x32xbf16, #tpu.memory_space<vmem>>, vector<8x8xbf16>
      tpu.vector_store %arg23[%c0_82, %c16], %156 {strides = array<i32>} : memref<8x32xbf16, #tpu.memory_space<vmem>>, vector<8x8xbf16>,
      %158 = vector.extract_strided_slice %69 {offsets = [0, 24], sizes = [8, 8], strides = [1, 1]} : vector<8x32xbf16> to vector<8x8xbf16>
      %c0_83 = arith.constant 0 : index
      %c3 = arith.constant 3 : index
      %c0_84 = arith.constant 0 : index
      %c0_85 = arith.constant 0 : index
      %159 = vector.load %arg19[%c0_83, %c3, %c0_84, %c0_85] : memref<1x4x8x8xbf16, #tpu.memory_space<vmem>>, vector<1x1x8x8xbf16>
      %160 = vector.shape_cast %159 : vector<1x1x8x8xbf16> to vector<8x8xbf16>
      %161 = vector.shape_cast %158 : vector<8x8xbf16> to vector<1x1x8x8xbf16>
      tpu.vector_store %arg19[%c0_83, %c3, %c0_84, %c0_85], %161 {strides = array<i32>} : memref<1x4x8x8xbf16, #tpu.memory_space<vmem>>, vector<1x1x8x8xbf16>,
      %162 = vector.extract_strided_slice %70 {offsets = [0, 24], sizes = [8, 8], strides = [1, 1]} : vector<8x32xbf16> to vector<8x8xbf16>
      %c0_86 = arith.constant 0 : index
      %c3_87 = arith.constant 3 : index
      %c0_88 = arith.constant 0 : index
      %c0_89 = arith.constant 0 : index
      %163 = vector.load %arg20[%c0_86, %c3_87, %c0_88, %c0_89] : memref<1x4x8x8xbf16, #tpu.memory_space<vmem>>, vector<1x1x8x8xbf16>
      %164 = vector.shape_cast %163 : vector<1x1x8x8xbf16> to vector<8x8xbf16>
      %165 = vector.shape_cast %162 : vector<8x8xbf16> to vector<1x1x8x8xbf16>
      tpu.vector_store %arg20[%c0_86, %c3_87, %c0_88, %c0_89], %165 {strides = array<i32>} : memref<1x4x8x8xbf16, #tpu.memory_space<vmem>>, vector<1x1x8x8xbf16>,
      %166 = vector.extract_strided_slice %68 {offsets = [0, 24], sizes = [8, 8], strides = [1, 1]} : vector<8x32xbf16> to vector<8x8xbf16>
      %167 = vector.extract_strided_slice %69 {offsets = [0, 24], sizes = [8, 8], strides = [1, 1]} : vector<8x32xbf16> to vector<8x8xbf16>
      %cst_90 = arith.constant dense<0.000000e+00> : vector<8x8xf32>
      %168 = tpu.matmul %166, %167, %cst_90 {dimension_numbers = #tpu.dot_dimension_numbers<[1], [1], [0], [0], [0, 0, 1, 0], [], []>} : vector<8x8xbf16>, vector<8x8xbf16>, vector<8x8xf32> -> vector<8x8xf32>
      %169 = arith.addf %168, %76 : vector<8x8xf32>
      %cst_91 = arith.constant dense<0xFF800000> : vector<8xf32>
      %170 = vector.multi_reduction <maximumf>, %169, %cst_91 [1] : vector<8x8xf32> to vector<8xf32>
      %171 = vector.shape_cast %170 : vector<8xf32> to vector<8x1xf32>
      %172 = vector.broadcast %171 : vector<8x1xf32> to vector<8x8xf32>
      %173 = arith.subf %169, %172 : vector<8x8xf32>
      %174 = math.exp %173 : vector<8x8xf32>
      %cst_92 = arith.constant dense<0.000000e+00> : vector<8xf32>
      %175 = vector.multi_reduction <add>, %174, %cst_92 [1] : vector<8x8xf32> to vector<8xf32>
      %176 = vector.shape_cast %175 : vector<8xf32> to vector<8x1xf32>
      %177 = tpu.reciprocal %176 {approx = true} : vector<8x1xf32> -> vector<8x1xf32>
      %178 = vector.broadcast %177 : vector<8x1xf32> to vector<8x8xf32>
      %179 = arith.mulf %174, %178 : vector<8x8xf32>
      %180 = arith.truncf %179 : vector<8x8xf32> to vector<8x8xbf16>
      %181 = vector.extract_strided_slice %70 {offsets = [0, 24], sizes = [8, 8], strides = [1, 1]} : vector<8x32xbf16> to vector<8x8xbf16>
      %cst_93 = arith.constant dense<0.000000e+00> : vector<8x8xf32>
      %182 = tpu.matmul %180, %181, %cst_93 {dimension_numbers = #tpu.dot_dimension_numbers<[1], [0], [0], [1], [0, 0, 1, 1], [], []>} : vector<8x8xbf16>, vector<8x8xbf16>, vector<8x8xf32> -> vector<8x8xf32>
      %183 = arith.truncf %182 : vector<8x8xf32> to vector<8x8xbf16>
      %c0_94 = arith.constant 0 : index
      %c24 = arith.constant 24 : index
      %184 = vector.load %arg23[%c0_94, %c24] : memref<8x32xbf16, #tpu.memory_space<vmem>>, vector<8x8xbf16>
      tpu.vector_store %arg23[%c0_94, %c24], %183 {strides = array<i32>} : memref<8x32xbf16, #tpu.memory_space<vmem>>, vector<8x8xbf16>,
      %c0_95 = arith.constant 0 : index
      %c0_96 = arith.constant 0 : index
      %185 = vector.load %arg23[%c0_95, %c0_96] : memref<8x32xbf16, #tpu.memory_space<vmem>>, vector<8x32xbf16>
      %c0_97 = arith.constant 0 : index
      %c0_98 = arith.constant 0 : index
      %186 = vector.load %arg11[%c0_97, %c0_98] : memref<32x32xbf16, #tpu.memory_space<vmem>>, vector<32x32xbf16>
      %cst_99 = arith.constant dense<0.000000e+00> : vector<8x32xf32>
      %187 = tpu.matmul %185, %186, %cst_99 {dimension_numbers = #tpu.dot_dimension_numbers<[1], [0], [0], [1], [0, 0, 1, 1], [], []>} : vector<8x32xbf16>, vector<32x32xbf16>, vector<8x32xf32> -> vector<8x32xf32>
      %c0_100 = arith.constant 0 : index
      %c0_101 = arith.constant 0 : index
      %188 = vector.load %arg12[%c0_100, %c0_101] : memref<1x32xf32, #tpu.memory_space<vmem>>, vector<1x32xf32>
      %189 = vector.broadcast %188 : vector<1x32xf32> to vector<8x32xf32>
      %190 = arith.addf %187, %189 : vector<8x32xf32>
      %191 = arith.addf %25, %190 : vector<8x32xf32>
      %c0_102 = arith.constant 0 : index
      %c0_103 = arith.constant 0 : index
      %192 = vector.load %arg21[%c0_102, %c0_103] : memref<8x32xf32, #tpu.memory_space<vmem>>, vector<8x32xf32>
      tpu.vector_store %arg21[%c0_102, %c0_103], %191 {strides = array<i32>} : memref<8x32xf32, #tpu.memory_space<vmem>>, vector<8x32xf32>,
      %cst_104 = arith.constant dense<0.000000e+00> : vector<8xf32>
      %193 = vector.multi_reduction <add>, %191, %cst_104 [1] : vector<8x32xf32> to vector<8xf32>
      %194 = vector.shape_cast %193 : vector<8xf32> to vector<8x1xf32>
      %cst_105 = arith.constant 3.200000e+01 : f32
      %195 = vector.broadcast %cst_105 : f32 to vector<8x1xf32>
      %196 = arith.divf %194, %195 : vector<8x1xf32>
      %197 = vector.broadcast %196 : vector<8x1xf32> to vector<8x32xf32>
      %198 = arith.subf %191, %197 : vector<8x32xf32>
      %199 = arith.mulf %198, %198 : vector<8x32xf32>
      %cst_106 = arith.constant dense<0.000000e+00> : vector<8xf32>
      %200 = vector.multi_reduction <add>, %199, %cst_106 [1] : vector<8x32xf32> to vector<8xf32>
      %201 = vector.shape_cast %200 : vector<8xf32> to vector<8x1xf32>
      %cst_107 = arith.constant 3.200000e+01 : f32
      %202 = vector.broadcast %cst_107 : f32 to vector<8x1xf32>
      %203 = arith.divf %201, %202 : vector<8x1xf32>
      %204 = vector.broadcast %196 : vector<8x1xf32> to vector<8x32xf32>
      %205 = arith.subf %191, %204 : vector<8x32xf32>
      %cst_108 = arith.constant 9.99999974E-6 : f32
      %206 = vector.broadcast %cst_108 : f32 to vector<8x1xf32>
      %207 = arith.addf %203, %206 : vector<8x1xf32>
      %208 = math.rsqrt %207 : vector<8x1xf32>
      %209 = vector.broadcast %208 : vector<8x1xf32> to vector<8x32xf32>
      %210 = arith.mulf %205, %209 : vector<8x32xf32>
      %c0_109 = arith.constant 0 : index
      %c0_110 = arith.constant 0 : index
      %211 = vector.load %arg13[%c0_109, %c0_110] : memref<1x32xf32, #tpu.memory_space<vmem>>, vector<1x32xf32>
      %212 = vector.broadcast %211 : vector<1x32xf32> to vector<8x32xf32>
      %213 = arith.mulf %210, %212 : vector<8x32xf32>
      %c0_111 = arith.constant 0 : index
      %c0_112 = arith.constant 0 : index
      %214 = vector.load %arg14[%c0_111, %c0_112] : memref<1x32xf32, #tpu.memory_space<vmem>>, vector<1x32xf32>
      %215 = vector.broadcast %214 : vector<1x32xf32> to vector<8x32xf32>
      %216 = arith.addf %213, %215 : vector<8x32xf32>
      %217 = arith.truncf %216 : vector<8x32xf32> to vector<8x32xbf16>
      %c0_113 = arith.constant 0 : index
      %c0_114 = arith.constant 0 : index
      %218 = vector.load %arg22[%c0_113, %c0_114] : memref<8x32xbf16, #tpu.memory_space<vmem>>, vector<8x32xbf16>
      tpu.vector_store %arg22[%c0_113, %c0_114], %217 {strides = array<i32>} : memref<8x32xbf16, #tpu.memory_space<vmem>>, vector<8x32xbf16>,
    } else {
    }
    %c0 = arith.constant 0 : index
    %c0_1 = arith.constant 0 : index
    %3 = vector.load %arg22[%c0, %c0_1] : memref<8x32xbf16, #tpu.memory_space<vmem>>, vector<8x32xbf16>
    %c0_2 = arith.constant 0 : index
    %c0_3 = arith.constant 0 : index
    %4 = vector.load %arg15[%c0_2, %c0_3] : memref<32x64xbf16, #tpu.memory_space<vmem>>, vector<32x64xbf16>
    %cst = arith.constant dense<0.000000e+00> : vector<8x64xf32>
    %5 = tpu.matmul %3, %4, %cst {dimension_numbers = #tpu.dot_dimension_numbers<[1], [0], [0], [1], [0, 0, 1, 1], [], []>} : vector<8x32xbf16>, vector<32x64xbf16>, vector<8x64xf32> -> vector<8x64xf32>
    %c0_4 = arith.constant 0 : index
    %c0_5 = arith.constant 0 : index
    %6 = vector.load %arg16[%c0_4, %c0_5] : memref<32x64xbf16, #tpu.memory_space<vmem>>, vector<32x64xbf16>
    %cst_6 = arith.constant dense<0.000000e+00> : vector<8x64xf32>
    %7 = tpu.matmul %3, %6, %cst_6 {dimension_numbers = #tpu.dot_dimension_numbers<[1], [0], [0], [1], [0, 0, 1, 1], [], []>} : vector<8x32xbf16>, vector<32x64xbf16>, vector<8x64xf32> -> vector<8x64xf32>
    %8 = arith.negf %5 : vector<8x64xf32>
    %9 = math.exp %8 : vector<8x64xf32>
    %cst_7 = arith.constant 1.000000e+00 : f32
    %10 = vector.broadcast %cst_7 : f32 to vector<8x64xf32>
    %11 = arith.addf %10, %9 : vector<8x64xf32>
    %12 = arith.divf %10, %11 : vector<8x64xf32>
    %13 = arith.mulf %5, %12 : vector<8x64xf32>
    %14 = arith.mulf %13, %7 : vector<8x64xf32>
    %15 = arith.truncf %14 : vector<8x64xf32> to vector<8x64xbf16>
    %c0_8 = arith.constant 0 : index
    %c0_9 = arith.constant 0 : index
    %16 = vector.load %arg17[%c0_8, %c0_9] : memref<64x32xbf16, #tpu.memory_space<vmem>>, vector<64x32xbf16>
    %cst_10 = arith.constant dense<0.000000e+00> : vector<8x32xf32>
    %17 = tpu.matmul %15, %16, %cst_10 {dimension_numbers = #tpu.dot_dimension_numbers<[1], [0], [0], [1], [0, 0, 1, 1], [], []>} : vector<8x64xbf16>, vector<64x32xbf16>, vector<8x32xf32> -> vector<8x32xf32>
    %c0_i32_11 = arith.constant 0 : i32
    %18 = arith.cmpi eq, %arg1, %c0_i32_11 : i32
    %19 = arith.extui %18 : i1 to i32
    %c0_i32_12 = arith.constant 0 : i32
    %20 = arith.cmpi ne, %19, %c0_i32_12 : i32
    scf.if %20 {
      %c0_15 = arith.constant 0 : index
      %c0_16 = arith.constant 0 : index
      %24 = vector.load %arg21[%c0_15, %c0_16] : memref<8x32xf32, #tpu.memory_space<vmem>>, vector<8x32xf32>
      %25 = arith.addf %24, %17 : vector<8x32xf32>
      %c0_17 = arith.constant 0 : index
      %c0_18 = arith.constant 0 : index
      %c0_19 = arith.constant 0 : index
      %26 = vector.load %arg18[%c0_17, %c0_18, %c0_19] : memref<1x8x32xf32, #tpu.memory_space<vmem>>, vector<1x8x32xf32>
      %27 = vector.shape_cast %26 : vector<1x8x32xf32> to vector<8x32xf32>
      %28 = vector.shape_cast %25 : vector<8x32xf32> to vector<1x8x32xf32>
      tpu.vector_store %arg18[%c0_17, %c0_18, %c0_19], %28 {strides = array<i32>} : memref<1x8x32xf32, #tpu.memory_space<vmem>>, vector<1x8x32xf32>,
    } else {
    }
    %c0_i32_13 = arith.constant 0 : i32
    %21 = arith.cmpi sgt, %arg1, %c0_i32_13 : i32
    %22 = arith.extui %21 : i1 to i32
    %c0_i32_14 = arith.constant 0 : i32
    %23 = arith.cmpi ne, %22, %c0_i32_14 : i32
    scf.if %23 {
      %c0_15 = arith.constant 0 : index
      %c0_16 = arith.constant 0 : index
      %c0_17 = arith.constant 0 : index
      %24 = vector.load %arg18[%c0_15, %c0_16, %c0_17] : memref<1x8x32xf32, #tpu.memory_space<vmem>>, vector<1x8x32xf32>
      %25 = vector.shape_cast %24 : vector<1x8x32xf32> to vector<8x32xf32>
      %26 = arith.addf %25, %17 : vector<8x32xf32>
      %c0_18 = arith.constant 0 : index
      %c0_19 = arith.constant 0 : index
      %c0_20 = arith.constant 0 : index
      %27 = vector.load %arg18[%c0_18, %c0_19, %c0_20] : memref<1x8x32xf32, #tpu.memory_space<vmem>>, vector<1x8x32xf32>
      %28 = vector.shape_cast %27 : vector<1x8x32xf32> to vector<8x32xf32>
      %29 = vector.shape_cast %26 : vector<8x32xf32> to vector<1x8x32xf32>
      tpu.vector_store %arg18[%c0_18, %c0_19, %c0_20], %29 {strides = array<i32>} : memref<1x8x32xf32, #tpu.memory_space<vmem>>, vector<1x8x32xf32>,
    } else {
    }
    return
  }
  func.func @transform_0(%arg0: i32, %arg1: i32) -> (i32, i32, i32) {
    %c0_i32 = arith.constant 0 : i32
    %c0_i32_0 = arith.constant 0 : i32
    %c0_i32_1 = arith.constant 0 : i32
    return %arg0, %c0_i32, %c0_i32_0 : i32, i32, i32
  }
  func.func @transform_1(%arg0: i32, %arg1: i32) -> (i32, i32) {
    %c0_i32 = arith.constant 0 : i32
    %c0_i32_0 = arith.constant 0 : i32
    %c0_i32_1 = arith.constant 0 : i32
    return %c0_i32, %c0_i32_0 : i32, i32
  }
  func.func @transform_2(%arg0: i32, %arg1: i32) -> (i32, i32) {
    %c0_i32 = arith.constant 0 : i32
    %c0_i32_0 = arith.constant 0 : i32
    %c0_i32_1 = arith.constant 0 : i32
    return %c0_i32, %c0_i32_0 : i32, i32
  }
  func.func @transform_3(%arg0: i32, %arg1: i32) -> (i32, i32) {
    %c0_i32 = arith.constant 0 : i32
    %c0_i32_0 = arith.constant 0 : i32
    %c0_i32_1 = arith.constant 0 : i32
    return %c0_i32, %c0_i32_0 : i32, i32
  }
  func.func @transform_4(%arg0: i32, %arg1: i32) -> (i32, i32) {
    %c0_i32 = arith.constant 0 : i32
    %c0_i32_0 = arith.constant 0 : i32
    %c0_i32_1 = arith.constant 0 : i32
    return %c0_i32, %c0_i32_0 : i32, i32
  }
  func.func @transform_5(%arg0: i32, %arg1: i32) -> (i32, i32) {
    %c0_i32 = arith.constant 0 : i32
    %c0_i32_0 = arith.constant 0 : i32
    %c0_i32_1 = arith.constant 0 : i32
    return %c0_i32, %c0_i32_0 : i32, i32
  }
  func.func @transform_6(%arg0: i32, %arg1: i32) -> (i32, i32) {
    %c0_i32 = arith.constant 0 : i32
    %c0_i32_0 = arith.constant 0 : i32
    %c0_i32_1 = arith.constant 0 : i32
    return %c0_i32, %c0_i32_0 : i32, i32
  }
  func.func @transform_7(%arg0: i32, %arg1: i32) -> (i32, i32) {
    %c0_i32 = arith.constant 0 : i32
    %c0_i32_0 = arith.constant 0 : i32
    %c0_i32_1 = arith.constant 0 : i32
    return %c0_i32, %c0_i32_0 : i32, i32
  }
  func.func @transform_8(%arg0: i32, %arg1: i32) -> (i32, i32) {
    %c0_i32 = arith.constant 0 : i32
    %c0_i32_0 = arith.constant 0 : i32
    %c0_i32_1 = arith.constant 0 : i32
    return %c0_i32, %c0_i32_0 : i32, i32
  }
  func.func @transform_9(%arg0: i32, %arg1: i32) -> (i32, i32) {
    %c0_i32 = arith.constant 0 : i32
    %c0_i32_0 = arith.constant 0 : i32
    %c0_i32_1 = arith.constant 0 : i32
    return %c0_i32, %c0_i32_0 : i32, i32
  }
  func.func @transform_10(%arg0: i32, %arg1: i32) -> (i32, i32) {
    %c0_i32 = arith.constant 0 : i32
    %c0_i32_0 = arith.constant 0 : i32
    %c0_i32_1 = arith.constant 0 : i32
    return %c0_i32, %c0_i32_0 : i32, i32
  }
  func.func @transform_11(%arg0: i32, %arg1: i32) -> (i32, i32) {
    %c0_i32 = arith.constant 0 : i32
    %c0_i32_0 = arith.constant 0 : i32
    %c0_i32_1 = arith.constant 0 : i32
    return %c0_i32, %c0_i32_0 : i32, i32
  }
  func.func @transform_12(%arg0: i32, %arg1: i32) -> (i32, i32) {
    %c0_i32 = arith.constant 0 : i32
    %c0_i32_0 = arith.constant 0 : i32
    %c0_i32_1 = arith.constant 0 : i32
    return %c0_i32, %c0_i32_0 : i32, i32
  }
  func.func @transform_13(%arg0: i32, %arg1: i32) -> (i32, i32) {
    %c0_i32 = arith.constant 0 : i32
    %c0_i32_0 = arith.constant 0 : i32
    return %c0_i32, %arg1 : i32, i32
  }
  func.func @transform_14(%arg0: i32, %arg1: i32) -> (i32, i32) {
    %c0_i32 = arith.constant 0 : i32
    %c0_i32_0 = arith.constant 0 : i32
    return %c0_i32, %arg1 : i32, i32
  }
  func.func @transform_15(%arg0: i32, %arg1: i32) -> (i32, i32) {
    %c0_i32 = arith.constant 0 : i32
    %c0_i32_0 = arith.constant 0 : i32
    return %arg1, %c0_i32 : i32, i32
  }
  func.func @transform_16(%arg0: i32, %arg1: i32) -> (i32, i32, i32) {
    %c0_i32 = arith.constant 0 : i32
    %c0_i32_0 = arith.constant 0 : i32
    %c0_i32_1 = arith.constant 0 : i32
    return %arg0, %c0_i32, %c0_i32_0 : i32, i32, i32
  }
  func.func @transform_17(%arg0: i32, %arg1: i32) -> (i32, i32, i32, i32) {
    %c0_i32 = arith.constant 0 : i32
    %c0_i32_0 = arith.constant 0 : i32
    %c0_i32_1 = arith.constant 0 : i32
    %c0_i32_2 = arith.constant 0 : i32
    return %arg0, %c0_i32, %c0_i32_0, %c0_i32_1 : i32, i32, i32, i32
  }
  func.func @transform_18(%arg0: i32, %arg1: i32) -> (i32, i32, i32, i32) {
    %c0_i32 = arith.constant 0 : i32
    %c0_i32_0 = arith.constant 0 : i32
    %c0_i32_1 = arith.constant 0 : i32
    %c0_i32_2 = arith.constant 0 : i32
    return %arg0, %c0_i32, %c0_i32_0, %c0_i32_1 : i32, i32, i32, i32
  }
}

</mosaic_0001>

<bundles_post_ra>
// kernel: tpu_custom_call.1
= control target key start
LH: loop header
LB: loop body
LE: loop exit
PB: predicated region body
PF: predicated region fallthrough
CT: control target
= control target key end

     0   :  { %s3225_s0 = inlined_call_operand.vmem [shape: f32[2,8,32], index: 0, kind: input, shape index: {}]   ;;  %s3226_s1 = inlined_call_operand.vmem [shape: f32[1,32], index: 1, kind: input, shape index: {}]   ;;  %s3227_s2 = inlined_call_operand.vmem [shape: f32[1,32], index: 2, kind: input, shape index: {}]   ;;  %s3228_s3 = inlined_call_operand.vmem [shape: bf16[32,32], index: 3, kind: input, shape index: {}]   ;;  %s3229_s4 = inlined_call_operand.vmem [shape: f32[1,32], index: 4, kind: input, shape index: {}]   ;;  %s3230_s5 = inlined_call_operand.vmem [shape: bf16[32,32], index: 5, kind: input, shape index: {}]   ;;  %s3231_s6 = inlined_call_operand.vmem [shape: f32[1,32], index: 6, kind: input, shape index: {}]   ;;  %s3232_s7 = inlined_call_operand.hbm [shape: bf16[32,32], index: 7, kind: input, shape index: {}]   ;;  %s3233_s8 = inlined_call_operand.vmem [shape: f32[1,32], index: 8, kind: input, shape index: {}]   ;;  %s3234_s9 = inlined_call_operand.hbm [shape: bf16[32,32], index: 9, kind: input, shape index: {}]   ;;  %s3235_s10 = inlined_call_operand.vmem [shape: f32[1,32], index: 10, kind: input, shape index: {}]   ;;  %s3236_s11 = inlined_call_operand.vmem [shape: f32[1,32], index: 11, kind: input, shape index: {}]   ;;  %s3237_s12 = inlined_call_operand.vmem [shape: f32[1,32], index: 12, kind: input, shape index: {}]   ;;  %s3238_s13 = inlined_call_operand.hbm [shape: bf16[32,64], index: 13, kind: input, shape index: {}]   ;;  %s3239_s14 = inlined_call_operand.hbm [shape: bf16[32,64], index: 14, kind: input, shape index: {}]   ;;  %s3240_s15 = inlined_call_operand.vmem [shape: bf16[64,32], index: 15, kind: input, shape index: {}]   ;;  %s3241_s16 = inlined_call_operand.hbm [shape: f32[2,8,32], index: 16, kind: output, shape index: {0}]   ;;  %s3242_s17 = inlined_call_operand.hbm [shape: bf16[2,4,8,8], index: 17, kind: output, shape index: {1}]   ;;  %s3243_s18 = inlined_call_operand.hbm [shape: bf16[2,4,8,8], index: 18, kind: output, shape index: {2}]  }
   0x1   :  { %3255 = sst [smem:[#allocation29_spill]] %s3225_s0 }
   0x2   :  { %3256 = sst [smem:[#allocation30_spill]] %s3226_s1 }
   0x3   :  { %3257 = sst [smem:[#allocation31_spill]] %s3227_s2 }
   0x4   :  { %3258 = sst [smem:[#allocation32_spill]] %s3228_s3 }
   0x5   :  { %3259 = sst [smem:[#allocation33_spill]] %s3234_s9 }
   0x6   :  { %3260 = sst [smem:[#allocation34_spill]] %s3241_s16 }
   0x7   :  { %24 = vsyncpa [#allocation6], 0 }
   0x8   :  { %25 = vsyncpa [#allocation9], 0 }
   0x9   :  { %26 = vsyncpa [#allocation12], 0 }
   0xa   :  { %27 = vsyncpa [#allocation7], 0 }
   0xb   :  { %29 = vsyncpa [#allocation7 + $0x1], 0 }
   0xc   :  { %30 = vsyncpa [#allocation15], 0 }
   0xd   :  { %32 = vsyncpa [#allocation15 + $0x1], 0  ;;  %s2758_s27 = smov 0   ;;  %s2760_s28 = smov 0  }
   0xe   :  { %s2762_s29 = smov 0   ;;  %s2764_s30 = smov 0  }
   0xf   :  { %s2766_s0 = smov 0   ;;  %s2768_s19 = smov 0  }
  0x10 LB: > { %3261 = sst [smem:[#allocation22_spill]] %s2621_s27  ;;  %s2789_s1 = sadd.s32 4294967295, %s2641_s19   ;;  %s2641_s19 = sphi %s2768_s19, %s38_s19   ;;  %s2637_s0 = sphi %s2766_s0, %s3287_s0   ;;  %s2633_s30 = sphi %s2764_s30, %s3286_s30   ;;  %s2629_s29 = sphi %s2762_s29, %s3285_s29   ;;  %s2625_s28 = sphi %s2760_s28, %s3289_s28   ;;  %s2621_s27 = sphi %s2758_s27, %s3288_s27  }
  0x11   : > { %3262 = sst [smem:[#allocation23_spill]] %s2629_s29  ;;  %s3245_s20 = sadd.s32 4294967294, %s2641_s19  }
  0x12   : > { %3263 = sst [smem:[#allocation24_spill]] %s2637_s0  ;;  %s50_s21 = sadd.s32 1, %s2637_s0 }
  0x13   : > { %3264 = sst [smem:[#allocation25_spill]] %s2641_s19  ;;  %s413_s22 = sadd.s32 1, %s2629_s29 }
  0x14   : > { %p52_p0 = scmp.ge.s32.totalorder %s50_s21, 2  ;;  %p423_p1 = scmp.ne.s32.totalorder %s2629_s29, %s2625_s28 }
  0x15   : > { %p424_p2 = scmp.eq.s32.totalorder %s2789_s1, 1  ;;  %p429_p3 = scmp.ne.s32.totalorder %s2625_s28, %s2621_s27 }
  0x16   : > { %s3291_s21 = smov (%p52_p0, %s50_s21), 0  ;;  %p430_p5 = scmp.eq.s32.totalorder %s3245_s20, 1 }
  0x17   : > { %3265 = sst [smem:[#allocation26_spill]] %s3291_s21  ;;  %p2801_p4 = por %p424_p2, %p423_p1 }
  0x18   : > { %s410_s23 = ssub.s32 %s2637_s0, %s3291_s21  ;;  %p2003_p6 = scmp.ge.s32.totalorder %s2641_s19, 1 }
  0x19   : > { %p411_p7 = scmp.eq.s32.totalorder %s410_s23, 0  ;;  %p2810_p8 = por %p430_p5, %p429_p3 }
  0x1a   : > { %p489_p9 = scmp.lt.s32.totalorder %s2641_s19, 3  ;;  %p2279_p11 = scmp.eq.s32.totalorder %s2789_s1, 0 }
  0x1b   : > { %s3267_s24 = scalar_select %p2810_p8, 1, 0 }
  0x1c   : > { %s2816_s25 = scalar_select %p411_p7, %s2629_s29, %s413_s22  }
  0x1d   : > { %3268 = sst [smem:[#allocation27_spill]] %s3267_s24  ;;  %p2818_p10 = pnand %p2003_p6, %p489_p9 }
  0x1e   : > { %3269 = sst [smem:[#allocation28_spill]] %s2816_s25  ;;  %s2643_s27 = smov [#allocation8]  }
  0x1f   : > { %p2256_p12 = pneg %p2818_p10  ;;  %s535_s20 = sshll.u32 %s2643_s27, 4  ;;  %s536_s20 = int_to_ptr.vmem [resolvable:$true] %s535_s20 }
  0x20   : > { %s2644_s22 = smov [#allocation5]   ;;  %s2404_s0 = scalar_lea.vmem %s536_s20, 256 }
  0x21   : > { %p2827_p13 = pnand %p2279_p11, %p2256_p12  ;;  %s519_s21 = sshll.u32 %s2644_s22, 4  ;;  %s520_s21 = int_to_ptr.vmem [resolvable:$true] %s519_s21 }
  0x22   : > { %p2405_p1 = scmp.ne.s32.totalorder %s536_s20, %s2404_s0  ;;  %p2412_p5 = scmp.lt.s32.totalorder %s536_s20, %s536_s20 }
  0x23   : > { %p2395_p0 = pneg %p2827_p13  ;;  %p2413_p6 = scmp.lt.s32.totalorder %s2404_s0, %s2404_s0 }
  0x25   : > { %p2407_p2 = pnand %p2405_p1, %p2395_p0  ;;  %p2414_p7 = por %p2413_p6, %p2412_p5 }
  0x27   : > { %p2408_p3 = pneg %p2407_p2 }
  0x29   : > { %p2415_p9 = pnand %p2414_p7, %p2408_p3 }
  0x2b   : > { %2418 = shalt.err (!%p2415_p9)
}
  0x2c   : > { %s2645_s27 = smov 64   ;;  %s2646_s25 = smov 4  }
  0x2d   : > { %s3272_s9 = sld [smem:[#allocation33_spill]]  ;;  %s2430_s24 = scalar_lea.vmem %s520_s21, 256 }
  0x2e   : > { %p2431_p12 = scmp.ne.s32.totalorder %s520_s21, %s2430_s24  ;;  %p2438_p3 = scmp.lt.s32.totalorder %s520_s21, %s520_s21 }
  0x2f   : > { %p2439_p5 = scmp.lt.s32.totalorder %s2430_s24, %s2430_s24 }
  0x30   : > { %p2433_p1 = pnand %p2431_p12, %p2395_p0 }
  0x31   : > { %p2440_p6 = por %p2439_p5, %p2438_p3 }
  0x32   : > { %p2434_p2 = pneg %p2433_p1 }
  0x33   : > { %2262 = dma.hbm_to_vmem [thread:$0]  (!%p2827_p13), %s3272_s9, 256, %s536_s20, [#allocation9], %s2645_s27, %s2645_s27, %s2646_s25  }
  0x34   : > { %p2441_p7 = pnand %p2440_p6, %p2434_p2 }
  0x36   : > { %2444 = shalt.err (!%p2441_p7)
}
  0x37   : > { %2259 = dma.hbm_to_vmem [thread:$0]  (!%p2827_p13), %s3232_s7, 256, %s520_s21, [#allocation6], %s2645_s27, %s2645_s27, %s2646_s25  }
  0x38   : > { %s2647_s20 = smov [#allocation10]   ;;  %s2648_s9 = smov [#allocation11]  }
  0x39   : > { %s559_s22 = sshll.u32 %s2647_s20, 4  ;;  %s574_s19 = sshll.u32 %s2648_s9, 4  ;;  %s560_s22 = int_to_ptr.vmem [resolvable:$true] %s559_s22  ;;  %s575_s19 = int_to_ptr.vmem [resolvable:$true] %s574_s19 }
  0x3a   : > { %s2456_s16 = scalar_lea.vmem %s560_s22, 256  ;;  %p2464_p2 = scmp.lt.s32.totalorder %s560_s22, %s560_s22 }
  0x3b   : > { %p2457_p9 = scmp.ne.s32.totalorder %s560_s22, %s2456_s16  ;;  %p2465_p3 = scmp.lt.s32.totalorder %s2456_s16, %s2456_s16 }
  0x3d   : > { %p2459_p12 = pnand %p2457_p9, %p2395_p0  ;;  %p2466_p5 = por %p2465_p3, %p2464_p2 }
  0x3f   : > { %p2460_p1 = pneg %p2459_p12 }
  0x41   : > { %p2467_p6 = pnand %p2466_p5, %p2460_p1 }
  0x43   : > { %2470 = shalt.err (!%p2467_p6)
}
  0x44   : > { %2265 = dma.hbm_to_vmem [thread:$0]  (!%p2827_p13), %s3238_s13, 256, %s560_s22, [#allocation9], %s2645_s27, %s2645_s27, %s2646_s25  }
  0x45   : > { %s2482_s9 = scalar_lea.vmem %s575_s19, 256  ;;  %p2490_p2 = scmp.lt.s32.totalorder %s575_s19, %s575_s19 }
  0x46   : > { %p2483_p7 = scmp.ne.s32.totalorder %s575_s19, %s2482_s9  ;;  %p2491_p1 = scmp.lt.s32.totalorder %s2482_s9, %s2482_s9 }
  0x48   : > { %p2485_p9 = pnand %p2483_p7, %p2395_p0  ;;  %p2492_p3 = por %p2491_p1, %p2490_p2 }
  0x4a   : > { %p2486_p12 = pneg %p2485_p9 }
  0x4c   : > { %p2493_p5 = pnand %p2492_p3, %p2486_p12 }
  0x4e   : > { %2496 = shalt.err (!%p2493_p5)
}
  0x4f   : > { %2268 = dma.hbm_to_vmem [thread:$0]  (!%p2827_p13), %s3239_s14, 256, %s575_s19, [#allocation12], %s2645_s27, %s2645_s27, %s2646_s25  }
  0x50   : > { %606 = sbr.rel (%p2818_p10) target bundleno = 2571 (0xa0b), region = 84 }
  0x55   : > { %2600 = dma.done.wait (%p2279_p11), [#allocation6], 256  }
  0x56   : > { %2602 = vsyncadd (%p2279_p11), [#allocation6], 4294967040 }
  0x57   : > { %2604 = dma.done.wait (%p2279_p11), [#allocation9], 512  }
  0x58   : > { %2606 = vsyncadd (%p2279_p11), [#allocation9], 4294966784 }
  0x59   : > { %2608 = dma.done.wait (%p2279_p11), [#allocation12], 256  }
  0x5a   : > { %2610 = vsyncadd (%p2279_p11), [#allocation12], 4294967040  ;;  %p686_p10 = scmp.lt.s32.totalorder %s2633_s30, 1  ;;  %s3273_s27 = sld [smem:[#allocation29_spill]]  ;;  %vm702_vm0 = vcmask 261120   ;;  %v2354_v8 = vld [vmem:[#allocation5 + $0x8] sm:$0xff]   ;;  %v930_v57 = vlaneseq }
  0x5b   : > { %s3274_s3 = sld [smem:[#allocation32_spill]]  ;;  %v2649_v9 = vmov 0.0   ;;  %v2356_v11 = vld [vmem:[#allocation5] sm:$0xff]   ;;  %vm2650_vm1 = vmmov 0   ;;  %v2357_v21 = vld [vmem:[%s3230_s5 + $0x8] sm:$0xff]   ;;  %v2358_v23 = vld [vmem:[%s3230_s5] sm:$0xff]  }
  0x5c   : > { %s687_s19 = scalar_select %p686_p10, %s2633_s30, 1  ;;  %2126 = vmatprep.subr.bf16.mxu1 %v2649_v9  ;;  %2142 = vmatprep.subr.bf16.mxu0 %v2649_v9  ;;  %v2029_v24 = vld [vmem:[%s3233_s8] ss:$0 sm:$0xff]  ;;  %vm1001_vm2 = vcmask 1043456   ;;  %vm936_vm3 = vcmask 60416   ;;  %vm939_vm4 = vcmask 64512  }
  0x5d   : > { %2143 = vmatpush3.bf16.msra.mxu0 %v2354_v8  ;;  %2130 = vmatprep.mubr.msk.bf16.mxu1 %vm2650_vm1, %v2649_v9  ;;  %s3275_s0 = sld [smem:[#allocation30_spill]]  ;;  %s2942_s22 = sand.u32 1, %s2625_s28   ;;  %v2021_v31 = vld [vmem:[%s3229_s4] ss:$0 sm:$0xff]  ;;  %v931_v58 = vshrl.u32 %v930_v57, 7  ;;  %v933_v59 = vand.u32 127, %v930_v57 }
  0x5e   : > { %s2018_s25 = sshll.u32 %s687_s19, 3  ;;  %2144 = vmatprep.subr.bf16.mxu0 %v2649_v9  ;;  %2146 = vmatprep.mubr.msk.bf16.mxu0 %vm2650_vm1, %v2649_v9  ;;  %s3276_s26 = sld [smem:[#allocation31_spill]]  ;;  %v2025_v37 = vld [vmem:[%s3231_s6] ss:$0 sm:$0xff]  ;;  %v2654_v60 = vmov -1e+09  }
  0x5f   : > { %s2016_s9 = sshll.u32 %s2942_s22, 4  ;;  %s2651_s23 = smov 112   ;;  %vm934_vm5 = vcmp.le.s32.totalorder %v933_v59, %v931_v58  ;;  %vm1181_vm6 = vcmask 126016   ;;  %vm1310_vm7 = vcmask 191616   ;;  %vm1439_vm8 = vcmask 257216  }
  0x60   : > { %s689_s29 = scalar_lea.vmem %s3273_s27, %s2018_s25  ;;  %s2957_s19 = scalar_lea.vmem [#allocation16], %s2016_s9  ;;  %v935_v61 = vsel %vm934_vm5, 0.0, %v2654_v60  ;;  %vm1540_vm9 = vcmask 257024   ;;  %vm1700_vm10 = vcmask 523264  }
  0x61   : > { %v2896_v0 = vld [vmem:[%s689_s29] sm:$0xff]  ;;  %v2353_v7 = vld [vmem:[%s3274_s3 + $0x8] sm:$0xff]   ;;  %2145 = vmatpush3.bf16.msra.mxu0 %v2356_v11  ;;  %s2652_s27 = smov 120   ;;  %s2976_s29 = scalar_lea.vmem [#allocation14], %s2016_s9 }
  0x62   : > { %v703_v1 = vsel %vm702_vm0, %v2896_v0, 0.0  ;;  %2127 = vmatpush3.bf16.msra.mxu1 %v2353_v7  ;;  %v2355_v10 = vld [vmem:[%s3274_s3] sm:$0xff]   ;;  %2156 = vmatprep.subr.bf16.mxu0 %v2649_v9  ;;  %s2653_s20 = smov 104   ;;  %s2655_s21 = smov 8  }
  0x63   : > { %704 = vadd.xlane.f32.xlu0 %v703_v1  ;;  %2128 = vmatprep.subr.bf16.mxu1 %v2649_v9  ;;  %v2019_v16 = vld [vmem:[%s3275_s0] ss:$0 sm:$0xff]  ;;  %s2656_s24 = smov 16   ;;  %s2657_s9 = smov 24  }
  0x64   : > { %v2020_v18 = vld [vmem:[%s3276_s26] ss:$0 sm:$0xff] }
  0x66   : > { %2129 = vmatpush3.bf16.msra.mxu1 %v2355_v10 }
  0x67   : > { %2134 = vmatprep.subr.bf16.mxu1 %v2649_v9 }
  0xec   : > { %v705_v2 = vpop.xlane.xlu0 %704 }
  0xed   : > { %v707_v3 = vmul.f32 0.03125, %v705_v2 }
  0xef   : > { %v708_v4 = vsub.f32 %v2896_v0, %v707_v3 }
  0xf1   : > { %v709_v5 = vmul.f32 %v708_v4, %v708_v4 }
  0xf3   : > { %v710_v6 = vsel %vm702_vm0, %v709_v5, 0.0 }
  0xf4   : > { %711 = vadd.xlane.f32.xlu0 %v710_v6 }
 0x17d   : > { %v712_v12 = vpop.xlane.xlu0 %711 }
 0x17e   : > { %v713_v13 = vmul.f32 0.03125, %v712_v12 }
 0x180   : > { %v714_v14 = vadd.f32 1e-05, %v713_v13 }
 0x182   : > { %2369 = vrsqrt.f32 %v714_v14 }
 0x18f   : > { %v2370_v15 = vpop.eup %2369 }
 0x190   : > { %v716_v17 = vmul.f32 %v2370_v15, %v708_v4 }
 0x192   : > { %v724_v19 = vmul.f32 %v2019_v16, %v716_v17 }
 0x194   : > { %v732_v20 = vadd.f32 %v2020_v18, %v724_v19 }
 0x196   : > { %v733_v22 = vpack.c.bf16 %v732_v20, %v732_v20 }
 0x198   : > { %2131 = vmatmul.mubr.msk.bf16.vlgmr.msra.gmra.mxu1 %vm702_vm0, %v733_v22  ;;  %2147 = vmatmul.mubr.msk.bf16.vlgmr.msra.gmra.mxu0 %vm702_vm0, %v733_v22 }
 0x199   : > { %2135 = vmatpush3.bf16.msra.mxu1 %v2357_v21  ;;  %2138 = vmatprep.mubr.msk.bf16.mxu1 %vm2650_vm1, %v2649_v9 }
 0x19a   : > { %2136 = vmatprep.subr.bf16.mxu1 %v2649_v9  ;;  %2158 = vmatprep.mubr.msk.bf16.mxu0 %vm2650_vm1, %v2649_v9 }
 0x19d   : > { %2137 = vmatpush3.bf16.msra.mxu1 %v2358_v23 }
 0x19e   : > { %2150 = vmatprep.subr.bf16.mxu1 %v2649_v9 }
 0x1a0   : > { %2139 = vmatmul.mubr.msk.bf16.vlgmr.msra.gmra.mxu1 %vm702_vm0, %v733_v22 }
 0x1a1   : > { %2152 = vmatprep.mubr.msk.bf16.mxu1 %vm2650_vm1, %v2649_v9 }
 0x258   : > { %v794_v25 = vpop.f32.mrf.mxu1  ;;  %v920_v26 = vpop.f32.mrf.mxu0 }
 0x259   : > { %v921_v27 = vadd.f32 %v2029_v24, %v920_v26  ;;  %v795_v38 = vadd.f32 %v2021_v31, %v794_v25 }
 0x25a   : > { %v2132_v28 = vpop.f32.mrf.mxu1  ;;  %v2148_v29 = vpop.f32.mrf.mxu0 }
 0x25b   : > { %v2948_v30 = vpack.c.bf16 %v921_v27, %v921_v27  ;;  %v926_v42 = vmul.f32 0.35355338, %v795_v38 }
 0x25c   : > { %v797_v32 = vpop.f32.mrf.mxu1  ;;  %v923_v33 = vpop.f32.mrf.mxu0 }
 0x25d   : > { %v1003_v34 = vsel %vm1001_vm2, %v2948_v30, 0  ;;  %938 = vst.msk [vmem:[%s2957_s19] sm:$0xf] %vm936_vm3, %v2948_v30  ;;  %v927_v47 = vpack.c.bf16 %v926_v42, %v926_v42 }
 0x25e   : > { %v2133_v35 = vpop.f32.mrf.mxu1  ;;  %v2149_v36 = vpop.f32.mrf.mxu0  ;;  %2157 = vmatpush3.bf16.msra.mxu0 %v1003_v34 }
 0x25f   : > { %2168 = vmatprep.subr.bf16.mxu0 %v2649_v9 }
 0x260   : > { %v857_v39 = vpop.f32.mrf.mxu1 }
 0x261   : > { %v858_v40 = vadd.f32 %v2025_v37, %v857_v39 }
 0x262   : > { %v2140_v41 = vpop.f32.mrf.mxu1 }
 0x263   : > { %v2966_v43 = vpack.c.bf16 %v858_v40, %v858_v40 }
 0x264   : > { %v860_v44 = vpop.f32.mrf.mxu1 }
 0x265   : > { %1195 = vrot.lane.b32.xlu0 %v2966_v43, %s2651_s23  ;;  %1066 = vrot.lane.b32.xlu1 %v2966_v43, %s2652_s27  ;;  %v944_v45 = vsel %vm939_vm4, %v2966_v43, 0  ;;  %937 = vst.msk [vmem:[%s2976_s29] sm:$0xf] %vm936_vm3, %v2966_v43 }
 0x266   : > { %v2141_v46 = vpop.f32.mrf.mxu1  ;;  %2151 = vmatpush3.bf16.xpose.msra.mxu1 %v944_v45 }
 0x267   : > { %2162 = vmatprep.subr.bf16.mxu1 %v2649_v9 }
 0x269   : > { %1064 = vrot.lane.b32.xlu1 %v927_v47, %s2652_s27 }
 0x26d   : > { %1193 = vrot.lane.b32.xlu1 %v927_v47, %s2651_s23  ;;  %2153 = vmatmul.mubr.msk.bf16.vlgmr.msra.gmra.mxu1 %vm939_vm4, %v927_v47 }
 0x26e   : > { %2164 = vmatprep.mubr.msk.bf16.mxu1 %vm2650_vm1, %v2649_v9 }
 0x271   : > { %1324 = vrot.lane.b32.xlu1 %v2966_v43, %s2653_s20 }
 0x275   : > { %1322 = vrot.lane.b32.xlu1 %v927_v47, %s2653_s20 }
 0x2d7   : > { %v1067_v48 = vpop.permute.xlu1 %1066  ;;  %v1196_v51 = vpop.permute.xlu0 %1195 }
 0x2d8   : > { %v1072_v49 = vsel %vm939_vm4, %v1067_v48, 0  ;;  %v1201_v53 = vsel %vm939_vm4, %v1196_v51, 0 }
 0x2d9   : > { %2163 = vmatpush3.bf16.xpose.msra.mxu1 %v1072_v49 }
 0x2da   : > { %2174 = vmatprep.subr.bf16.mxu1 %v2649_v9 }
 0x2db   : > { %v1065_v50 = vpop.permute.xlu1 %1064 }
 0x2df   : > { %v1194_v52 = vpop.permute.xlu1 %1193 }
 0x2e0   : > { %2165 = vmatmul.mubr.msk.bf16.vlgmr.msra.gmra.mxu1 %vm939_vm4, %v1065_v50 }
 0x2e1   : > { %2175 = vmatpush3.bf16.xpose.msra.mxu1 %v1201_v53  ;;  %2176 = vmatprep.mubr.msk.bf16.mxu1 %vm2650_vm1, %v2649_v9 }
 0x2e2   : > { %2186 = vmatprep.subr.bf16.mxu1 %v2649_v9 }
 0x2e3   : > { %v1325_v54 = vpop.permute.xlu1 %1324 }
 0x2e4   : > { %v1330_v55 = vsel %vm939_vm4, %v1325_v54, 0 }
 0x2e7   : > { %v1323_v56 = vpop.permute.xlu1 %1322 }
 0x2e8   : > { %2177 = vmatmul.mubr.msk.bf16.vlgmr.msra.gmra.mxu1 %vm939_vm4, %v1194_v52 }
 0x2e9   : > { %2187 = vmatpush3.bf16.xpose.msra.mxu1 %v1330_v55  ;;  %2188 = vmatprep.mubr.msk.bf16.mxu1 %vm2650_vm1, %v2649_v9 }
 0x2ea   : > { %2198 = vmatprep.subr.bf16.mxu1 %v2649_v9 }
 0x2f0   : > { %2189 = vmatmul.mubr.msk.bf16.vlgmr.msra.gmra.mxu1 %vm939_vm4, %v1323_v56 }
 0x2f1   : > { %2202 = vmatprep.mubr.msk.bf16.mxu1 %vm2650_vm1, %v2649_v9 }
 0x32d   : > { %v980_v62 = vpop.f32.mrf.mxu1 }
 0x32e   : > { %v981_v63 = vadd.f32 %v980_v62, %v935_v61 }
 0x32f   : > { %v2154_v1 = vpop.f32.mrf.mxu1 }
 0x330   : > { %v986_v2 = vsel %vm939_vm4, %v981_v63, -inf }
 0x331   : > { %987 = vmax.xlane.f32.xlu1 %v986_v2  ;;  %v983_v3 = vpop.f32.mrf.mxu1 }
 0x333   : > { %v2155_v4 = vpop.f32.mrf.mxu1 }
 0x3a0   : > { %v1108_v5 = vpop.f32.mrf.mxu1 }
 0x3a1   : > { %v1109_v6 = vadd.f32 %v1108_v5, %v935_v61 }
 0x3a2   : > { %v2166_v7 = vpop.f32.mrf.mxu1 }
 0x3a3   : > { %v1114_v8 = vsel %vm939_vm4, %v1109_v6, -inf }
 0x3a4   : > { %1115 = vmax.xlane.f32.xlu0 %v1114_v8  ;;  %v1111_v10 = vpop.f32.mrf.mxu1 }
 0x3a6   : > { %v2167_v11 = vpop.f32.mrf.mxu1 }
 0x3a8   : > { %v1237_v12 = vpop.f32.mrf.mxu1 }
 0x3a9   : > { %v1238_v13 = vadd.f32 %v1237_v12, %v935_v61 }
 0x3aa   : > { %v2178_v14 = vpop.f32.mrf.mxu1 }
 0x3ab   : > { %v1243_v15 = vsel %vm939_vm4, %v1238_v13, -inf }
 0x3ac   : > { %1244 = vmax.xlane.f32.xlu1 %v1243_v15  ;;  %v1240_v16 = vpop.f32.mrf.mxu1 }
 0x3ae   : > { %v2179_v17 = vpop.f32.mrf.mxu1 }
 0x3b0   : > { %v1366_v18 = vpop.f32.mrf.mxu1 }
 0x3b1   : > { %v1367_v19 = vadd.f32 %v1366_v18, %v935_v61 }
 0x3b2   : > { %v2190_v20 = vpop.f32.mrf.mxu1 }
 0x3b3   : > { %v1372_v21 = vsel %vm939_vm4, %v1367_v19, -inf }
 0x3b4   : > { %1373 = vmax.xlane.f32.xlu1 %v1372_v21  ;;  %v1369_v22 = vpop.f32.mrf.mxu1  ;;  %v2359_v21 = vld [vmem:[#allocation8 + $0x8] sm:$0xff]  }
 0x3b5   : > { %2199 = vmatpush3.bf16.msra.mxu1 %v2359_v21  ;;  %v2360_v22 = vld [vmem:[#allocation8] sm:$0xff]  }
 0x3b6   : > { %v2191_v23 = vpop.f32.mrf.mxu1  ;;  %2200 = vmatprep.subr.bf16.mxu1 %v2649_v9 }
 0x3b9   : > { %2201 = vmatpush3.bf16.msra.mxu1 %v2360_v22 }
 0x3ba   : > { %v988_v24 = vpop.xlane.xlu1 %987  ;;  %2214 = vmatprep.subr.bf16.mxu1 %v2649_v9 }
 0x3bb   : > { %v989_v25 = vsub.f32 %v981_v63, %v988_v24 }
 0x3bd   : > { %v990_v26 = vmul.f32 1.442695, %v989_v25 }
 0x3bf   : > { %2371 = vpow2.f32 %v990_v26 }
 0x3cc   : > { %v2372_v27 = vpop.eup %2371 }
 0x3cd   : > { %v992_v28 = vsel %vm939_vm4, %v2372_v27, 0.0 }
 0x3ce   : > { %993 = vadd.xlane.f32.xlu0 %v992_v28 }
 0x42d   : > { %v1116_v29 = vpop.xlane.xlu0 %1115 }
 0x42e   : > { %v1117_v31 = vsub.f32 %v1109_v6, %v1116_v29 }
 0x430   : > { %v1118_v32 = vmul.f32 1.442695, %v1117_v31 }
 0x432   : > { %2373 = vpow2.f32 %v1118_v32 }
 0x435   : > { %v1245_v33 = vpop.xlane.xlu1 %1244 }
 0x436   : > { %v1246_v34 = vsub.f32 %v1238_v13, %v1245_v33  ;;  %v2052_v33 = vld [vmem:[%s3235_s10] ss:$0 sm:$0xff] }
 0x438   : > { %v1247_v35 = vmul.f32 1.442695, %v1246_v34 }
 0x43a   : > { %2375 = vpow2.f32 %v1247_v35 }
 0x43d   : > { %v1374_v41 = vpop.xlane.xlu1 %1373 }
 0x43e   : > { %v1375_v42 = vsub.f32 %v1367_v19, %v1374_v41 }
 0x43f   : > { %v2374_v36 = vpop.eup %2373 }
 0x440   : > { %v1120_v37 = vsel %vm939_vm4, %v2374_v36, 0.0  ;;  %v1376_v44 = vmul.f32 1.442695, %v1375_v42 }
 0x441   : > { %1121 = vadd.xlane.f32.xlu1 %v1120_v37 }
 0x447   : > { %v2376_v38 = vpop.eup %2375 }
 0x448   : > { %v1249_v39 = vsel %vm939_vm4, %v2376_v38, 0.0 }
 0x449   : > { %1250 = vadd.xlane.f32.xlu0 %v1249_v39 }
 0x452   : > { %1255 = vrot.lane.b32.xlu1 %v2948_v30, %s2651_s23 }
 0x457   : > { %v994_v40 = vpop.xlane.xlu0 %993 }
 0x458   : > { %2377 = vrcp.f32 %v994_v40 }
 0x459   : > { %2379 = vpow2.f32 %v1376_v44 }
 0x45f   : > { %1126 = vrot.lane.b32.xlu0 %v2948_v30, %s2652_s27 }
 0x465   : > { %v2378_v45 = vpop.eup %2377 }
 0x466   : > { %v996_v46 = vmul.f32 %v2378_v45, %v2372_v27  ;;  %v2380_v48 = vpop.eup %2379 }
 0x467   : > { %v1378_v49 = vsel %vm939_vm4, %v2380_v48, 0.0 }
 0x468   : > { %v997_v47 = vpack.c.bf16 %v996_v46, %v996_v46 }
 0x46a   : > { %2159 = vmatmul.mubr.msk.bf16.vlgmr.msra.gmra.mxu0 %vm939_vm4, %v997_v47 }
 0x46b   : > { %2170 = vmatprep.mubr.msk.bf16.mxu0 %vm2650_vm1, %v2649_v9 }
 0x476   : > { %1379 = vadd.xlane.f32.xlu1 %v1378_v49  ;;  %v2361_v49 = vld [vmem:[#allocation10 + $0x8] sm:$0xff]  }
 0x487   : > { %1384 = vrot.lane.b32.xlu1 %v2948_v30, %s2653_s20 }
 0x4ca   : > { %v1122_v50 = vpop.xlane.xlu1 %1121 }
 0x4cb   : > { %2381 = vrcp.f32 %v1122_v50  ;;  %v2362_v50 = vld [vmem:[#allocation11 + $0x8] sm:$0xff]  }
 0x4ce   : > { %v1256_v56 = vpop.permute.xlu1 %1255 }
 0x4cf   : > { %v1261_v58 = vsel %vm1001_vm2, %v1256_v56, 0 }
 0x4d2   : > { %v1251_v51 = vpop.xlane.xlu0 %1250 }
 0x4d3   : > { %2383 = vrcp.f32 %v1251_v51  ;;  %v2363_v51 = vld [vmem:[#allocation10] sm:$0xff]  }
 0x4d6   : > { %v1127_v52 = vpop.permute.xlu0 %1126 }
 0x4d7   : > { %v1132_v53 = vsel %vm1001_vm2, %v1127_v52, 0  ;;  %v2364_v52 = vld [vmem:[#allocation11] sm:$0xff]  }
 0x4d8   : > { %v2382_v54 = vpop.eup %2381  ;;  %2169 = vmatpush3.bf16.msra.mxu0 %v1132_v53 }
 0x4d9   : > { %2180 = vmatprep.subr.bf16.mxu0 %v2649_v9  ;;  %v1124_v55 = vmul.f32 %v2382_v54, %v2374_v36 }
 0x4db   : > { %v1125_v57 = vpack.c.bf16 %v1124_v55, %v1124_v55 }
 0x4dd   : > { %2171 = vmatmul.mubr.msk.bf16.vlgmr.msra.gmra.mxu0 %vm939_vm4, %v1125_v57 }
 0x4de   : > { %2181 = vmatpush3.bf16.msra.mxu0 %v1261_v58  ;;  %2182 = vmatprep.mubr.msk.bf16.mxu0 %vm2650_vm1, %v2649_v9  ;;  %v2056_v58 = vld [vmem:[%s3236_s11] ss:$0 sm:$0xff] }
 0x4df   : > { %2192 = vmatprep.subr.bf16.mxu0 %v2649_v9 }
 0x4e0   : > { %v2384_v59 = vpop.eup %2383 }
 0x4e1   : > { %v1253_v60 = vmul.f32 %v2384_v59, %v2376_v38 }
 0x4e3   : > { %v1254_v61 = vpack.c.bf16 %v1253_v60, %v1253_v60  ;;  %v2057_v60 = vld [vmem:[%s3237_s12] ss:$0 sm:$0xff] }
 0x4e5   : > { %2183 = vmatmul.mubr.msk.bf16.vlgmr.msra.gmra.mxu0 %vm939_vm4, %v1254_v61 }
 0x4e6   : > { %2194 = vmatprep.mubr.msk.bf16.mxu0 %vm2650_vm1, %v2649_v9 }
 0x4ff   : > { %v1380_v62 = vpop.xlane.xlu1 %1379 }
 0x500   : > { %2385 = vrcp.f32 %v1380_v62 }
 0x503   : > { %v1385_v63 = vpop.permute.xlu1 %1384 }
 0x504   : > { %v1390_v1 = vsel %vm1001_vm2, %v1385_v63, 0 }
 0x505   : > { %2193 = vmatpush3.bf16.msra.mxu0 %v1390_v1 }
 0x506   : > { %2206 = vmatprep.subr.bf16.mxu0 %v2649_v9 }
 0x50d   : > { %v2386_v2 = vpop.eup %2385 }
 0x50e   : > { %v1382_v3 = vmul.f32 %v2386_v2, %v2380_v48  ;;  %v2365_v2 = vld [vmem:[%s3240_s15 + $0x18] sm:$0xff]  }
 0x510   : > { %v1383_v4 = vpack.c.bf16 %v1382_v3, %v1382_v3  ;;  %v2366_v3 = vld [vmem:[%s3240_s15 + $0x10] sm:$0xff]  }
 0x512   : > { %2195 = vmatmul.mubr.msk.bf16.vlgmr.msra.gmra.mxu0 %vm939_vm4, %v1383_v4  ;;  %v2367_v4 = vld [vmem:[%s3240_s15 + $0x8] sm:$0xff]  }
 0x513   : > { %2210 = vmatprep.mubr.msk.bf16.mxu0 %vm2650_vm1, %v2649_v9  ;;  %2207 = vmatpush3.bf16.msra.mxu0 %v2361_v49 }
 0x514   : > { %2208 = vmatprep.subr.bf16.mxu0 %v2649_v9 }
 0x517   : > { %2209 = vmatpush3.bf16.msra.mxu0 %v2363_v51 }
 0x518   : > { %2222 = vmatprep.subr.bf16.mxu0 %v2649_v9 }
 0x52a   : > { %v1039_v5 = vpop.f32.mrf.mxu0 }
 0x52b   : > { %v1045_v6 = vpack.c.bf16 %v1039_v5, %v1039_v5  ;;  %v2368_v5 = vld [vmem:[%s3240_s15] sm:$0xff]  }
 0x52c   : > { %v2160_v7 = vpop.f32.mrf.mxu0 }
 0x52d   : > { %1046 = vst.msk [vmem:[#allocation4] sm:$0xf] %vm936_vm3, %v1045_v6 }
 0x52e   : > { %v1042_v8 = vpop.f32.mrf.mxu0 }
 0x530   : > { %v2161_v10 = vpop.f32.mrf.mxu0 }
 0x59d   : > { %v1168_v11 = vpop.f32.mrf.mxu0 }
 0x59e   : > { %v2082_v12 = vpack.c.bf16 %v1168_v11, %v1168_v11 }
 0x59f   : > { %v2172_v13 = vpop.f32.mrf.mxu0 }
 0x5a0   : > { %1178 = vrot.lane.b32.xlu0 %v2082_v12, %s2655_s21  ;;  %s3253_s21 = sshll.u32 %s2633_s30, 8 }
 0x5a1   : > { %v1171_v14 = vpop.f32.mrf.mxu0  ;;  %s3113_s16 = scalar_lea.hbm %s3242_s17, %s3253_s21 }
 0x5a3   : > { %v2173_v15 = vpop.f32.mrf.mxu0 }
 0x5a5   : > { %v1297_v16 = vpop.f32.mrf.mxu0 }
 0x5a6   : > { %v2083_v17 = vpack.c.bf16 %v1297_v16, %v1297_v16 }
 0x5a7   : > { %v2184_v18 = vpop.f32.mrf.mxu0 }
 0x5a8   : > { %1307 = vrot.lane.b32.xlu1 %v2083_v17, %s2656_s24 }
 0x5a9   : > { %v1300_v19 = vpop.f32.mrf.mxu0 }
 0x5ab   : > { %v2185_v20 = vpop.f32.mrf.mxu0 }
 0x5d2   : > { %v1426_v23 = vpop.f32.mrf.mxu0 }
 0x5d3   : > { %v2084_v24 = vpack.c.bf16 %v1426_v23, %v1426_v23 }
 0x5d4   : > { %v2196_v25 = vpop.f32.mrf.mxu0 }
 0x5d5   : > { %1436 = vrot.lane.b32.xlu0 %v2084_v24, %s2657_s9 }
 0x5d6   : > { %v1429_v26 = vpop.f32.mrf.mxu0 }
 0x5d8   : > { %v2197_v27 = vpop.f32.mrf.mxu0 }
 0x612   : > { %v1179_v28 = vpop.permute.xlu0 %1178 }
 0x613   : > { %1182 = vst.msk [vmem:[#allocation4] sm:$0xf] %vm1181_vm6, %v1179_v28 }
 0x61a   : > { %v1308_v29 = vpop.permute.xlu1 %1307 }
 0x61b   : > { %1311 = vst.msk [vmem:[#allocation4] sm:$0xf] %vm1310_vm7, %v1308_v29 }
 0x647   : > { %v1437_v31 = vpop.permute.xlu0 %1436 }
 0x648   : > { %1440 = vst.msk [vmem:[#allocation4] sm:$0xf] %vm1439_vm8, %v1437_v31 }
 0x64f   : > { %v1441_v32 = vld [vmem:[#allocation4] sm:$0xf] }
 0x650   : > { %2203 = vmatmul.mubr.msk.bf16.vlgmr.msra.gmra.mxu1 %vm702_vm0, %v1441_v32 }
 0x651   : > { %2218 = vmatprep.mubr.msk.bf16.mxu1 %vm2650_vm1, %v2649_v9  ;;  %2215 = vmatpush3.bf16.msra.mxu1 %v2362_v50 }
 0x652   : > { %2216 = vmatprep.subr.bf16.mxu1 %v2649_v9 }
 0x655   : > { %2217 = vmatpush3.bf16.msra.mxu1 %v2364_v52 }
 0x710   : > { %v1502_v34 = vpop.f32.mrf.mxu1 }
 0x711   : > { %v1503_v35 = vadd.f32 %v2052_v33, %v1502_v34 }
 0x712   : > { %v2204_v36 = vpop.f32.mrf.mxu1 }
 0x713   : > { %v1508_v37 = vadd.f32 %v1503_v35, %v2896_v0 }
 0x714   : > { %v1505_v38 = vpop.f32.mrf.mxu1 }
 0x715   : > { %1509 = vst.msk [vmem:[#allocation2] sm:$0xff] %vm702_vm0, %v1508_v37  ;;  %v1510_v39 = vsel %vm702_vm0, %v1508_v37, 0.0 }
 0x716   : > { %1511 = vadd.xlane.f32.xlu1 %v1510_v39  ;;  %v2205_v40 = vpop.f32.mrf.mxu1 }
 0x727   : > { %1183 = vrot.lane.b32.xlu1 %v2966_v43, %s2651_s23 }
 0x72b   : > { %1312 = vrot.lane.b32.xlu1 %v2966_v43, %s2653_s20 }
 0x72f   : > { %1188 = vrot.lane.b32.xlu1 %v2948_v30, %s2651_s23  ;;  %s1794_s23 = sshll.u32 %s2976_s29, 4  ;;  %s3103_s23 = int_to_ptr.vmem [resolvable:$true] %s1794_s23 }
 0x730   : > { %s2497_s25 = scalar_lea.vmem %s3103_s23, 256 }
 0x731   : > { %p2498_p11 = scmp.ne.s32.totalorder %s3103_s23, %s2497_s25 }
 0x733   : > { %p2499_p13 = pnand %p2498_p11, %p2801_p4 }
 0x735   : > { %p2500_p0 = pneg %p2499_p13 }
 0x79f   : > { %v1512_v41 = vpop.xlane.xlu1 %1511 }
 0x7a0   : > { %v1513_v0 = vmul.f32 0.03125, %v1512_v41 }
 0x7a2   : > { %v1514_v42 = vsub.f32 %v1508_v37, %v1513_v0 }
 0x7a3   : > { %v1184_v44 = vpop.permute.xlu1 %1183 }
 0x7a4   : > { %2042 = vst.msk [vmem:[%s2976_s29 + $0x8] sm:$0xf] %vm936_vm3, %v1184_v44  ;;  %v1515_v45 = vmul.f32 %v1514_v42, %v1514_v42 }
 0x7a6   : > { %v1516_v46 = vsel %vm702_vm0, %v1515_v45, 0.0 }
 0x7a7   : > { %1517 = vadd.xlane.f32.xlu0 %v1516_v46  ;;  %v1313_v47 = vpop.permute.xlu1 %1312 }
 0x7a8   : > { %2047 = vst.msk [vmem:[%s2976_s29 + $0xc] sm:$0xf] %vm936_vm3, %v1313_v47 }
 0x7ab   : > { %v1189_v48 = vpop.permute.xlu1 %1188 }
 0x7ac   : > { %2043 = vst.msk [vmem:[%s2957_s19 + $0x8] sm:$0xf] %vm936_vm3, %v1189_v48 }
 0x7bd   : > { %1050 = vrot.lane.b32.xlu0 %v2966_v43, %s2652_s27 }
 0x7c1   : > { %1058 = vrot.lane.b32.xlu0 %v2948_v30, %s2652_s27  ;;  %s1810_s27 = sshll.u32 %s2957_s19, 4  ;;  %s3143_s27 = int_to_ptr.vmem [resolvable:$true] %s1810_s27 }
 0x7c5   : > { %1317 = vrot.lane.b32.xlu0 %v2948_v30, %s2653_s20  ;;  %s1762_s20 = sand.u32 1, %s2789_s1  }
 0x7c6   : > { %s3115_s0 = scalar_lea.sflag [#allocation15], %s1762_s20 }
 0x830   : > { %v1518_v43 = vpop.xlane.xlu0 %1517 }
 0x831   : > { %v1519_v53 = vmul.f32 0.03125, %v1518_v43 }
 0x833   : > { %v1520_v30 = vadd.f32 1e-05, %v1519_v53 }
 0x834   : > { %v1051_v54 = vpop.permute.xlu0 %1050 }
 0x835   : > { %2387 = vrsqrt.f32 %v1520_v30  ;;  %2036 = vst.msk [vmem:[%s2976_s29 + $0x4] sm:$0xf] %vm936_vm3, %v1051_v54  ;;  %s2658_s29 = smov [#allocation14]  }
 0x836   : > { %s2501_s26 = sshll.u32 %s2658_s29, 4  ;;  %s2502_s26 = int_to_ptr.vmem [resolvable:$false] %s2501_s26 }
 0x837   : > { %s2503_s3 = scalar_lea.vmem %s2502_s26, 512  ;;  %p2504_p6 = scmp.lt.s32.totalorder %s3103_s23, %s2502_s26 }
 0x838   : > { %v1059_v55 = vpop.permute.xlu0 %1058  ;;  %p2505_p7 = scmp.lt.s32.totalorder %s2503_s3, %s2497_s25 }
 0x839   : > { %2038 = vst.msk [vmem:[%s2957_s19 + $0x4] sm:$0xf] %vm936_vm3, %v1059_v55 }
 0x83a   : > { %p2506_p9 = por %p2505_p7, %p2504_p6 }
 0x83c   : > { %v1318_v56 = vpop.permute.xlu0 %1317  ;;  %p2507_p12 = pnand %p2506_p9, %p2500_p0 }
 0x83d   : > { %2048 = vst.msk [vmem:[%s2957_s19 + $0xc] sm:$0xf] %vm936_vm3, %v1318_v56 }
 0x842   : > { %v2388_v57 = vpop.eup %2387 }
 0x843   : > { %v1522_v59 = vmul.f32 %v2388_v57, %v1514_v42 }
 0x845   : > { %v1530_v61 = vmul.f32 %v2056_v58, %v1522_v59 }
 0x847   : > { %v1538_v62 = vadd.f32 %v2057_v60, %v1530_v61 }
 0x849   : > { %v1539_v63 = vpack.c.bf16 %v1538_v62, %v1538_v62 }
 0x84b   : > { %1541 = vst.msk [vmem:[#allocation3] sm:$0xf] %vm1540_vm9, %v1539_v63 }
 0x852   : > { %v1542_v1 = vld [vmem:[#allocation3] sm:$0xf] }
 0x853   : > { %2211 = vmatmul.mubr.msk.bf16.vlgmr.msra.gmra.mxu0 %vm702_vm0, %v1542_v1  ;;  %2219 = vmatmul.mubr.msk.bf16.vlgmr.msra.gmra.mxu1 %vm702_vm0, %v1542_v1 }
 0x854   : > { %2230 = vmatprep.mubr.msk.bf16.mxu0 %vm2650_vm1, %v2649_v9  ;;  %2223 = vmatpush3.bf16.msra.mxu0 %v2365_v2 }
 0x855   : > { %2224 = vmatprep.subr.bf16.mxu0 %v2649_v9 }
 0x858   : > { %2225 = vmatpush3.bf16.msra.mxu0 %v2366_v3 }
 0x859   : > { %2226 = vmatprep.subr.bf16.mxu0 %v2649_v9 }
 0x85c   : > { %2227 = vmatpush3.bf16.msra.mxu0 %v2367_v4 }
 0x85d   : > { %2228 = vmatprep.subr.bf16.mxu0 %v2649_v9 }
 0x860   : > { %2229 = vmatpush3.bf16.msra.mxu0 %v2368_v5 }
 0x913   : > { %v1597_v6 = vpop.f32.mrf.mxu0  ;;  %v1653_v7 = vpop.f32.mrf.mxu1 }
 0x914   : > { %v2064_v8 = vmul.f32 -1.442695, %v1597_v6 }
 0x915   : > { %v2212_v10 = vpop.f32.mrf.mxu0  ;;  %v2220_v11 = vpop.f32.mrf.mxu1 }
 0x916   : > { %2389 = vpow2.f32 %v2064_v8 }
 0x917   : > { %v1600_v12 = vpop.f32.mrf.mxu0  ;;  %v1656_v13 = vpop.f32.mrf.mxu1 }
 0x919   : > { %v2213_v14 = vpop.f32.mrf.mxu0  ;;  %v2221_v9 = vpop.f32.mrf.mxu1 }
 0x923   : > { %v2390_v15 = vpop.eup %2389 }
 0x924   : > { %v1662_v16 = vadd.f32 1.0, %v2390_v15 }
 0x926   : > { %2391 = vrcp.f32 %v1662_v16 }
 0x933   : > { %v2392_v17 = vpop.eup %2391 }
 0x934   : > { %v1665_v18 = vmul.f32 %v2392_v17, %v1597_v6 }
 0x936   : > { %v1666_v19 = vmul.f32 %v1665_v18, %v1653_v7 }
 0x938   : > { %v1667_v20 = vpack.c.bf16 %v1666_v19, %v1666_v19 }
 0x93a   : > { %2231 = vmatmul.mubr.msk.bf16.vlgmr.msra.gmra.mxu0 %vm1700_vm10, %v1667_v20 }
 0x93b   : > { %2510 = shalt.err (!%p2507_p12)
}
 0x93c   : > { %s2511_s1 = scalar_lea.hbm %s3113_s16, 256  ;;  %s2515_s9 = scalar_lea.hbm %s3242_s17, 512 }
 0x93d   : > { %p2512_p2 = scmp.ne.s32.totalorder %s3113_s16, %s2511_s1  ;;  %p2516_p5 = scmp.lt.s32.totalorder %s3113_s16, %s3242_s17 }
 0x93e   : > { %p2517_p10 = scmp.lt.s32.totalorder %s2515_s9, %s2511_s1 }
 0x93f   : > { %p2513_p1 = pnand %p2512_p2, %p2801_p4 }
 0x940   : > { %p2518_p11 = por %p2517_p10, %p2516_p5 }
 0x941   : > { %p2514_p3 = pneg %p2513_p1 }
 0x943   : > { %p2519_p13 = pnand %p2518_p11, %p2514_p3 }
 0x945   : > { %2522 = shalt.err (!%p2519_p13)
}
 0x946   : > { %s3254_s3 = smov 64   ;;  %s2660_s25 = smov 4  }
 0x947   : > { %2251 = dma.vmem_to_hbm [thread:$0]  (%p2801_p4), %s3103_s23, 256, %s3113_s16, %s3115_s0, %s3254_s3, %s3254_s3, %s2660_s25  }
 0x948   : > { %s3277_s21 = sshll.u32 %s2633_s30, 8  ;;  %s2523_s24 = scalar_lea.vmem %s3143_s27, 256 }
 0x949   : > { %s1809_s20 = scalar_lea.hbm %s3243_s18, %s3277_s21  ;;  %p2524_p0 = scmp.ne.s32.totalorder %s3143_s27, %s2523_s24 }
 0x94a   : > { %s2661_s9 = smov [#allocation16]  }
 0x94b   : > { %p2525_p6 = pnand %p2524_p0, %p2801_p4  ;;  %s2527_s29 = sshll.u32 %s2661_s9, 4  ;;  %s2528_s29 = int_to_ptr.vmem [resolvable:$false] %s2527_s29 }
 0x94c   : > { %s2529_s23 = scalar_lea.vmem %s2528_s29, 512  ;;  %p2530_p9 = scmp.lt.s32.totalorder %s3143_s27, %s2528_s29 }
 0x94d   : > { %p2526_p7 = pneg %p2525_p6  ;;  %p2531_p12 = scmp.lt.s32.totalorder %s2529_s23, %s2523_s24 }
 0x94f   : > { %p2532_p2 = por %p2531_p12, %p2530_p9 }
 0x951   : > { %p2533_p1 = pnand %p2532_p2, %p2526_p7 }
 0x953   : > { %2536 = shalt.err (!%p2533_p1)
}
 0x954   : > { %s2537_s19 = scalar_lea.hbm %s1809_s20, 256  ;;  %s2541_s26 = scalar_lea.hbm %s3243_s18, 512 }
 0x955   : > { %p2538_p3 = scmp.ne.s32.totalorder %s1809_s20, %s2537_s19  ;;  %p2542_p11 = scmp.lt.s32.totalorder %s1809_s20, %s3243_s18 }
 0x956   : > { %p2543_p13 = scmp.lt.s32.totalorder %s2541_s26, %s2537_s19 }
 0x957   : > { %p2539_p5 = pnand %p2538_p3, %p2801_p4 }
 0x958   : > { %p2544_p0 = por %p2543_p13, %p2542_p11 }
 0x959   : > { %p2540_p10 = pneg %p2539_p5 }
 0x95b   : > { %p2545_p6 = pnand %p2544_p0, %p2540_p10 }
 0x95d   : > { %2548 = shalt.err (!%p2545_p6)
}
 0x95e   : > { %s3278_s24 = smov 64   ;;  %s2015_s9 = sshll.u32 %s2942_s22, 3  ;;  %v1747_v22 = vld [vmem:[#allocation2] sm:$0xff] }
 0x95f   : > { %2252 = dma.vmem_to_hbm [thread:$0]  (%p2801_p4), %s3143_s27, 256, %s1809_s20, %s3115_s0, %s3278_s24, %s3278_s24, %s2660_s25  }
 0x960   : > { %s2073_s29 = sshll.u32 %s2633_s30, 7  ;;  %s671_s3 = scalar_lea.vmem [#allocation13], %s2015_s9 }
 0x961   : > { %s1781_s23 = sshll.u32 %s671_s3, 4  ;;  %s3279_s21 = sld [smem:[#allocation34_spill]]  ;;  %s3177_s23 = int_to_ptr.vmem [resolvable:$true] %s1781_s23 }
 0x962   : > { %s1758_s30 = scalar_lea.sflag [#allocation7], %s2942_s22  ;;  %s2549_s27 = scalar_lea.vmem %s3177_s23, 128 }
 0x963   : > { %p2550_p7 = scmp.ne.s32.totalorder %s3177_s23, %s2549_s27  ;;  %s2662_s0 = smov [#allocation13]  }
 0x964   : > { %s2553_s25 = sshll.u32 %s2662_s0, 4  ;;  %s2554_s25 = int_to_ptr.vmem [resolvable:$false] %s2553_s25 }
 0x965   : > { %p2551_p9 = pnand %p2550_p7, %p2801_p4  ;;  %s2555_s20 = scalar_lea.vmem %s2554_s25, 256 }
 0x966   : > { %p2556_p2 = scmp.lt.s32.totalorder %s3177_s23, %s2554_s25  ;;  %p2557_p1 = scmp.lt.s32.totalorder %s2555_s20, %s2549_s27 }
 0x967   : > { %s3175_s26 = scalar_lea.hbm %s3279_s21, %s2073_s29  ;;  %p2552_p12 = pneg %p2551_p9 }
 0x968   : > { %p2558_p3 = por %p2557_p1, %p2556_p2 }
 0x96a   : > { %p2559_p5 = pnand %p2558_p3, %p2552_p12 }
 0x9fa   : > { %v1738_v21 = vpop.f32.mrf.mxu0 }
 0x9fb   : > { %v1748_v23 = vadd.f32 %v1747_v22, %v1738_v21 }
 0x9fc   : > { %v2232_v24 = vpop.f32.mrf.mxu0 }
 0x9fd   : > { %1749 = vst.msk [vmem:[%s671_s3] sm:$0xff] %vm702_vm0, %v1748_v23 }
 0x9fe   : > { %v1741_v25 = vpop.f32.mrf.mxu0 }
 0x9ff   : > { %2562 = shalt.err (!%p2559_p5)
}
 0xa00   : > { %s2563_s1 = scalar_lea.hbm %s3175_s26, 128  ;;  %s2567_s9 = scalar_lea.hbm %s3279_s21, 256 }
 0xa01   : > { %p2564_p10 = scmp.ne.s32.totalorder %s3175_s26, %s2563_s1  ;;  %p2568_p0 = scmp.lt.s32.totalorder %s3175_s26, %s3279_s21 }
 0xa02   : > { %p2569_p6 = scmp.lt.s32.totalorder %s2567_s9, %s2563_s1 }
 0xa03   : > { %p2565_p11 = pnand %p2564_p10, %p2801_p4 }
 0xa04   : > { %p2570_p7 = por %p2569_p6, %p2568_p0 }
 0xa05   : > { %p2566_p13 = pneg %p2565_p11 }
 0xa07   : > { %p2571_p9 = pnand %p2570_p7, %p2566_p13 }
 0xa09   : > { %2574 = shalt.err (!%p2571_p9)
}
 0xa0a   : > { %2250 = dma.vmem_to_hbm [thread:$0]  (%p2801_p4), %s3177_s23, 128, %s3175_s26, %s1758_s30   ;;  %v2233_v26 = vpop.f32.mrf.mxu0 }
 0xa0b PF: > { %s3280_s19 = sld [smem:[#allocation25_spill]] }
 0xa0c   : > { %s3281_s16 = sld [smem:[#allocation22_spill]] }
 0xa11   : > { %p2287_p12 = scmp.ge.s32.totalorder %s3280_s19, 2 }
 0xa12   : > { %s1825_s0 = sand.u32 1, %s3281_s16  }
 0xa13   : > { %p2270_p2 = pnand %p2287_p12, %p2810_p8  ;;  %s1826_s25 = scalar_lea.sflag [#allocation7], %s1825_s0 }
 0xa15   : > { %p2271_p1 = pneg %p2270_p2 }
 0xa17   : > { %2612 = dma.done.wait (%p2271_p1), %s1826_s25, 128  }
 0xa18   : > { %2614 = vsyncadd (%p2271_p1), %s1826_s25, 4294967168  ;;  %s3283_s20 = sadd.s32 4294967294, %s3280_s19  }
 0xa19   : > { %s1834_s1 = sand.u32 1, %s3283_s20  }
 0xa1a   : > { %s1835_s2 = scalar_lea.sflag [#allocation15], %s1834_s1 }
 0xa1b   : > { %2616 = dma.done.wait (%p2271_p1), %s1835_s2, 512  }
 0xa1c   : > { %2618 = vsyncadd (%p2271_p1), %s1835_s2, 4294966784  ;;  %s38_s19 = sadd.s32 1, %s3280_s19   ;;  %s3284_s23 = sld [smem:[#allocation23_spill]] }
 0xa1d   : > { %p35_p4 = scmp.ge.s32.totalorder %s38_s19, 4   ;;  %s3285_s29 = sld [smem:[#allocation28_spill]] }
 0xa1e   : > { %s3286_s30 = sld [smem:[#allocation24_spill]]  ;;  %s3288_s27 = smov %s2625_s28 }
 0xa1f   : > { %s3287_s0 = sld [smem:[#allocation26_spill]]  ;;  %37 = sbr.rel (!%p35_p4) target bundleno = 16 (0x10), region = 191 }
 0xa22   : > { %s3289_s28 = smov %s3284_s23 }
 0xa24   :  { %1849 = vsyncpa [#allocation6], 1 }
 0xa25   :  { %1851 = vsyncpa [#allocation6 + $0x1], 1 }
 0xa26   :  { %1852 = vsyncpa [#allocation9], 1 }
 0xa27   :  { %1853 = vsyncpa [#allocation12], 1 }
 0xa28   :  { %1854 = vsyncpa [#allocation7], 1 }
 0xa29   :  { %1856 = vsyncpa [#allocation7 + $0x1], 1 }
 0xa2a   :  { %1857 = vsyncpa [#allocation15], 1 }
 0xa2b   :  { %1859 = vsyncpa [#allocation15 + $0x1], 1 }

// kernel: tpu_custom_call.1
= control target key start
LH: loop header
LB: loop body
LE: loop exit
PB: predicated region body
PF: predicated region fallthrough
CT: control target
= control target key end

     0   :  { %s3225_s0 = inlined_call_operand.vmem [shape: f32[2,8,32], index: 0, kind: input, shape index: {}]   ;;  %s3226_s1 = inlined_call_operand.vmem [shape: f32[1,32], index: 1, kind: input, shape index: {}]   ;;  %s3227_s2 = inlined_call_operand.vmem [shape: f32[1,32], index: 2, kind: input, shape index: {}]   ;;  %s3228_s3 = inlined_call_operand.vmem [shape: bf16[32,32], index: 3, kind: input, shape index: {}]   ;;  %s3229_s4 = inlined_call_operand.vmem [shape: f32[1,32], index: 4, kind: input, shape index: {}]   ;;  %s3230_s5 = inlined_call_operand.vmem [shape: bf16[32,32], index: 5, kind: input, shape index: {}]   ;;  %s3231_s6 = inlined_call_operand.vmem [shape: f32[1,32], index: 6, kind: input, shape index: {}]   ;;  %s3232_s7 = inlined_call_operand.hbm [shape: bf16[32,32], index: 7, kind: input, shape index: {}]   ;;  %s3233_s8 = inlined_call_operand.vmem [shape: f32[1,32], index: 8, kind: input, shape index: {}]   ;;  %s3234_s9 = inlined_call_operand.hbm [shape: bf16[32,32], index: 9, kind: input, shape index: {}]   ;;  %s3235_s10 = inlined_call_operand.vmem [shape: f32[1,32], index: 10, kind: input, shape index: {}]   ;;  %s3236_s11 = inlined_call_operand.vmem [shape: f32[1,32], index: 11, kind: input, shape index: {}]   ;;  %s3237_s12 = inlined_call_operand.vmem [shape: f32[1,32], index: 12, kind: input, shape index: {}]   ;;  %s3238_s13 = inlined_call_operand.hbm [shape: bf16[32,64], index: 13, kind: input, shape index: {}]   ;;  %s3239_s14 = inlined_call_operand.hbm [shape: bf16[32,64], index: 14, kind: input, shape index: {}]   ;;  %s3240_s15 = inlined_call_operand.vmem [shape: bf16[64,32], index: 15, kind: input, shape index: {}]   ;;  %s3241_s16 = inlined_call_operand.hbm [shape: f32[2,8,32], index: 16, kind: output, shape index: {0}]   ;;  %s3242_s17 = inlined_call_operand.hbm [shape: bf16[2,4,8,8], index: 17, kind: output, shape index: {1}]   ;;  %s3243_s18 = inlined_call_operand.hbm [shape: bf16[2,4,8,8], index: 18, kind: output, shape index: {2}]  }
   0x1   :  { %3255 = sst [smem:[#allocation29_spill]] %s3225_s0 }
   0x2   :  { %3256 = sst [smem:[#allocation30_spill]] %s3226_s1 }
   0x3   :  { %3257 = sst [smem:[#allocation31_spill]] %s3227_s2 }
   0x4   :  { %3258 = sst [smem:[#allocation32_spill]] %s3228_s3 }
   0x5   :  { %3259 = sst [smem:[#allocation33_spill]] %s3234_s9 }
   0x6   :  { %3260 = sst [smem:[#allocation34_spill]] %s3241_s16 }
   0x7   :  { %24 = vsyncpa [#allocation6], 0 }
   0x8   :  { %25 = vsyncpa [#allocation9], 0 }
   0x9   :  { %26 = vsyncpa [#allocation12], 0 }
   0xa   :  { %27 = vsyncpa [#allocation7], 0 }
   0xb   :  { %29 = vsyncpa [#allocation7 + $0x1], 0 }
   0xc   :  { %30 = vsyncpa [#allocation15], 0 }
   0xd   :  { %32 = vsyncpa [#allocation15 + $0x1], 0  ;;  %s2758_s27 = smov 0   ;;  %s2760_s28 = smov 0  }
   0xe   :  { %s2762_s29 = smov 0   ;;  %s2764_s30 = smov 0  }
   0xf   :  { %s2766_s0 = smov 0   ;;  %s2768_s19 = smov 0  }
  0x10 LB: > { %3261 = sst [smem:[#allocation22_spill]] %s2621_s27  ;;  %s2789_s1 = sadd.s32 4294967295, %s2641_s19   ;;  %s2641_s19 = sphi %s2768_s19, %s38_s19   ;;  %s2637_s0 = sphi %s2766_s0, %s3287_s0   ;;  %s2633_s30 = sphi %s2764_s30, %s3286_s30   ;;  %s2629_s29 = sphi %s2762_s29, %s3285_s29   ;;  %s2625_s28 = sphi %s2760_s28, %s3289_s28   ;;  %s2621_s27 = sphi %s2758_s27, %s3288_s27  }
  0x11   : > { %3262 = sst [smem:[#allocation23_spill]] %s2629_s29  ;;  %s3245_s20 = sadd.s32 4294967294, %s2641_s19  }
  0x12   : > { %3263 = sst [smem:[#allocation24_spill]] %s2637_s0  ;;  %s50_s21 = sadd.s32 1, %s2637_s0 }
  0x13   : > { %3264 = sst [smem:[#allocation25_spill]] %s2641_s19  ;;  %s413_s22 = sadd.s32 1, %s2629_s29 }
  0x14   : > { %p52_p0 = scmp.ge.s32.totalorder %s50_s21, 2  ;;  %p423_p1 = scmp.ne.s32.totalorder %s2629_s29, %s2625_s28 }
  0x15   : > { %p424_p2 = scmp.eq.s32.totalorder %s2789_s1, 1  ;;  %p429_p3 = scmp.ne.s32.totalorder %s2625_s28, %s2621_s27 }
  0x16   : > { %s3291_s21 = smov (%p52_p0, %s50_s21), 0  ;;  %p430_p5 = scmp.eq.s32.totalorder %s3245_s20, 1 }
  0x17   : > { %3265 = sst [smem:[#allocation26_spill]] %s3291_s21  ;;  %p2801_p4 = por %p424_p2, %p423_p1 }
  0x18   : > { %s410_s23 = ssub.s32 %s2637_s0, %s3291_s21  ;;  %p2003_p6 = scmp.ge.s32.totalorder %s2641_s19, 1 }
  0x19   : > { %p411_p7 = scmp.eq.s32.totalorder %s410_s23, 0  ;;  %p2810_p8 = por %p430_p5, %p429_p3 }
  0x1a   : > { %p489_p9 = scmp.lt.s32.totalorder %s2641_s19, 3  ;;  %p2279_p11 = scmp.eq.s32.totalorder %s2789_s1, 0 }
  0x1b   : > { %s3267_s24 = scalar_select %p2810_p8, 1, 0 }
  0x1c   : > { %s2816_s25 = scalar_select %p411_p7, %s2629_s29, %s413_s22  }
  0x1d   : > { %3268 = sst [smem:[#allocation27_spill]] %s3267_s24  ;;  %p2818_p10 = pnand %p2003_p6, %p489_p9 }
  0x1e   : > { %3269 = sst [smem:[#allocation28_spill]] %s2816_s25  ;;  %s2643_s27 = smov [#allocation8]  }
  0x1f   : > { %p2256_p12 = pneg %p2818_p10  ;;  %s535_s20 = sshll.u32 %s2643_s27, 4  ;;  %s536_s20 = int_to_ptr.vmem [resolvable:$true] %s535_s20 }
  0x20   : > { %s2644_s22 = smov [#allocation5]   ;;  %s2404_s0 = scalar_lea.vmem %s536_s20, 256 }
  0x21   : > { %p2827_p13 = pnand %p2279_p11, %p2256_p12  ;;  %s519_s21 = sshll.u32 %s2644_s22, 4  ;;  %s520_s21 = int_to_ptr.vmem [resolvable:$true] %s519_s21 }
  0x22   : > { %p2405_p1 = scmp.ne.s32.totalorder %s536_s20, %s2404_s0  ;;  %p2412_p5 = scmp.lt.s32.totalorder %s536_s20, %s536_s20 }
  0x23   : > { %p2395_p0 = pneg %p2827_p13  ;;  %p2413_p6 = scmp.lt.s32.totalorder %s2404_s0, %s2404_s0 }
  0x25   : > { %p2407_p2 = pnand %p2405_p1, %p2395_p0  ;;  %p2414_p7 = por %p2413_p6, %p2412_p5 }
  0x27   : > { %p2408_p3 = pneg %p2407_p2 }
  0x29   : > { %p2415_p9 = pnand %p2414_p7, %p2408_p3 }
  0x2b   : > { %2418 = shalt.err (!%p2415_p9)
}
  0x2c   : > { %s2645_s27 = smov 64   ;;  %s2646_s25 = smov 4  }
  0x2d   : > { %s3272_s9 = sld [smem:[#allocation33_spill]]  ;;  %s2430_s24 = scalar_lea.vmem %s520_s21, 256 }
  0x2e   : > { %p2431_p12 = scmp.ne.s32.totalorder %s520_s21, %s2430_s24  ;;  %p2438_p3 = scmp.lt.s32.totalorder %s520_s21, %s520_s21 }
  0x2f   : > { %p2439_p5 = scmp.lt.s32.totalorder %s2430_s24, %s2430_s24 }
  0x30   : > { %p2433_p1 = pnand %p2431_p12, %p2395_p0 }
  0x31   : > { %p2440_p6 = por %p2439_p5, %p2438_p3 }
  0x32   : > { %p2434_p2 = pneg %p2433_p1 }
  0x33   : > { %2262 = dma.hbm_to_vmem [thread:$0]  (!%p2827_p13), %s3272_s9, 256, %s536_s20, [#allocation9], %s2645_s27, %s2645_s27, %s2646_s25  }
  0x34   : > { %p2441_p7 = pnand %p2440_p6, %p2434_p2 }
  0x36   : > { %2444 = shalt.err (!%p2441_p7)
}
  0x37   : > { %2259 = dma.hbm_to_vmem [thread:$0]  (!%p2827_p13), %s3232_s7, 256, %s520_s21, [#allocation6], %s2645_s27, %s2645_s27, %s2646_s25  }
  0x38   : > { %s2647_s20 = smov [#allocation10]   ;;  %s2648_s9 = smov [#allocation11]  }
  0x39   : > { %s559_s22 = sshll.u32 %s2647_s20, 4  ;;  %s574_s19 = sshll.u32 %s2648_s9, 4  ;;  %s560_s22 = int_to_ptr.vmem [resolvable:$true] %s559_s22  ;;  %s575_s19 = int_to_ptr.vmem [resolvable:$true] %s574_s19 }
  0x3a   : > { %s2456_s16 = scalar_lea.vmem %s560_s22, 256  ;;  %p2464_p2 = scmp.lt.s32.totalorder %s560_s22, %s560_s22 }
  0x3b   : > { %p2457_p9 = scmp.ne.s32.totalorder %s560_s22, %s2456_s16  ;;  %p2465_p3 = scmp.lt.s32.totalorder %s2456_s16, %s2456_s16 }
  0x3d   : > { %p2459_p12 = pnand %p2457_p9, %p2395_p0  ;;  %p2466_p5 = por %p2465_p3, %p2464_p2 }
  0x3f   : > { %p2460_p1 = pneg %p2459_p12 }
  0x41   : > { %p2467_p6 = pnand %p2466_p5, %p2460_p1 }
  0x43   : > { %2470 = shalt.err (!%p2467_p6)
}
  0x44   : > { %2265 = dma.hbm_to_vmem [thread:$0]  (!%p2827_p13), %s3238_s13, 256, %s560_s22, [#allocation9], %s2645_s27, %s2645_s27, %s2646_s25  }
  0x45   : > { %s2482_s9 = scalar_lea.vmem %s575_s19, 256  ;;  %p2490_p2 = scmp.lt.s32.totalorder %s575_s19, %s575_s19 }
  0x46   : > { %p2483_p7 = scmp.ne.s32.totalorder %s575_s19, %s2482_s9  ;;  %p2491_p1 = scmp.lt.s32.totalorder %s2482_s9, %s2482_s9 }
  0x48   : > { %p2485_p9 = pnand %p2483_p7, %p2395_p0  ;;  %p2492_p3 = por %p2491_p1, %p2490_p2 }
  0x4a   : > { %p2486_p12 = pneg %p2485_p9 }
  0x4c   : > { %p2493_p5 = pnand %p2492_p3, %p2486_p12 }
  0x4e   : > { %2496 = shalt.err (!%p2493_p5)
}
  0x4f   : > { %2268 = dma.hbm_to_vmem [thread:$0]  (!%p2827_p13), %s3239_s14, 256, %s575_s19, [#allocation12], %s2645_s27, %s2645_s27, %s2646_s25  }
  0x50   : > { %606 = sbr.rel (%p2818_p10) target bundleno = 2571 (0xa0b), region = 84 }
  0x55   : > { %2600 = dma.done.wait (%p2279_p11), [#allocation6], 256  }
  0x56   : > { %2602 = vsyncadd (%p2279_p11), [#allocation6], 4294967040 }
  0x57   : > { %2604 = dma.done.wait (%p2279_p11), [#allocation9], 512  }
  0x58   : > { %2606 = vsyncadd (%p2279_p11), [#allocation9], 4294966784 }
  0x59   : > { %2608 = dma.done.wait (%p2279_p11), [#allocation12], 256  }
  0x5a   : > { %2610 = vsyncadd (%p2279_p11), [#allocation12], 4294967040  ;;  %p686_p10 = scmp.lt.s32.totalorder %s2633_s30, 1  ;;  %s3273_s27 = sld [smem:[#allocation29_spill]]  ;;  %vm702_vm0 = vcmask 261120   ;;  %v2354_v8 = vld [vmem:[#allocation5 + $0x8] sm:$0xff]   ;;  %v930_v57 = vlaneseq }
  0x5b   : > { %s3274_s3 = sld [smem:[#allocation32_spill]]  ;;  %v2649_v9 = vmov 0.0   ;;  %v2356_v11 = vld [vmem:[#allocation5] sm:$0xff]   ;;  %vm2650_vm1 = vmmov 0   ;;  %v2357_v21 = vld [vmem:[%s3230_s5 + $0x8] sm:$0xff]   ;;  %v2358_v23 = vld [vmem:[%s3230_s5] sm:$0xff]  }
  0x5c   : > { %s687_s19 = scalar_select %p686_p10, %s2633_s30, 1  ;;  %2126 = vmatprep.subr.bf16.mxu1 %v2649_v9  ;;  %2142 = vmatprep.subr.bf16.mxu0 %v2649_v9  ;;  %v2029_v24 = vld [vmem:[%s3233_s8] ss:$0 sm:$0xff]  ;;  %vm1001_vm2 = vcmask 1043456   ;;  %vm936_vm3 = vcmask 60416   ;;  %vm939_vm4 = vcmask 64512  }
  0x5d   : > { %2143 = vmatpush3.bf16.msra.mxu0 %v2354_v8  ;;  %2130 = vmatprep.mubr.msk.bf16.mxu1 %vm2650_vm1, %v2649_v9  ;;  %s3275_s0 = sld [smem:[#allocation30_spill]]  ;;  %s2942_s22 = sand.u32 1, %s2625_s28   ;;  %v2021_v31 = vld [vmem:[%s3229_s4] ss:$0 sm:$0xff]  ;;  %v931_v58 = vshrl.u32 %v930_v57, 7  ;;  %v933_v59 = vand.u32 127, %v930_v57 }
  0x5e   : > { %s2018_s25 = sshll.u32 %s687_s19, 3  ;;  %2144 = vmatprep.subr.bf16.mxu0 %v2649_v9  ;;  %2146 = vmatprep.mubr.msk.bf16.mxu0 %vm2650_vm1, %v2649_v9  ;;  %s3276_s26 = sld [smem:[#allocation31_spill]]  ;;  %v2025_v37 = vld [vmem:[%s3231_s6] ss:$0 sm:$0xff]  ;;  %v2654_v60 = vmov -1e+09  }
  0x5f   : > { %s2016_s9 = sshll.u32 %s2942_s22, 4  ;;  %s2651_s23 = smov 112   ;;  %vm934_vm5 = vcmp.le.s32.totalorder %v933_v59, %v931_v58  ;;  %vm1181_vm6 = vcmask 126016   ;;  %vm1310_vm7 = vcmask 191616   ;;  %vm1439_vm8 = vcmask 257216  }
  0x60   : > { %s689_s29 = scalar_lea.vmem %s3273_s27, %s2018_s25  ;;  %s2957_s19 = scalar_lea.vmem [#allocation16], %s2016_s9  ;;  %v935_v61 = vsel %vm934_vm5, 0.0, %v2654_v60  ;;  %vm1540_vm9 = vcmask 257024   ;;  %vm1700_vm10 = vcmask 523264  }
  0x61   : > { %v2896_v0 = vld [vmem:[%s689_s29] sm:$0xff]  ;;  %v2353_v7 = vld [vmem:[%s3274_s3 + $0x8] sm:$0xff]   ;;  %2145 = vmatpush3.bf16.msra.mxu0 %v2356_v11  ;;  %s2652_s27 = smov 120   ;;  %s2976_s29 = scalar_lea.vmem [#allocation14], %s2016_s9 }
  0x62   : > { %v703_v1 = vsel %vm702_vm0, %v2896_v0, 0.0  ;;  %2127 = vmatpush3.bf16.msra.mxu1 %v2353_v7  ;;  %v2355_v10 = vld [vmem:[%s3274_s3] sm:$0xff]   ;;  %2156 = vmatprep.subr.bf16.mxu0 %v2649_v9  ;;  %s2653_s20 = smov 104   ;;  %s2655_s21 = smov 8  }
  0x63   : > { %704 = vadd.xlane.f32.xlu0 %v703_v1  ;;  %2128 = vmatprep.subr.bf16.mxu1 %v2649_v9  ;;  %v2019_v16 = vld [vmem:[%s3275_s0] ss:$0 sm:$0xff]  ;;  %s2656_s24 = smov 16   ;;  %s2657_s9 = smov 24  }
  0x64   : > { %v2020_v18 = vld [vmem:[%s3276_s26] ss:$0 sm:$0xff] }
  0x66   : > { %2129 = vmatpush3.bf16.msra.mxu1 %v2355_v10 }
  0x67   : > { %2134 = vmatprep.subr.bf16.mxu1 %v2649_v9 }
  0xec   : > { %v705_v2 = vpop.xlane.xlu0 %704 }
  0xed   : > { %v707_v3 = vmul.f32 0.03125, %v705_v2 }
  0xef   : > { %v708_v4 = vsub.f32 %v2896_v0, %v707_v3 }
  0xf1   : > { %v709_v5 = vmul.f32 %v708_v4, %v708_v4 }
  0xf3   : > { %v710_v6 = vsel %vm702_vm0, %v709_v5, 0.0 }
  0xf4   : > { %711 = vadd.xlane.f32.xlu0 %v710_v6 }
 0x17d   : > { %v712_v12 = vpop.xlane.xlu0 %711 }
 0x17e   : > { %v713_v13 = vmul.f32 0.03125, %v712_v12 }
 0x180   : > { %v714_v14 = vadd.f32 1e-05, %v713_v13 }
 0x182   : > { %2369 = vrsqrt.f32 %v714_v14 }
 0x18f   : > { %v2370_v15 = vpop.eup %2369 }
 0x190   : > { %v716_v17 = vmul.f32 %v2370_v15, %v708_v4 }
 0x192   : > { %v724_v19 = vmul.f32 %v2019_v16, %v716_v17 }
 0x194   : > { %v732_v20 = vadd.f32 %v2020_v18, %v724_v19 }
 0x196   : > { %v733_v22 = vpack.c.bf16 %v732_v20, %v732_v20 }
 0x198   : > { %2131 = vmatmul.mubr.msk.bf16.vlgmr.msra.gmra.mxu1 %vm702_vm0, %v733_v22  ;;  %2147 = vmatmul.mubr.msk.bf16.vlgmr.msra.gmra.mxu0 %vm702_vm0, %v733_v22 }
 0x199   : > { %2135 = vmatpush3.bf16.msra.mxu1 %v2357_v21  ;;  %2138 = vmatprep.mubr.msk.bf16.mxu1 %vm2650_vm1, %v2649_v9 }
 0x19a   : > { %2136 = vmatprep.subr.bf16.mxu1 %v2649_v9  ;;  %2158 = vmatprep.mubr.msk.bf16.mxu0 %vm2650_vm1, %v2649_v9 }
 0x19d   : > { %2137 = vmatpush3.bf16.msra.mxu1 %v2358_v23 }
 0x19e   : > { %2150 = vmatprep.subr.bf16.mxu1 %v2649_v9 }
 0x1a0   : > { %2139 = vmatmul.mubr.msk.bf16.vlgmr.msra.gmra.mxu1 %vm702_vm0, %v733_v22 }
 0x1a1   : > { %2152 = vmatprep.mubr.msk.bf16.mxu1 %vm2650_vm1, %v2649_v9 }
 0x258   : > { %v794_v25 = vpop.f32.mrf.mxu1  ;;  %v920_v26 = vpop.f32.mrf.mxu0 }
 0x259   : > { %v921_v27 = vadd.f32 %v2029_v24, %v920_v26  ;;  %v795_v38 = vadd.f32 %v2021_v31, %v794_v25 }
 0x25a   : > { %v2132_v28 = vpop.f32.mrf.mxu1  ;;  %v2148_v29 = vpop.f32.mrf.mxu0 }
 0x25b   : > { %v2948_v30 = vpack.c.bf16 %v921_v27, %v921_v27  ;;  %v926_v42 = vmul.f32 0.35355338, %v795_v38 }
 0x25c   : > { %v797_v32 = vpop.f32.mrf.mxu1  ;;  %v923_v33 = vpop.f32.mrf.mxu0 }
 0x25d   : > { %v1003_v34 = vsel %vm1001_vm2, %v2948_v30, 0  ;;  %938 = vst.msk [vmem:[%s2957_s19] sm:$0xf] %vm936_vm3, %v2948_v30  ;;  %v927_v47 = vpack.c.bf16 %v926_v42, %v926_v42 }
 0x25e   : > { %v2133_v35 = vpop.f32.mrf.mxu1  ;;  %v2149_v36 = vpop.f32.mrf.mxu0  ;;  %2157 = vmatpush3.bf16.msra.mxu0 %v1003_v34 }
 0x25f   : > { %2168 = vmatprep.subr.bf16.mxu0 %v2649_v9 }
 0x260   : > { %v857_v39 = vpop.f32.mrf.mxu1 }
 0x261   : > { %v858_v40 = vadd.f32 %v2025_v37, %v857_v39 }
 0x262   : > { %v2140_v41 = vpop.f32.mrf.mxu1 }
 0x263   : > { %v2966_v43 = vpack.c.bf16 %v858_v40, %v858_v40 }
 0x264   : > { %v860_v44 = vpop.f32.mrf.mxu1 }
 0x265   : > { %1195 = vrot.lane.b32.xlu0 %v2966_v43, %s2651_s23  ;;  %1066 = vrot.lane.b32.xlu1 %v2966_v43, %s2652_s27  ;;  %v944_v45 = vsel %vm939_vm4, %v2966_v43, 0  ;;  %937 = vst.msk [vmem:[%s2976_s29] sm:$0xf] %vm936_vm3, %v2966_v43 }
 0x266   : > { %v2141_v46 = vpop.f32.mrf.mxu1  ;;  %2151 = vmatpush3.bf16.xpose.msra.mxu1 %v944_v45 }
 0x267   : > { %2162 = vmatprep.subr.bf16.mxu1 %v2649_v9 }
 0x269   : > { %1064 = vrot.lane.b32.xlu1 %v927_v47, %s2652_s27 }
 0x26d   : > { %1193 = vrot.lane.b32.xlu1 %v927_v47, %s2651_s23  ;;  %2153 = vmatmul.mubr.msk.bf16.vlgmr.msra.gmra.mxu1 %vm939_vm4, %v927_v47 }
 0x26e   : > { %2164 = vmatprep.mubr.msk.bf16.mxu1 %vm2650_vm1, %v2649_v9 }
 0x271   : > { %1324 = vrot.lane.b32.xlu1 %v2966_v43, %s2653_s20 }
 0x275   : > { %1322 = vrot.lane.b32.xlu1 %v927_v47, %s2653_s20 }
 0x2d7   : > { %v1067_v48 = vpop.permute.xlu1 %1066  ;;  %v1196_v51 = vpop.permute.xlu0 %1195 }
 0x2d8   : > { %v1072_v49 = vsel %vm939_vm4, %v1067_v48, 0  ;;  %v1201_v53 = vsel %vm939_vm4, %v1196_v51, 0 }
 0x2d9   : > { %2163 = vmatpush3.bf16.xpose.msra.mxu1 %v1072_v49 }
 0x2da   : > { %2174 = vmatprep.subr.bf16.mxu1 %v2649_v9 }
 0x2db   : > { %v1065_v50 = vpop.permute.xlu1 %1064 }
 0x2df   : > { %v1194_v52 = vpop.permute.xlu1 %1193 }
 0x2e0   : > { %2165 = vmatmul.mubr.msk.bf16.vlgmr.msra.gmra.mxu1 %vm939_vm4, %v1065_v50 }
 0x2e1   : > { %2175 = vmatpush3.bf16.xpose.msra.mxu1 %v1201_v53  ;;  %2176 = vmatprep.mubr.msk.bf16.mxu1 %vm2650_vm1, %v2649_v9 }
 0x2e2   : > { %2186 = vmatprep.subr.bf16.mxu1 %v2649_v9 }
 0x2e3   : > { %v1325_v54 = vpop.permute.xlu1 %1324 }
 0x2e4   : > { %v1330_v55 = vsel %vm939_vm4, %v1325_v54, 0 }
 0x2e7   : > { %v1323_v56 = vpop.permute.xlu1 %1322 }
 0x2e8   : > { %2177 = vmatmul.mubr.msk.bf16.vlgmr.msra.gmra.mxu1 %vm939_vm4, %v1194_v52 }
 0x2e9   : > { %2187 = vmatpush3.bf16.xpose.msra.mxu1 %v1330_v55  ;;  %2188 = vmatprep.mubr.msk.bf16.mxu1 %vm2650_vm1, %v2649_v9 }
 0x2ea   : > { %2198 = vmatprep.subr.bf16.mxu1 %v2649_v9 }
 0x2f0   : > { %2189 = vmatmul.mubr.msk.bf16.vlgmr.msra.gmra.mxu1 %vm939_vm4, %v1323_v56 }
 0x2f1   : > { %2202 = vmatprep.mubr.msk.bf16.mxu1 %vm2650_vm1, %v2649_v9 }
 0x32d   : > { %v980_v62 = vpop.f32.mrf.mxu1 }
 0x32e   : > { %v981_v63 = vadd.f32 %v980_v62, %v935_v61 }
 0x32f   : > { %v2154_v1 = vpop.f32.mrf.mxu1 }
 0x330   : > { %v986_v2 = vsel %vm939_vm4, %v981_v63, -inf }
 0x331   : > { %987 = vmax.xlane.f32.xlu1 %v986_v2  ;;  %v983_v3 = vpop.f32.mrf.mxu1 }
 0x333   : > { %v2155_v4 = vpop.f32.mrf.mxu1 }
 0x3a0   : > { %v1108_v5 = vpop.f32.mrf.mxu1 }
 0x3a1   : > { %v1109_v6 = vadd.f32 %v1108_v5, %v935_v61 }
 0x3a2   : > { %v2166_v7 = vpop.f32.mrf.mxu1 }
 0x3a3   : > { %v1114_v8 = vsel %vm939_vm4, %v1109_v6, -inf }
 0x3a4   : > { %1115 = vmax.xlane.f32.xlu0 %v1114_v8  ;;  %v1111_v10 = vpop.f32.mrf.mxu1 }
 0x3a6   : > { %v2167_v11 = vpop.f32.mrf.mxu1 }
 0x3a8   : > { %v1237_v12 = vpop.f32.mrf.mxu1 }
 0x3a9   : > { %v1238_v13 = vadd.f32 %v1237_v12, %v935_v61 }
 0x3aa   : > { %v2178_v14 = vpop.f32.mrf.mxu1 }
 0x3ab   : > { %v1243_v15 = vsel %vm939_vm4, %v1238_v13, -inf }
 0x3ac   : > { %1244 = vmax.xlane.f32.xlu1 %v1243_v15  ;;  %v1240_v16 = vpop.f32.mrf.mxu1 }
 0x3ae   : > { %v2179_v17 = vpop.f32.mrf.mxu1 }
 0x3b0   : > { %v1366_v18 = vpop.f32.mrf.mxu1 }
 0x3b1   : > { %v1367_v19 = vadd.f32 %v1366_v18, %v935_v61 }
 0x3b2   : > { %v2190_v20 = vpop.f32.mrf.mxu1 }
 0x3b3   : > { %v1372_v21 = vsel %vm939_vm4, %v1367_v19, -inf }
 0x3b4   : > { %1373 = vmax.xlane.f32.xlu1 %v1372_v21  ;;  %v1369_v22 = vpop.f32.mrf.mxu1  ;;  %v2359_v21 = vld [vmem:[#allocation8 + $0x8] sm:$0xff]  }
 0x3b5   : > { %2199 = vmatpush3.bf16.msra.mxu1 %v2359_v21  ;;  %v2360_v22 = vld [vmem:[#allocation8] sm:$0xff]  }
 0x3b6   : > { %v2191_v23 = vpop.f32.mrf.mxu1  ;;  %2200 = vmatprep.subr.bf16.mxu1 %v2649_v9 }
 0x3b9   : > { %2201 = vmatpush3.bf16.msra.mxu1 %v2360_v22 }
 0x3ba   : > { %v988_v24 = vpop.xlane.xlu1 %987  ;;  %2214 = vmatprep.subr.bf16.mxu1 %v2649_v9 }
 0x3bb   : > { %v989_v25 = vsub.f32 %v981_v63, %v988_v24 }
 0x3bd   : > { %v990_v26 = vmul.f32 1.442695, %v989_v25 }
 0x3bf   : > { %2371 = vpow2.f32 %v990_v26 }
 0x3cc   : > { %v2372_v27 = vpop.eup %2371 }
 0x3cd   : > { %v992_v28 = vsel %vm939_vm4, %v2372_v27, 0.0 }
 0x3ce   : > { %993 = vadd.xlane.f32.xlu0 %v992_v28 }
 0x42d   : > { %v1116_v29 = vpop.xlane.xlu0 %1115 }
 0x42e   : > { %v1117_v31 = vsub.f32 %v1109_v6, %v1116_v29 }
 0x430   : > { %v1118_v32 = vmul.f32 1.442695, %v1117_v31 }
 0x432   : > { %2373 = vpow2.f32 %v1118_v32 }
 0x435   : > { %v1245_v33 = vpop.xlane.xlu1 %1244 }
 0x436   : > { %v1246_v34 = vsub.f32 %v1238_v13, %v1245_v33  ;;  %v2052_v33 = vld [vmem:[%s3235_s10] ss:$0 sm:$0xff] }
 0x438   : > { %v1247_v35 = vmul.f32 1.442695, %v1246_v34 }
 0x43a   : > { %2375 = vpow2.f32 %v1247_v35 }
 0x43d   : > { %v1374_v41 = vpop.xlane.xlu1 %1373 }
 0x43e   : > { %v1375_v42 = vsub.f32 %v1367_v19, %v1374_v41 }
 0x43f   : > { %v2374_v36 = vpop.eup %2373 }
 0x440   : > { %v1120_v37 = vsel %vm939_vm4, %v2374_v36, 0.0  ;;  %v1376_v44 = vmul.f32 1.442695, %v1375_v42 }
 0x441   : > { %1121 = vadd.xlane.f32.xlu1 %v1120_v37 }
 0x447   : > { %v2376_v38 = vpop.eup %2375 }
 0x448   : > { %v1249_v39 = vsel %vm939_vm4, %v2376_v38, 0.0 }
 0x449   : > { %1250 = vadd.xlane.f32.xlu0 %v1249_v39 }
 0x452   : > { %1255 = vrot.lane.b32.xlu1 %v2948_v30, %s2651_s23 }
 0x457   : > { %v994_v40 = vpop.xlane.xlu0 %993 }
 0x458   : > { %2377 = vrcp.f32 %v994_v40 }
 0x459   : > { %2379 = vpow2.f32 %v1376_v44 }
 0x45f   : > { %1126 = vrot.lane.b32.xlu0 %v2948_v30, %s2652_s27 }
 0x465   : > { %v2378_v45 = vpop.eup %2377 }
 0x466   : > { %v996_v46 = vmul.f32 %v2378_v45, %v2372_v27  ;;  %v2380_v48 = vpop.eup %2379 }
 0x467   : > { %v1378_v49 = vsel %vm939_vm4, %v2380_v48, 0.0 }
 0x468   : > { %v997_v47 = vpack.c.bf16 %v996_v46, %v996_v46 }
 0x46a   : > { %2159 = vmatmul.mubr.msk.bf16.vlgmr.msra.gmra.mxu0 %vm939_vm4, %v997_v47 }
 0x46b   : > { %2170 = vmatprep.mubr.msk.bf16.mxu0 %vm2650_vm1, %v2649_v9 }
 0x476   : > { %1379 = vadd.xlane.f32.xlu1 %v1378_v49  ;;  %v2361_v49 = vld [vmem:[#allocation10 + $0x8] sm:$0xff]  }
 0x487   : > { %1384 = vrot.lane.b32.xlu1 %v2948_v30, %s2653_s20 }
 0x4ca   : > { %v1122_v50 = vpop.xlane.xlu1 %1121 }
 0x4cb   : > { %2381 = vrcp.f32 %v1122_v50  ;;  %v2362_v50 = vld [vmem:[#allocation11 + $0x8] sm:$0xff]  }
 0x4ce   : > { %v1256_v56 = vpop.permute.xlu1 %1255 }
 0x4cf   : > { %v1261_v58 = vsel %vm1001_vm2, %v1256_v56, 0 }
 0x4d2   : > { %v1251_v51 = vpop.xlane.xlu0 %1250 }
 0x4d3   : > { %2383 = vrcp.f32 %v1251_v51  ;;  %v2363_v51 = vld [vmem:[#allocation10] sm:$0xff]  }
 0x4d6   : > { %v1127_v52 = vpop.permute.xlu0 %1126 }
 0x4d7   : > { %v1132_v53 = vsel %vm1001_vm2, %v1127_v52, 0  ;;  %v2364_v52 = vld [vmem:[#allocation11] sm:$0xff]  }
 0x4d8   : > { %v2382_v54 = vpop.eup %2381  ;;  %2169 = vmatpush3.bf16.msra.mxu0 %v1132_v53 }
 0x4d9   : > { %2180 = vmatprep.subr.bf16.mxu0 %v2649_v9  ;;  %v1124_v55 = vmul.f32 %v2382_v54, %v2374_v36 }
 0x4db   : > { %v1125_v57 = vpack.c.bf16 %v1124_v55, %v1124_v55 }
 0x4dd   : > { %2171 = vmatmul.mubr.msk.bf16.vlgmr.msra.gmra.mxu0 %vm939_vm4, %v1125_v57 }
 0x4de   : > { %2181 = vmatpush3.bf16.msra.mxu0 %v1261_v58  ;;  %2182 = vmatprep.mubr.msk.bf16.mxu0 %vm2650_vm1, %v2649_v9  ;;  %v2056_v58 = vld [vmem:[%s3236_s11] ss:$0 sm:$0xff] }
 0x4df   : > { %2192 = vmatprep.subr.bf16.mxu0 %v2649_v9 }
 0x4e0   : > { %v2384_v59 = vpop.eup %2383 }
 0x4e1   : > { %v1253_v60 = vmul.f32 %v2384_v59, %v2376_v38 }
 0x4e3   : > { %v1254_v61 = vpack.c.bf16 %v1253_v60, %v1253_v60  ;;  %v2057_v60 = vld [vmem:[%s3237_s12] ss:$0 sm:$0xff] }
 0x4e5   : > { %2183 = vmatmul.mubr.msk.bf16.vlgmr.msra.gmra.mxu0 %vm939_vm4, %v1254_v61 }
 0x4e6   : > { %2194 = vmatprep.mubr.msk.bf16.mxu0 %vm2650_vm1, %v2649_v9 }
 0x4ff   : > { %v1380_v62 = vpop.xlane.xlu1 %1379 }
 0x500   : > { %2385 = vrcp.f32 %v1380_v62 }
 0x503   : > { %v1385_v63 = vpop.permute.xlu1 %1384 }
 0x504   : > { %v1390_v1 = vsel %vm1001_vm2, %v1385_v63, 0 }
 0x505   : > { %2193 = vmatpush3.bf16.msra.mxu0 %v1390_v1 }
 0x506   : > { %2206 = vmatprep.subr.bf16.mxu0 %v2649_v9 }
 0x50d   : > { %v2386_v2 = vpop.eup %2385 }
 0x50e   : > { %v1382_v3 = vmul.f32 %v2386_v2, %v2380_v48  ;;  %v2365_v2 = vld [vmem:[%s3240_s15 + $0x18] sm:$0xff]  }
 0x510   : > { %v1383_v4 = vpack.c.bf16 %v1382_v3, %v1382_v3  ;;  %v2366_v3 = vld [vmem:[%s3240_s15 + $0x10] sm:$0xff]  }
 0x512   : > { %2195 = vmatmul.mubr.msk.bf16.vlgmr.msra.gmra.mxu0 %vm939_vm4, %v1383_v4  ;;  %v2367_v4 = vld [vmem:[%s3240_s15 + $0x8] sm:$0xff]  }
 0x513   : > { %2210 = vmatprep.mubr.msk.bf16.mxu0 %vm2650_vm1, %v2649_v9  ;;  %2207 = vmatpush3.bf16.msra.mxu0 %v2361_v49 }
 0x514   : > { %2208 = vmatprep.subr.bf16.mxu0 %v2649_v9 }
 0x517   : > { %2209 = vmatpush3.bf16.msra.mxu0 %v2363_v51 }
 0x518   : > { %2222 = vmatprep.subr.bf16.mxu0 %v2649_v9 }
 0x52a   : > { %v1039_v5 = vpop.f32.mrf.mxu0 }
 0x52b   : > { %v1045_v6 = vpack.c.bf16 %v1039_v5, %v1039_v5  ;;  %v2368_v5 = vld [vmem:[%s3240_s15] sm:$0xff]  }
 0x52c   : > { %v2160_v7 = vpop.f32.mrf.mxu0 }
 0x52d   : > { %1046 = vst.msk [vmem:[#allocation4] sm:$0xf] %vm936_vm3, %v1045_v6 }
 0x52e   : > { %v1042_v8 = vpop.f32.mrf.mxu0 }
 0x530   : > { %v2161_v10 = vpop.f32.mrf.mxu0 }
 0x59d   : > { %v1168_v11 = vpop.f32.mrf.mxu0 }
 0x59e   : > { %v2082_v12 = vpack.c.bf16 %v1168_v11, %v1168_v11 }
 0x59f   : > { %v2172_v13 = vpop.f32.mrf.mxu0 }
 0x5a0   : > { %1178 = vrot.lane.b32.xlu0 %v2082_v12, %s2655_s21  ;;  %s3253_s21 = sshll.u32 %s2633_s30, 8 }
 0x5a1   : > { %v1171_v14 = vpop.f32.mrf.mxu0  ;;  %s3113_s16 = scalar_lea.hbm %s3242_s17, %s3253_s21 }
 0x5a3   : > { %v2173_v15 = vpop.f32.mrf.mxu0 }
 0x5a5   : > { %v1297_v16 = vpop.f32.mrf.mxu0 }
 0x5a6   : > { %v2083_v17 = vpack.c.bf16 %v1297_v16, %v1297_v16 }
 0x5a7   : > { %v2184_v18 = vpop.f32.mrf.mxu0 }
 0x5a8   : > { %1307 = vrot.lane.b32.xlu1 %v2083_v17, %s2656_s24 }
 0x5a9   : > { %v1300_v19 = vpop.f32.mrf.mxu0 }
 0x5ab   : > { %v2185_v20 = vpop.f32.mrf.mxu0 }
 0x5d2   : > { %v1426_v23 = vpop.f32.mrf.mxu0 }
 0x5d3   : > { %v2084_v24 = vpack.c.bf16 %v1426_v23, %v1426_v23 }
 0x5d4   : > { %v2196_v25 = vpop.f32.mrf.mxu0 }
 0x5d5   : > { %1436 = vrot.lane.b32.xlu0 %v2084_v24, %s2657_s9 }
 0x5d6   : > { %v1429_v26 = vpop.f32.mrf.mxu0 }
 0x5d8   : > { %v2197_v27 = vpop.f32.mrf.mxu0 }
 0x612   : > { %v1179_v28 = vpop.permute.xlu0 %1178 }
 0x613   : > { %1182 = vst.msk [vmem:[#allocation4] sm:$0xf] %vm1181_vm6, %v1179_v28 }
 0x61a   : > { %v1308_v29 = vpop.permute.xlu1 %1307 }
 0x61b   : > { %1311 = vst.msk [vmem:[#allocation4] sm:$0xf] %vm1310_vm7, %v1308_v29 }
 0x647   : > { %v1437_v31 = vpop.permute.xlu0 %1436 }
 0x648   : > { %1440 = vst.msk [vmem:[#allocation4] sm:$0xf] %vm1439_vm8, %v1437_v31 }
 0x64f   : > { %v1441_v32 = vld [vmem:[#allocation4] sm:$0xf] }
 0x650   : > { %2203 = vmatmul.mubr.msk.bf16.vlgmr.msra.gmra.mxu1 %vm702_vm0, %v1441_v32 }
 0x651   : > { %2218 = vmatprep.mubr.msk.bf16.mxu1 %vm2650_vm1, %v2649_v9  ;;  %2215 = vmatpush3.bf16.msra.mxu1 %v2362_v50 }
 0x652   : > { %2216 = vmatprep.subr.bf16.mxu1 %v2649_v9 }
 0x655   : > { %2217 = vmatpush3.bf16.msra.mxu1 %v2364_v52 }
 0x710   : > { %v1502_v34 = vpop.f32.mrf.mxu1 }
 0x711   : > { %v1503_v35 = vadd.f32 %v2052_v33, %v1502_v34 }
 0x712   : > { %v2204_v36 = vpop.f32.mrf.mxu1 }
 0x713   : > { %v1508_v37 = vadd.f32 %v1503_v35, %v2896_v0 }
 0x714   : > { %v1505_v38 = vpop.f32.mrf.mxu1 }
 0x715   : > { %1509 = vst.msk [vmem:[#allocation2] sm:$0xff] %vm702_vm0, %v1508_v37  ;;  %v1510_v39 = vsel %vm702_vm0, %v1508_v37, 0.0 }
 0x716   : > { %1511 = vadd.xlane.f32.xlu1 %v1510_v39  ;;  %v2205_v40 = vpop.f32.mrf.mxu1 }
 0x727   : > { %1183 = vrot.lane.b32.xlu1 %v2966_v43, %s2651_s23 }
 0x72b   : > { %1312 = vrot.lane.b32.xlu1 %v2966_v43, %s2653_s20 }
 0x72f   : > { %1188 = vrot.lane.b32.xlu1 %v2948_v30, %s2651_s23  ;;  %s1794_s23 = sshll.u32 %s2976_s29, 4  ;;  %s3103_s23 = int_to_ptr.vmem [resolvable:$true] %s1794_s23 }
 0x730   : > { %s2497_s25 = scalar_lea.vmem %s3103_s23, 256 }
 0x731   : > { %p2498_p11 = scmp.ne.s32.totalorder %s3103_s23, %s2497_s25 }
 0x733   : > { %p2499_p13 = pnand %p2498_p11, %p2801_p4 }
 0x735   : > { %p2500_p0 = pneg %p2499_p13 }
 0x79f   : > { %v1512_v41 = vpop.xlane.xlu1 %1511 }
 0x7a0   : > { %v1513_v0 = vmul.f32 0.03125, %v1512_v41 }
 0x7a2   : > { %v1514_v42 = vsub.f32 %v1508_v37, %v1513_v0 }
 0x7a3   : > { %v1184_v44 = vpop.permute.xlu1 %1183 }
 0x7a4   : > { %2042 = vst.msk [vmem:[%s2976_s29 + $0x8] sm:$0xf] %vm936_vm3, %v1184_v44  ;;  %v1515_v45 = vmul.f32 %v1514_v42, %v1514_v42 }
 0x7a6   : > { %v1516_v46 = vsel %vm702_vm0, %v1515_v45, 0.0 }
 0x7a7   : > { %1517 = vadd.xlane.f32.xlu0 %v1516_v46  ;;  %v1313_v47 = vpop.permute.xlu1 %1312 }
 0x7a8   : > { %2047 = vst.msk [vmem:[%s2976_s29 + $0xc] sm:$0xf] %vm936_vm3, %v1313_v47 }
 0x7ab   : > { %v1189_v48 = vpop.permute.xlu1 %1188 }
 0x7ac   : > { %2043 = vst.msk [vmem:[%s2957_s19 + $0x8] sm:$0xf] %vm936_vm3, %v1189_v48 }
 0x7bd   : > { %1050 = vrot.lane.b32.xlu0 %v2966_v43, %s2652_s27 }
 0x7c1   : > { %1058 = vrot.lane.b32.xlu0 %v2948_v30, %s2652_s27  ;;  %s1810_s27 = sshll.u32 %s2957_s19, 4  ;;  %s3143_s27 = int_to_ptr.vmem [resolvable:$true] %s1810_s27 }
 0x7c5   : > { %1317 = vrot.lane.b32.xlu0 %v2948_v30, %s2653_s20  ;;  %s1762_s20 = sand.u32 1, %s2789_s1  }
 0x7c6   : > { %s3115_s0 = scalar_lea.sflag [#allocation15], %s1762_s20 }
 0x830   : > { %v1518_v43 = vpop.xlane.xlu0 %1517 }
 0x831   : > { %v1519_v53 = vmul.f32 0.03125, %v1518_v43 }
 0x833   : > { %v1520_v30 = vadd.f32 1e-05, %v1519_v53 }
 0x834   : > { %v1051_v54 = vpop.permute.xlu0 %1050 }
 0x835   : > { %2387 = vrsqrt.f32 %v1520_v30  ;;  %2036 = vst.msk [vmem:[%s2976_s29 + $0x4] sm:$0xf] %vm936_vm3, %v1051_v54  ;;  %s2658_s29 = smov [#allocation14]  }
 0x836   : > { %s2501_s26 = sshll.u32 %s2658_s29, 4  ;;  %s2502_s26 = int_to_ptr.vmem [resolvable:$false] %s2501_s26 }
 0x837   : > { %s2503_s3 = scalar_lea.vmem %s2502_s26, 512  ;;  %p2504_p6 = scmp.lt.s32.totalorder %s3103_s23, %s2502_s26 }
 0x838   : > { %v1059_v55 = vpop.permute.xlu0 %1058  ;;  %p2505_p7 = scmp.lt.s32.totalorder %s2503_s3, %s2497_s25 }
 0x839   : > { %2038 = vst.msk [vmem:[%s2957_s19 + $0x4] sm:$0xf] %vm936_vm3, %v1059_v55 }
 0x83a   : > { %p2506_p9 = por %p2505_p7, %p2504_p6 }
 0x83c   : > { %v1318_v56 = vpop.permute.xlu0 %1317  ;;  %p2507_p12 = pnand %p2506_p9, %p2500_p0 }
 0x83d   : > { %2048 = vst.msk [vmem:[%s2957_s19 + $0xc] sm:$0xf] %vm936_vm3, %v1318_v56 }
 0x842   : > { %v2388_v57 = vpop.eup %2387 }
 0x843   : > { %v1522_v59 = vmul.f32 %v2388_v57, %v1514_v42 }
 0x845   : > { %v1530_v61 = vmul.f32 %v2056_v58, %v1522_v59 }
 0x847   : > { %v1538_v62 = vadd.f32 %v2057_v60, %v1530_v61 }
 0x849   : > { %v1539_v63 = vpack.c.bf16 %v1538_v62, %v1538_v62 }
 0x84b   : > { %1541 = vst.msk [vmem:[#allocation3] sm:$0xf] %vm1540_vm9, %v1539_v63 }
 0x852   : > { %v1542_v1 = vld [vmem:[#allocation3] sm:$0xf] }
 0x853   : > { %2211 = vmatmul.mubr.msk.bf16.vlgmr.msra.gmra.mxu0 %vm702_vm0, %v1542_v1  ;;  %2219 = vmatmul.mubr.msk.bf16.vlgmr.msra.gmra.mxu1 %vm702_vm0, %v1542_v1 }
 0x854   : > { %2230 = vmatprep.mubr.msk.bf16.mxu0 %vm2650_vm1, %v2649_v9  ;;  %2223 = vmatpush3.bf16.msra.mxu0 %v2365_v2 }
 0x855   : > { %2224 = vmatprep.subr.bf16.mxu0 %v2649_v9 }
 0x858   : > { %2225 = vmatpush3.bf16.msra.mxu0 %v2366_v3 }
 0x859   : > { %2226 = vmatprep.subr.bf16.mxu0 %v2649_v9 }
 0x85c   : > { %2227 = vmatpush3.bf16.msra.mxu0 %v2367_v4 }
 0x85d   : > { %2228 = vmatprep.subr.bf16.mxu0 %v2649_v9 }
 0x860   : > { %2229 = vmatpush3.bf16.msra.mxu0 %v2368_v5 }
 0x913   : > { %v1597_v6 = vpop.f32.mrf.mxu0  ;;  %v1653_v7 = vpop.f32.mrf.mxu1 }
 0x914   : > { %v2064_v8 = vmul.f32 -1.442695, %v1597_v6 }
 0x915   : > { %v2212_v10 = vpop.f32.mrf.mxu0  ;;  %v2220_v11 = vpop.f32.mrf.mxu1 }
 0x916   : > { %2389 = vpow2.f32 %v2064_v8 }
 0x917   : > { %v1600_v12 = vpop.f32.mrf.mxu0  ;;  %v1656_v13 = vpop.f32.mrf.mxu1 }
 0x919   : > { %v2213_v14 = vpop.f32.mrf.mxu0  ;;  %v2221_v9 = vpop.f32.mrf.mxu1 }
 0x923   : > { %v2390_v15 = vpop.eup %2389 }
 0x924   : > { %v1662_v16 = vadd.f32 1.0, %v2390_v15 }
 0x926   : > { %2391 = vrcp.f32 %v1662_v16 }
 0x933   : > { %v2392_v17 = vpop.eup %2391 }
 0x934   : > { %v1665_v18 = vmul.f32 %v2392_v17, %v1597_v6 }
 0x936   : > { %v1666_v19 = vmul.f32 %v1665_v18, %v1653_v7 }
 0x938   : > { %v1667_v20 = vpack.c.bf16 %v1666_v19, %v1666_v19 }
 0x93a   : > { %2231 = vmatmul.mubr.msk.bf16.vlgmr.msra.gmra.mxu0 %vm1700_vm10, %v1667_v20 }
 0x93b   : > { %2510 = shalt.err (!%p2507_p12)
}
 0x93c   : > { %s2511_s1 = scalar_lea.hbm %s3113_s16, 256  ;;  %s2515_s9 = scalar_lea.hbm %s3242_s17, 512 }
 0x93d   : > { %p2512_p2 = scmp.ne.s32.totalorder %s3113_s16, %s2511_s1  ;;  %p2516_p5 = scmp.lt.s32.totalorder %s3113_s16, %s3242_s17 }
 0x93e   : > { %p2517_p10 = scmp.lt.s32.totalorder %s2515_s9, %s2511_s1 }
 0x93f   : > { %p2513_p1 = pnand %p2512_p2, %p2801_p4 }
 0x940   : > { %p2518_p11 = por %p2517_p10, %p2516_p5 }
 0x941   : > { %p2514_p3 = pneg %p2513_p1 }
 0x943   : > { %p2519_p13 = pnand %p2518_p11, %p2514_p3 }
 0x945   : > { %2522 = shalt.err (!%p2519_p13)
}
 0x946   : > { %s3254_s3 = smov 64   ;;  %s2660_s25 = smov 4  }
 0x947   : > { %2251 = dma.vmem_to_hbm [thread:$0]  (%p2801_p4), %s3103_s23, 256, %s3113_s16, %s3115_s0, %s3254_s3, %s3254_s3, %s2660_s25  }
 0x948   : > { %s3277_s21 = sshll.u32 %s2633_s30, 8  ;;  %s2523_s24 = scalar_lea.vmem %s3143_s27, 256 }
 0x949   : > { %s1809_s20 = scalar_lea.hbm %s3243_s18, %s3277_s21  ;;  %p2524_p0 = scmp.ne.s32.totalorder %s3143_s27, %s2523_s24 }
 0x94a   : > { %s2661_s9 = smov [#allocation16]  }
 0x94b   : > { %p2525_p6 = pnand %p2524_p0, %p2801_p4  ;;  %s2527_s29 = sshll.u32 %s2661_s9, 4  ;;  %s2528_s29 = int_to_ptr.vmem [resolvable:$false] %s2527_s29 }
 0x94c   : > { %s2529_s23 = scalar_lea.vmem %s2528_s29, 512  ;;  %p2530_p9 = scmp.lt.s32.totalorder %s3143_s27, %s2528_s29 }
 0x94d   : > { %p2526_p7 = pneg %p2525_p6  ;;  %p2531_p12 = scmp.lt.s32.totalorder %s2529_s23, %s2523_s24 }
 0x94f   : > { %p2532_p2 = por %p2531_p12, %p2530_p9 }
 0x951   : > { %p2533_p1 = pnand %p2532_p2, %p2526_p7 }
 0x953   : > { %2536 = shalt.err (!%p2533_p1)
}
 0x954   : > { %s2537_s19 = scalar_lea.hbm %s1809_s20, 256  ;;  %s2541_s26 = scalar_lea.hbm %s3243_s18, 512 }
 0x955   : > { %p2538_p3 = scmp.ne.s32.totalorder %s1809_s20, %s2537_s19  ;;  %p2542_p11 = scmp.lt.s32.totalorder %s1809_s20, %s3243_s18 }
 0x956   : > { %p2543_p13 = scmp.lt.s32.totalorder %s2541_s26, %s2537_s19 }
 0x957   : > { %p2539_p5 = pnand %p2538_p3, %p2801_p4 }
 0x958   : > { %p2544_p0 = por %p2543_p13, %p2542_p11 }
 0x959   : > { %p2540_p10 = pneg %p2539_p5 }
 0x95b   : > { %p2545_p6 = pnand %p2544_p0, %p2540_p10 }
 0x95d   : > { %2548 = shalt.err (!%p2545_p6)
}
 0x95e   : > { %s3278_s24 = smov 64   ;;  %s2015_s9 = sshll.u32 %s2942_s22, 3  ;;  %v1747_v22 = vld [vmem:[#allocation2] sm:$0xff] }
 0x95f   : > { %2252 = dma.vmem_to_hbm [thread:$0]  (%p2801_p4), %s3143_s27, 256, %s1809_s20, %s3115_s0, %s3278_s24, %s3278_s24, %s2660_s25  }
 0x960   : > { %s2073_s29 = sshll.u32 %s2633_s30, 7  ;;  %s671_s3 = scalar_lea.vmem [#allocation13], %s2015_s9 }
 0x961   : > { %s1781_s23 = sshll.u32 %s671_s3, 4  ;;  %s3279_s21 = sld [smem:[#allocation34_spill]]  ;;  %s3177_s23 = int_to_ptr.vmem [resolvable:$true] %s1781_s23 }
 0x962   : > { %s1758_s30 = scalar_lea.sflag [#allocation7], %s2942_s22  ;;  %s2549_s27 = scalar_lea.vmem %s3177_s23, 128 }
 0x963   : > { %p2550_p7 = scmp.ne.s32.totalorder %s3177_s23, %s2549_s27  ;;  %s2662_s0 = smov [#allocation13]  }
 0x964   : > { %s2553_s25 = sshll.u32 %s2662_s0, 4  ;;  %s2554_s25 = int_to_ptr.vmem [resolvable:$false] %s2553_s25 }
 0x965   : > { %p2551_p9 = pnand %p2550_p7, %p2801_p4  ;;  %s2555_s20 = scalar_lea.vmem %s2554_s25, 256 }
 0x966   : > { %p2556_p2 = scmp.lt.s32.totalorder %s3177_s23, %s2554_s25  ;;  %p2557_p1 = scmp.lt.s32.totalorder %s2555_s20, %s2549_s27 }
 0x967   : > { %s3175_s26 = scalar_lea.hbm %s3279_s21, %s2073_s29  ;;  %p2552_p12 = pneg %p2551_p9 }
 0x968   : > { %p2558_p3 = por %p2557_p1, %p2556_p2 }
 0x96a   : > { %p2559_p5 = pnand %p2558_p3, %p2552_p12 }
 0x9fa   : > { %v1738_v21 = vpop.f32.mrf.mxu0 }
 0x9fb   : > { %v1748_v23 = vadd.f32 %v1747_v22, %v1738_v21 }
 0x9fc   : > { %v2232_v24 = vpop.f32.mrf.mxu0 }
 0x9fd   : > { %1749 = vst.msk [vmem:[%s671_s3] sm:$0xff] %vm702_vm0, %v1748_v23 }
 0x9fe   : > { %v1741_v25 = vpop.f32.mrf.mxu0 }
 0x9ff   : > { %2562 = shalt.err (!%p2559_p5)
}
 0xa00   : > { %s2563_s1 = scalar_lea.hbm %s3175_s26, 128  ;;  %s2567_s9 = scalar_lea.hbm %s3279_s21, 256 }
 0xa01   : > { %p2564_p10 = scmp.ne.s32.totalorder %s3175_s26, %s2563_s1  ;;  %p2568_p0 = scmp.lt.s32.totalorder %s3175_s26, %s3279_s21 }
 0xa02   : > { %p2569_p6 = scmp.lt.s32.totalorder %s2567_s9, %s2563_s1 }
 0xa03   : > { %p2565_p11 = pnand %p2564_p10, %p2801_p4 }
 0xa04   : > { %p2570_p7 = por %p2569_p6, %p2568_p0 }
 0xa05   : > { %p2566_p13 = pneg %p2565_p11 }
 0xa07   : > { %p2571_p9 = pnand %p2570_p7, %p2566_p13 }
 0xa09   : > { %2574 = shalt.err (!%p2571_p9)
}
 0xa0a   : > { %2250 = dma.vmem_to_hbm [thread:$0]  (%p2801_p4), %s3177_s23, 128, %s3175_s26, %s1758_s30   ;;  %v2233_v26 = vpop.f32.mrf.mxu0 }
 0xa0b PF: > { %s3280_s19 = sld [smem:[#allocation25_spill]] }
 0xa0c   : > { %s3281_s16 = sld [smem:[#allocation22_spill]] }
 0xa11   : > { %p2287_p12 = scmp.ge.s32.totalorder %s3280_s19, 2 }
 0xa12   : > { %s1825_s0 = sand.u32 1, %s3281_s16  }
 0xa13   : > { %p2270_p2 = pnand %p2287_p12, %p2810_p8  ;;  %s1826_s25 = scalar_lea.sflag [#allocation7], %s1825_s0 }
 0xa15   : > { %p2271_p1 = pneg %p2270_p2 }
 0xa17   : > { %2612 = dma.done.wait (%p2271_p1), %s1826_s25, 128  }
 0xa18   : > { %2614 = vsyncadd (%p2271_p1), %s1826_s25, 4294967168  ;;  %s3283_s20 = sadd.s32 4294967294, %s3280_s19  }
 0xa19   : > { %s1834_s1 = sand.u32 1, %s3283_s20  }
 0xa1a   : > { %s1835_s2 = scalar_lea.sflag [#allocation15], %s1834_s1 }
 0xa1b   : > { %2616 = dma.done.wait (%p2271_p1), %s1835_s2, 512  }
 0xa1c   : > { %2618 = vsyncadd (%p2271_p1), %s1835_s2, 4294966784  ;;  %s38_s19 = sadd.s32 1, %s3280_s19   ;;  %s3284_s23 = sld [smem:[#allocation23_spill]] }
 0xa1d   : > { %p35_p4 = scmp.ge.s32.totalorder %s38_s19, 4   ;;  %s3285_s29 = sld [smem:[#allocation28_spill]] }
 0xa1e   : > { %s3286_s30 = sld [smem:[#allocation24_spill]]  ;;  %s3288_s27 = smov %s2625_s28 }
 0xa1f   : > { %s3287_s0 = sld [smem:[#allocation26_spill]]  ;;  %37 = sbr.rel (!%p35_p4) target bundleno = 16 (0x10), region = 191 }
 0xa22   : > { %s3289_s28 = smov %s3284_s23 }
 0xa24   :  { %1849 = vsyncpa [#allocation6], 1 }
 0xa25   :  { %1851 = vsyncpa [#allocation6 + $0x1], 1 }
 0xa26   :  { %1852 = vsyncpa [#allocation9], 1 }
 0xa27   :  { %1853 = vsyncpa [#allocation12], 1 }
 0xa28   :  { %1854 = vsyncpa [#allocation7], 1 }
 0xa29   :  { %1856 = vsyncpa [#allocation7 + $0x1], 1 }
 0xa2a   :  { %1857 = vsyncpa [#allocation15], 1 }
 0xa2b   :  { %1859 = vsyncpa [#allocation15 + $0x1], 1 }

</bundles_post_ra>
